<compile_context>
chip_gen: v7x
topology: tpu7x:2x2x1
jax: 0.10.0
libtpu: 0.0.40
codegen_flags: <defaults>
</compile_context>

<pallas_src>
import math
import functools

import jax
import jax.numpy as jnp
from jax.experimental import pallas as pl
from jax.experimental.pallas import tpu as pltpu


# ----------------------------------------------------------------------------
# Helpers
# ----------------------------------------------------------------------------

def _round_up(x, m):
    return ((x + m - 1) // m) * m


def _pad2(x, shape):
    pads = [(0, t - s) for s, t in zip(x.shape, shape)]
    if any(p[1] > 0 for p in pads):
        x = jnp.pad(x, pads)
    return x


def _pick_tile(dim, cap, mult):
    """Largest tile <= cap that divides round_up(dim, mult). Returns (tile, padded_dim)."""
    d = _round_up(dim, mult)
    t = min(cap, d)
    while d % t:
        t -= mult
    return t, d


# ----------------------------------------------------------------------------
# Tiled 2-D matmul kernel (NN / NT / TN variants, optional fused bias epilogue)
# ----------------------------------------------------------------------------

def _mm_kernel(*refs, dims, has_bias):
    if has_bias:
        a_ref, b_ref, bias_ref, o_ref, acc_ref = refs
    else:
        a_ref, b_ref, o_ref, acc_ref = refs

    @pl.when(pl.program_id(2) == 0)
    def _init():
        acc_ref[...] = jnp.zeros_like(acc_ref)

    # Operands arrive already in bf16 (cast in the wrapper); f32 accumulation.
    acc_ref[...] += jax.lax.dot_general(
        a_ref[...], b_ref[...], dimension_numbers=(dims, ((), ())),
        preferred_element_type=jnp.float32)

    @pl.when(pl.program_id(2) == pl.num_programs(2) - 1)
    def _fin():
        out = acc_ref[...]
        if has_bias:
            out = out + bias_ref[...]          # fused bias epilogue (VPU, free)
        o_ref[...] = out.astype(o_ref.dtype)


def _tiled_matmul(a, b, mode, bias=None):
    """C = A @ B ('nn'), A @ B^T ('nt'), A^T @ B ('tn') via a tiled MXU kernel."""
    if mode == "nn":
        M, K = a.shape
        K2, N = b.shape
    elif mode == "nt":
        M, K = a.shape
        N, K2 = b.shape
    elif mode == "tn":
        K, M = a.shape
        K2, N = b.shape
    else:
        raise ValueError(mode)
    assert K == K2, (a.shape, b.shape, mode)

    # Lane dims -> multiple of 128; sublane dims -> multiple of 8.  For the
    # transpose-LHS variant ('tn') the output-row tile is also a lane dim.
    m_mult = 128 if mode == "tn" else 8
    tm, Mp = _pick_tile(M, 256, m_mult)
    tn, Np = _pick_tile(N, 512, 128)
    tk, Kp = _pick_tile(K, 512, 128)

    # bf16 cast happens once here (not per grid step inside the kernel).
    a_bf = a.astype(jnp.bfloat16)
    b_bf = b.astype(jnp.bfloat16)

    if mode == "nn":
        a_p, b_p = _pad2(a_bf, (Mp, Kp)), _pad2(b_bf, (Kp, Np))
        a_spec = pl.BlockSpec((tm, tk), lambda i, j, k: (i, k))
        b_spec = pl.BlockSpec((tk, tn), lambda i, j, k: (k, j))
        dims = ((1,), (0,))
    elif mode == "nt":
        a_p, b_p = _pad2(a_bf, (Mp, Kp)), _pad2(b_bf, (Np, Kp))
        a_spec = pl.BlockSpec((tm, tk), lambda i, j, k: (i, k))
        b_spec = pl.BlockSpec((tn, tk), lambda i, j, k: (j, k))
        dims = ((1,), (1,))
    else:  # "tn"
        a_p, b_p = _pad2(a_bf, (Kp, Mp)), _pad2(b_bf, (Kp, Np))
        a_spec = pl.BlockSpec((tk, tm), lambda i, j, k: (k, i))
        b_spec = pl.BlockSpec((tk, tn), lambda i, j, k: (k, j))
        dims = ((0,), (0,))

    operands = [a_p, b_p]
    in_specs = [a_spec, b_spec]
    has_bias = bias is not None
    if has_bias:
        bias_p = _pad2(bias.reshape(1, -1).astype(jnp.float32), (1, Np))
        operands.append(bias_p)
        in_specs.append(pl.BlockSpec((1, tn), lambda i, j, k: (0, j)))

    out = pl.pallas_call(
        functools.partial(_mm_kernel, dims=dims, has_bias=has_bias),
        out_shape=jax.ShapeDtypeStruct((Mp, Np), jnp.float32),
        grid=(Mp // tm, Np // tn, Kp // tk),
        in_specs=in_specs,
        out_specs=pl.BlockSpec((tm, tn), lambda i, j, k: (i, j)),
        scratch_shapes=[pltpu.VMEM((tm, tn), jnp.float32)],
        compiler_params=pltpu.CompilerParams(
            dimension_semantics=("parallel", "parallel", "arbitrary"),
            vmem_limit_bytes=32 * 1024 * 1024),
    )(*operands)
    if Mp == M and Np == N:
        return out                    # skip the padded-output slice when aligned
    return out[:M, :N]


@jax.custom_vjp
def matmul(a, b):
    """(M,K) @ (K,N) -> (M,N); bf16 MXU inputs, f32 accumulation."""
    return _tiled_matmul(a, b, "nn")


def _matmul_fwd(a, b):
    return _tiled_matmul(a, b, "nn"), (a, b)


def _matmul_bwd(res, g):
    a, b = res
    da = _tiled_matmul(g, b, "nt")   # dA = g @ B^T   (no HBM transpose)
    db = _tiled_matmul(a, g, "tn")   # dB = A^T @ g   (bf16 transpose-LHS path)
    return da.astype(a.dtype), db.astype(b.dtype)


matmul.defvjp(_matmul_fwd, _matmul_bwd)


@jax.custom_vjp
def matmul_bias(a, b, bias):
    """(M,K) @ (K,N) + bias with the bias add fused into the matmul epilogue."""
    return _tiled_matmul(a, b, "nn", bias=bias)


def _matmul_bias_fwd(a, b, bias):
    return _tiled_matmul(a, b, "nn", bias=bias), (a, b, bias)


def _matmul_bias_bwd(res, g):
    a, b, bias = res
    da = _tiled_matmul(g, b, "nt")
    db = _tiled_matmul(a, g, "tn")
    dbias = jnp.sum(g, axis=0)
    return da.astype(a.dtype), db.astype(b.dtype), dbias.astype(bias.dtype)


matmul_bias.defvjp(_matmul_bias_fwd, _matmul_bias_bwd)


def linear3d(x, w, b=None):
    """(B, L, D) @ (D, O) [+ fused bias] via the tiled Pallas matmul."""
    B, L, D = x.shape
    x2 = x.reshape(B * L, D)
    y = matmul_bias(x2, w, b) if b is not None else matmul(x2, w)
    return y.reshape(B, L, w.shape[1])


# ----------------------------------------------------------------------------
# Fused multi-head attention kernel (packed QKV in, QK^T + softmax + PV)
# ----------------------------------------------------------------------------

def _mha_kernel(qkv_ref, o_ref, *, n_heads, dim, scale):
    # qkv_ref: (1, L, 3D) bf16 with q|k|v packed along the lane dim.
    qkv = qkv_ref[0]
    dh = dim // n_heads
    for h in range(n_heads):                       # static unroll over heads
        lo = h * dh
        qh = qkv[:, lo:lo + dh]
        kh = qkv[:, dim + lo:dim + lo + dh]
        vh = qkv[:, 2 * dim + lo:2 * dim + lo + dh]
        # scores = q @ k^T (transpose folded into the contraction), f32 acc
        s = jax.lax.dot_general(qh, kh, (((1,), (1,)), ((), ())),
                                preferred_element_type=jnp.float32) * scale
        m = jnp.max(s, axis=-1, keepdims=True)
        e = jnp.exp(s - m)
        p = e * pl.reciprocal(jnp.sum(e, axis=-1, keepdims=True), approx=True)
        oh = jax.lax.dot_general(p.astype(jnp.bfloat16), vh,
                                 (((1,), (0,)), ((), ())),
                                 preferred_element_type=jnp.float32)
        # direct slab store per head (no concatenate / extra VMEM copy)
        o_ref[0, :, lo:lo + dh] = oh.astype(o_ref.dtype)


def _mha_pallas(qkv, n_heads):
    B, L, threeD = qkv.shape
    D = threeD // 3
    dh = D // n_heads
    scale = 1.0 / math.sqrt(dh)
    qkv_bf = qkv.astype(jnp.bfloat16)              # single wrapper-side cast
    # TODO(synk): for long sequences add a q-tile grid axis + flash-style KV
    # tiling with online-softmax scratch (required to stay under v7x's 64 MiB
    # VMEM and to give both v7x TensorCores work when B is small).
    return pl.pallas_call(
        functools.partial(_mha_kernel, n_heads=n_heads, dim=D, scale=scale),
        out_shape=jax.ShapeDtypeStruct((B, L, D), jnp.float32),
        grid=(B,),
        in_specs=[pl.BlockSpec((1, L, threeD), lambda b: (b, 0, 0))],
        out_specs=pl.BlockSpec((1, L, D), lambda b: (b, 0, 0)),
        compiler_params=pltpu.CompilerParams(
            dimension_semantics=("parallel",),
            vmem_limit_bytes=32 * 1024 * 1024),
    )(qkv_bf)


@functools.partial(jax.custom_vjp, nondiff_argnums=(1,))
def mha_packed(qkv, n_heads):
    """Packed (B, L, 3D) -> (B, L, D) fused attention."""
    return _mha_pallas(qkv, n_heads)


def _mha_fwd(qkv, n_heads):
    return _mha_pallas(qkv, n_heads), (qkv,)


def _mha_bwd(n_heads, res, g):
    # TODO(synk): plain-JAX f32 recompute backward (exact softmax-attention VJP);
    # a fused flash-style backward kernel would avoid the HBM score round-trip.
    (qkv,) = res
    B, L, threeD = qkv.shape
    D = threeD // 3
    dh = D // n_heads
    scale = 1.0 / math.sqrt(dh)
    q, k, v = qkv[..., :D], qkv[..., D:2 * D], qkv[..., 2 * D:]

    def split(t):
        return t.reshape(B, L, n_heads, dh).transpose(0, 2, 1, 3)

    qh, kh, vh, gh = split(q), split(k), split(v), split(g)
    s = jnp.einsum('bhqd,bhkd->bhqk', qh, kh) * scale
    p = jax.nn.softmax(s, axis=-1)
    dv = jnp.einsum('bhqk,bhqd->bhkd', p, gh)
    dp = jnp.einsum('bhqd,bhkd->bhqk', gh, vh)
    ds = p * (dp - jnp.sum(dp * p, axis=-1, keepdims=True))
    dq = jnp.einsum('bhqk,bhkd->bhqd', ds, kh) * scale
    dk = jnp.einsum('bhqk,bhqd->bhkd', ds, qh) * scale

    def merge(t):
        return t.transpose(0, 2, 1, 3).reshape(B, L, D)

    dqkv = jnp.concatenate([merge(dq), merge(dk), merge(dv)], axis=-1)
    return (dqkv.astype(qkv.dtype),)


mha_packed.defvjp(_mha_fwd, _mha_bwd)


# ----------------------------------------------------------------------------
# Tiled MSE reduction kernel (VPU accumulate per step, single reduce at end)
# ----------------------------------------------------------------------------

def _mse_kernel(x_ref, y_ref, o_ref, acc_ref, *, inv_n):
    @pl.when(pl.program_id(0) == 0)
    def _init():
        acc_ref[...] = jnp.zeros_like(acc_ref)

    d = x_ref[...] - y_ref[...]
    acc_ref[...] += d * d                       # pure VPU FMA per grid step

    @pl.when(pl.program_id(0) == pl.num_programs(0) - 1)
    def _fin():
        # expensive cross-lane/sublane reduce + scalar store run exactly once
        o_ref[0, 0] = jnp.sum(acc_ref[...]) * inv_n


def mse_pallas(x, y):
    xf = x.reshape(-1).astype(jnp.float32)
    yf = y.reshape(-1).astype(jnp.float32)
    n = xf.size
    LANE = 128
    rows = pl.cdiv(n, LANE)
    tr, rows_p = _pick_tile(rows, 512, 8)
    total = rows_p * LANE
    if total > n:
        xf = jnp.pad(xf, (0, total - n))
        yf = jnp.pad(yf, (0, total - n))
    x2 = xf.reshape(rows_p, LANE)
    y2 = yf.reshape(rows_p, LANE)

    out = pl.pallas_call(
        functools.partial(_mse_kernel, inv_n=1.0 / float(n)),
        out_shape=jax.ShapeDtypeStruct((1, 1), jnp.float32),
        grid=(rows_p // tr,),
        in_specs=[pl.BlockSpec((tr, LANE), lambda i: (i, 0)),
                  pl.BlockSpec((tr, LANE), lambda i: (i, 0))],
        out_specs=pl.BlockSpec((1, 1), lambda i: (0, 0),
                               memory_space=pltpu.MemorySpace.SMEM),
        scratch_shapes=[pltpu.VMEM((tr, LANE), jnp.float32)],
        compiler_params=pltpu.CompilerParams(
            dimension_semantics=("arbitrary",)),
    )(x2, y2)
    return out[0, 0]


# ----------------------------------------------------------------------------
# Model (JAX glue around the Pallas kernels)
# ----------------------------------------------------------------------------

def rmsnorm(x, w, eps=1e-5):
    # TODO(synk): fuse rmsnorm + AdaLN shift/scale + residual-gate into a single
    # elementwise Pallas kernel (needs a hand-written VJP since the MCMC energy
    # grad must flow through it); left in XLA for now.
    var = jnp.mean(x * x, axis=-1, keepdims=True)
    return x * jax.lax.rsqrt(var + eps) * w


def transformer_energy(tp, x, c_vec, n_heads):
    """Energy-Based Transformer with AdaLN conditioning.

    # TODO(synk): `EBTAdaLN` / `EBTModelArgs` are not provided in the reference;
    # this is an AdaLN-conditioned Llama-style approximation (non-causal
    # attention, SwiGLU FFN, per-token scalar energy head).
    """
    B, L, D = x.shape
    for lyr in tp["layers"]:
        mod = matmul_bias(jax.nn.silu(c_vec), lyr["ada_w"], lyr["ada_b"])  # (B,6D)
        sh1, sc1, g1, sh2, sc2, g2 = jnp.split(mod, 6, axis=-1)

        # --- attention block (fused QKV matmul + packed fused attention) ---
        h = rmsnorm(x, lyr["attn_norm"])
        h = h * (1.0 + sc1[:, None, :]) + sh1[:, None, :]
        qkv = linear3d(h, lyr["wqkv"])           # one (D, 3D) matmul, stays packed
        o = mha_packed(qkv, n_heads)             # q/k/v sliced inside the kernel
        o = linear3d(o, lyr["wo"])
        x = x + g1[:, None, :] * o

        # --- SwiGLU FFN block (merged w1|w3 matmul) ---
        h = rmsnorm(x, lyr["ffn_norm"])
        h = h * (1.0 + sc2[:, None, :]) + sh2[:, None, :]
        u = linear3d(h, lyr["w13"])              # one (D, 2*hidden) matmul
        u1, u3 = jnp.split(u, 2, axis=-1)
        # TODO(synk): fuse the SwiGLU gate into the w2 matmul prologue.
        ff = linear3d(jax.nn.silu(u1) * u3, lyr["w2"])
        x = x + g2[:, None, :] * ff

    x = rmsnorm(x, tp["final_norm"])
    # N=1 energy head as a VPU reduction (avoids a 1/128-lane masked matmul).
    energy = jnp.einsum("bld,d->bl", x, tp["head_w"][:, 0]) + tp["head_b"][0]
    return energy[..., None]                     # (B, L, 1)


def refine_embeddings(params, real_emb, pred_emb, c, cfg):
    alpha = jnp.maximum(params["alpha"], 1e-4)
    B, _, D = real_emb.shape
    s_tok = jnp.broadcast_to(params["start_token"][None, :, :], (B, 1, D))
    e_tok = jnp.broadcast_to(params["end_token"][None, :, :], (B, 1, D))

    for step in range(cfg["mcmc_num_steps"]):
        c_step = c + params["transformer"]["mcmc_embed"][step][None, :]

        def energy_sum(pe, c_step=c_step):
            all_emb = jnp.concatenate([s_tok, real_emb, pe, e_tok], axis=1)
            all_emb = all_emb + params["pos_embed"][:, :all_emb.shape[1], :]
            e = transformer_energy(params["transformer"], all_emb, c_step,
                                   cfg["num_heads"])
            return jnp.sum(e)

        grad = jax.grad(energy_sum)(pred_emb)
        pred_emb = pred_emb - alpha * grad

    # matches the reference .detach() of the refined embeddings
    return jax.lax.stop_gradient(pred_emb)


def debt_forward(params, x_start, labels, noise_key, cfg):
    B, C, H, W = x_start.shape
    p = cfg["patch_size"]
    h, w = H // p, W // p

    # patchify (NCHW -> B, L, C*p*p)
    gt_tokens = (x_start.reshape(B, C, h, p, w, p)
                        .transpose(0, 2, 4, 1, 3, 5)
                        .reshape(B, h * w, -1))

    real_emb = linear3d(gt_tokens, params["in_w"], params["in_b"])
    # corrupt_embeddings: 'random_noise' initial condition
    pred_emb = jax.random.normal(noise_key, real_emb.shape, dtype=real_emb.dtype)

    c = params["y_embedder"][labels]  # embedding lookup (glue)
    pred_emb = refine_embeddings(params, real_emb, pred_emb, c, cfg)

    pred_tokens = linear3d(pred_emb, params["out_w"], params["out_b"])

    # unpatchify (B, L, C*p*p -> NCHW)
    cv = cfg["vae_embed_dim"]
    recon = (pred_tokens.reshape(B, h, w, cv, p, p)
                        .transpose(0, 3, 1, 4, 2, 5)
                        .reshape(B, cv, h * p, w * p))

    return mse_pallas(recon, x_start)


# ----------------------------------------------------------------------------
# Deterministic parameter init
# ----------------------------------------------------------------------------

def init_params(key, cfg):
    D = cfg["embed_dim"]
    td = cfg["token_embed_dim"]
    depth = cfg["depth"]
    hidden = int(D * cfg["mlp_ratio"])
    full_seq = 2 * cfg["seq_len"] + 2

    keys = list(jax.random.split(key, 16 + depth * 8))
    it = iter(keys)

    def nk():
        return next(it)

    def normal(shape, std=0.02):
        return std * jax.random.normal(nk(), shape, jnp.float32)

    def xavier(fan_in, fan_out):
        bound = math.sqrt(6.0 / (fan_in + fan_out))
        return jax.random.uniform(nk(), (fan_in, fan_out), jnp.float32, -bound, bound)

    layers = []
    for _ in range(depth):
        layers.append(dict(
            attn_norm=jnp.ones((D,), jnp.float32),
            ffn_norm=jnp.ones((D,), jnp.float32),
            wqkv=normal((D, 3 * D)), wo=normal((D, D)),
            w13=normal((D, 2 * hidden)), w2=normal((hidden, D)),
            ada_w=normal((D, 6 * D)), ada_b=jnp.zeros((6 * D,), jnp.float32),
        ))

    transformer = dict(
        layers=layers,
        final_norm=jnp.ones((D,), jnp.float32),
        head_w=normal((D, 1)),
        head_b=jnp.zeros((1,), jnp.float32),
        mcmc_embed=normal((cfg["mcmc_num_steps"], D)),
    )

    return dict(
        alpha=jnp.float32(cfg["mcmc_step_size"]),
        y_embedder=normal((cfg["class_num"] + 1, D)),
        pos_embed=normal((1, full_seq, D)),
        start_token=normal((1, D)),
        end_token=normal((1, D)),
        in_w=xavier(td, D), in_b=jnp.zeros((D,), jnp.float32),
        out_w=xavier(D, td), out_b=jnp.zeros((td,), jnp.float32),
        transformer=transformer,
    )


# ----------------------------------------------------------------------------
# Main
# ----------------------------------------------------------------------------

if __name__ == "__main__":
    cfg = dict(
        img_size=16, vae_stride=4, patch_size=1,
        embed_dim=128, depth=2, num_heads=4, mlp_ratio=4.0,
        class_num=10, mcmc_num_steps=2, mcmc_step_size=0.01,
        vae_embed_dim=16,
    )
    cfg["seq_h"] = cfg["img_size"] // cfg["vae_stride"] // cfg["patch_size"]   # 4
    cfg["seq_len"] = cfg["seq_h"] * cfg["seq_h"]                               # 16
    cfg["token_embed_dim"] = 16 * cfg["patch_size"] ** 2                       # 16

    key = jax.random.PRNGKey(0)
    k_param, k_x, k_lab, k_noise = jax.random.split(key, 4)

    params = init_params(k_param, cfg)

    B = 2
    H = W = cfg["seq_h"] * cfg["patch_size"]          # latent spatial size = 4
    x_start = jax.random.normal(k_x, (B, cfg["vae_embed_dim"], H, W), jnp.float32)
    labels = jax.random.randint(k_lab, (B,), 0, cfg["class_num"])

    fwd = jax.jit(lambda p, x, l, nk: debt_forward(p, x, l, nk, cfg))
    loss = jax.block_until_ready(fwd(params, x_start, labels, k_noise))
    assert jnp.isfinite(loss), "loss is not finite"
    print("KERNEL_OK")
</pallas_src>

<mosaic_0001>
module attributes {stable_mosaic.version = 11 : i64} {
  func.func @_mm_kernel(%arg0: i32, %arg1: i32, %arg2: i32, %arg3: memref<8x128xbf16, #tpu.memory_space<vmem>>, %arg4: memref<128x384xbf16, #tpu.memory_space<vmem>>, %arg5: memref<1x384xf32, #tpu.memory_space<vmem>>, %arg6: memref<8x384xf32, #tpu.memory_space<vmem>>, %arg7: memref<8x384xf32, #tpu.memory_space<vmem>>) attributes {dimension_semantics = [#tpu.dimension_semantics<parallel>, #tpu.dimension_semantics<parallel>, #tpu.dimension_semantics<arbitrary>], iteration_bounds = array<i64: 1, 2, 1>, scalar_prefetch = 0 : i64, scratch_operands = 1 : i64, tpu.core_type = #tpu.core_type<tc>, window_params = [{transform_indices = @transform_0, window_bounds = array<i64: 8, 128>}, {transform_indices = @transform_1, window_bounds = array<i64: 128, 384>}, {transform_indices = @transform_2, window_bounds = array<i64: 1, 384>}, {transform_indices = @transform_3, window_bounds = array<i64: 8, 384>}]} {
    %c0_i32 = arith.constant 0 : i32
    %0 = arith.cmpi eq, %arg2, %c0_i32 : i32
    %1 = arith.extui %0 : i1 to i32
    %c0_i32_0 = arith.constant 0 : i32
    %2 = arith.cmpi ne, %1, %c0_i32_0 : i32
    scf.if %2 {
      %cst_10 = arith.constant 0.000000e+00 : f32
      %12 = vector.broadcast %cst_10 : f32 to vector<8x384xf32>
      %c0_11 = arith.constant 0 : index
      %c0_12 = arith.constant 0 : index
      %13 = vector.load %arg7[%c0_11, %c0_12] : memref<8x384xf32, #tpu.memory_space<vmem>>, vector<8x384xf32>
      tpu.vector_store %arg7[%c0_11, %c0_12], %12 {strides = array<i32>} : memref<8x384xf32, #tpu.memory_space<vmem>>, vector<8x384xf32>,
    } else {
    }
    %c0 = arith.constant 0 : index
    %c0_1 = arith.constant 0 : index
    %3 = vector.load %arg7[%c0, %c0_1] : memref<8x384xf32, #tpu.memory_space<vmem>>, vector<8x384xf32>
    %c0_2 = arith.constant 0 : index
    %c0_3 = arith.constant 0 : index
    %4 = vector.load %arg3[%c0_2, %c0_3] : memref<8x128xbf16, #tpu.memory_space<vmem>>, vector<8x128xbf16>
    %c0_4 = arith.constant 0 : index
    %c0_5 = arith.constant 0 : index
    %5 = vector.load %arg4[%c0_4, %c0_5] : memref<128x384xbf16, #tpu.memory_space<vmem>>, vector<128x384xbf16>
    %cst = arith.constant dense<0.000000e+00> : vector<8x384xf32>
    %6 = tpu.matmul %4, %5, %cst {dimension_numbers = #tpu.dot_dimension_numbers<[1], [0], [0], [1], [0, 0, 1, 1], [], []>} : vector<8x128xbf16>, vector<128x384xbf16>, vector<8x384xf32> -> vector<8x384xf32>
    %7 = arith.addf %3, %6 : vector<8x384xf32>
    %c0_6 = arith.constant 0 : index
    %c0_7 = arith.constant 0 : index
    %8 = vector.load %arg7[%c0_6, %c0_7] : memref<8x384xf32, #tpu.memory_space<vmem>>, vector<8x384xf32>
    tpu.vector_store %arg7[%c0_6, %c0_7], %7 {strides = array<i32>} : memref<8x384xf32, #tpu.memory_space<vmem>>, vector<8x384xf32>,
    %c0_i32_8 = arith.constant 0 : i32
    %9 = arith.cmpi eq, %arg2, %c0_i32_8 : i32
    %10 = arith.extui %9 : i1 to i32
    %c0_i32_9 = arith.constant 0 : i32
    %11 = arith.cmpi ne, %10, %c0_i32_9 : i32
    scf.if %11 {
      %c0_10 = arith.constant 0 : index
      %c0_11 = arith.constant 0 : index
      %12 = vector.load %arg7[%c0_10, %c0_11] : memref<8x384xf32, #tpu.memory_space<vmem>>, vector<8x384xf32>
      %c0_12 = arith.constant 0 : index
      %c0_13 = arith.constant 0 : index
      %13 = vector.load %arg5[%c0_12, %c0_13] : memref<1x384xf32, #tpu.memory_space<vmem>>, vector<1x384xf32>
      %14 = vector.broadcast %13 : vector<1x384xf32> to vector<8x384xf32>
      %15 = arith.addf %12, %14 : vector<8x384xf32>
      %c0_14 = arith.constant 0 : index
      %c0_15 = arith.constant 0 : index
      %16 = vector.load %arg6[%c0_14, %c0_15] : memref<8x384xf32, #tpu.memory_space<vmem>>, vector<8x384xf32>
      tpu.vector_store %arg6[%c0_14, %c0_15], %15 {strides = array<i32>} : memref<8x384xf32, #tpu.memory_space<vmem>>, vector<8x384xf32>,
    } else {
    }
    return
  }
  func.func @transform_0(%arg0: i32, %arg1: i32, %arg2: i32) -> (i32, i32) {
    %c0_i32 = arith.constant 0 : i32
    return %arg0, %arg2 : i32, i32
  }
  func.func @transform_1(%arg0: i32, %arg1: i32, %arg2: i32) -> (i32, i32) {
    %c0_i32 = arith.constant 0 : i32
    return %arg2, %arg1 : i32, i32
  }
  func.func @transform_2(%arg0: i32, %arg1: i32, %arg2: i32) -> (i32, i32) {
    %c0_i32 = arith.constant 0 : i32
    %c0_i32_0 = arith.constant 0 : i32
    return %c0_i32, %arg1 : i32, i32
  }
  func.func @transform_3(%arg0: i32, %arg1: i32, %arg2: i32) -> (i32, i32) {
    %c0_i32 = arith.constant 0 : i32
    return %arg0, %arg1 : i32, i32
  }
}

module attributes {stable_mosaic.version = 11 : i64} {
  func.func @_mm_kernel(%arg0: i32, %arg1: i32, %arg2: i32, %arg3: memref<32x128xbf16, #tpu.memory_space<vmem>>, %arg4: memref<128x128xbf16, #tpu.memory_space<vmem>>, %arg5: memref<1x128xf32, #tpu.memory_space<vmem>>, %arg6: memref<32x128xf32, #tpu.memory_space<vmem>>, %arg7: memref<32x128xf32, #tpu.memory_space<vmem>>) attributes {dimension_semantics = [#tpu.dimension_semantics<parallel>, #tpu.dimension_semantics<parallel>, #tpu.dimension_semantics<arbitrary>], iteration_bounds = array<i64: 1, 1, 1>, scalar_prefetch = 0 : i64, scratch_operands = 1 : i64, tpu.core_type = #tpu.core_type<tc>, window_params = [{transform_indices = @transform_0, window_bounds = array<i64: 32, 128>}, {transform_indices = @transform_1, window_bounds = array<i64: 128, 128>}, {transform_indices = @transform_2, window_bounds = array<i64: 1, 128>}, {transform_indices = @transform_3, window_bounds = array<i64: 32, 128>}]} {
    %c0_i32 = arith.constant 0 : i32
    %0 = arith.cmpi eq, %arg2, %c0_i32 : i32
    %1 = arith.extui %0 : i1 to i32
    %c0_i32_0 = arith.constant 0 : i32
    %2 = arith.cmpi ne, %1, %c0_i32_0 : i32
    scf.if %2 {
      %cst_10 = arith.constant 0.000000e+00 : f32
      %12 = vector.broadcast %cst_10 : f32 to vector<32x128xf32>
      %c0_11 = arith.constant 0 : index
      %c0_12 = arith.constant 0 : index
      %13 = vector.load %arg7[%c0_11, %c0_12] : memref<32x128xf32, #tpu.memory_space<vmem>>, vector<32x128xf32>
      tpu.vector_store %arg7[%c0_11, %c0_12], %12 {strides = array<i32>} : memref<32x128xf32, #tpu.memory_space<vmem>>, vector<32x128xf32>,
    } else {
    }
    %c0 = arith.constant 0 : index
    %c0_1 = arith.constant 0 : index
    %3 = vector.load %arg7[%c0, %c0_1] : memref<32x128xf32, #tpu.memory_space<vmem>>, vector<32x128xf32>
    %c0_2 = arith.constant 0 : index
    %c0_3 = arith.constant 0 : index
    %4 = vector.load %arg3[%c0_2, %c0_3] : memref<32x128xbf16, #tpu.memory_space<vmem>>, vector<32x128xbf16>
    %c0_4 = arith.constant 0 : index
    %c0_5 = arith.constant 0 : index
    %5 = vector.load %arg4[%c0_4, %c0_5] : memref<128x128xbf16, #tpu.memory_space<vmem>>, vector<128x128xbf16>
    %cst = arith.constant dense<0.000000e+00> : vector<32x128xf32>
    %6 = tpu.matmul %4, %5, %cst {dimension_numbers = #tpu.dot_dimension_numbers<[1], [0], [0], [1], [0, 0, 1, 1], [], []>} : vector<32x128xbf16>, vector<128x128xbf16>, vector<32x128xf32> -> vector<32x128xf32>
    %7 = arith.addf %3, %6 : vector<32x128xf32>
    %c0_6 = arith.constant 0 : index
    %c0_7 = arith.constant 0 : index
    %8 = vector.load %arg7[%c0_6, %c0_7] : memref<32x128xf32, #tpu.memory_space<vmem>>, vector<32x128xf32>
    tpu.vector_store %arg7[%c0_6, %c0_7], %7 {strides = array<i32>} : memref<32x128xf32, #tpu.memory_space<vmem>>, vector<32x128xf32>,
    %c0_i32_8 = arith.constant 0 : i32
    %9 = arith.cmpi eq, %arg2, %c0_i32_8 : i32
    %10 = arith.extui %9 : i1 to i32
    %c0_i32_9 = arith.constant 0 : i32
    %11 = arith.cmpi ne, %10, %c0_i32_9 : i32
    scf.if %11 {
      %c0_10 = arith.constant 0 : index
      %c0_11 = arith.constant 0 : index
      %12 = vector.load %arg7[%c0_10, %c0_11] : memref<32x128xf32, #tpu.memory_space<vmem>>, vector<32x128xf32>
      %c0_12 = arith.constant 0 : index
      %c0_13 = arith.constant 0 : index
      %13 = vector.load %arg5[%c0_12, %c0_13] : memref<1x128xf32, #tpu.memory_space<vmem>>, vector<1x128xf32>
      %14 = vector.broadcast %13 : vector<1x128xf32> to vector<32x128xf32>
      %15 = arith.addf %12, %14 : vector<32x128xf32>
      %c0_14 = arith.constant 0 : index
      %c0_15 = arith.constant 0 : index
      %16 = vector.load %arg6[%c0_14, %c0_15] : memref<32x128xf32, #tpu.memory_space<vmem>>, vector<32x128xf32>
      tpu.vector_store %arg6[%c0_14, %c0_15], %15 {strides = array<i32>} : memref<32x128xf32, #tpu.memory_space<vmem>>, vector<32x128xf32>,
    } else {
    }
    return
  }
  func.func @transform_0(%arg0: i32, %arg1: i32, %arg2: i32) -> (i32, i32) {
    %c0_i32 = arith.constant 0 : i32
    return %arg0, %arg2 : i32, i32
  }
  func.func @transform_1(%arg0: i32, %arg1: i32, %arg2: i32) -> (i32, i32) {
    %c0_i32 = arith.constant 0 : i32
    return %arg2, %arg1 : i32, i32
  }
  func.func @transform_2(%arg0: i32, %arg1: i32, %arg2: i32) -> (i32, i32) {
    %c0_i32 = arith.constant 0 : i32
    %c0_i32_0 = arith.constant 0 : i32
    return %c0_i32, %arg1 : i32, i32
  }
  func.func @transform_3(%arg0: i32, %arg1: i32, %arg2: i32) -> (i32, i32) {
    %c0_i32 = arith.constant 0 : i32
    return %arg0, %arg1 : i32, i32
  }
}

module attributes {stable_mosaic.version = 11 : i64} {
  func.func @_mm_kernel(%arg0: i32, %arg1: i32, %arg2: i32, %arg3: memref<72x128xbf16, #tpu.memory_space<vmem>>, %arg4: memref<128x384xbf16, #tpu.memory_space<vmem>>, %arg5: memref<72x384xf32, #tpu.memory_space<vmem>>, %arg6: memref<72x384xf32, #tpu.memory_space<vmem>>) attributes {dimension_semantics = [#tpu.dimension_semantics<parallel>, #tpu.dimension_semantics<parallel>, #tpu.dimension_semantics<arbitrary>], iteration_bounds = array<i64: 1, 1, 1>, scalar_prefetch = 0 : i64, scratch_operands = 1 : i64, tpu.core_type = #tpu.core_type<tc>, window_params = [{transform_indices = @transform_0, window_bounds = array<i64: 72, 128>}, {transform_indices = @transform_1, window_bounds = array<i64: 128, 384>}, {transform_indices = @transform_2, window_bounds = array<i64: 72, 384>}]} {
    %c0_i32 = arith.constant 0 : i32
    %0 = arith.cmpi eq, %arg2, %c0_i32 : i32
    %1 = arith.extui %0 : i1 to i32
    %c0_i32_0 = arith.constant 0 : i32
    %2 = arith.cmpi ne, %1, %c0_i32_0 : i32
    scf.if %2 {
      %cst_10 = arith.constant 0.000000e+00 : f32
      %12 = vector.broadcast %cst_10 : f32 to vector<72x384xf32>
      %c0_11 = arith.constant 0 : index
      %c0_12 = arith.constant 0 : index
      %13 = vector.load %arg6[%c0_11, %c0_12] : memref<72x384xf32, #tpu.memory_space<vmem>>, vector<72x384xf32>
      tpu.vector_store %arg6[%c0_11, %c0_12], %12 {strides = array<i32>} : memref<72x384xf32, #tpu.memory_space<vmem>>, vector<72x384xf32>,
    } else {
    }
    %c0 = arith.constant 0 : index
    %c0_1 = arith.constant 0 : index
    %3 = vector.load %arg6[%c0, %c0_1] : memref<72x384xf32, #tpu.memory_space<vmem>>, vector<72x384xf32>
    %c0_2 = arith.constant 0 : index
    %c0_3 = arith.constant 0 : index
    %4 = vector.load %arg3[%c0_2, %c0_3] : memref<72x128xbf16, #tpu.memory_space<vmem>>, vector<72x128xbf16>
    %c0_4 = arith.constant 0 : index
    %c0_5 = arith.constant 0 : index
    %5 = vector.load %arg4[%c0_4, %c0_5] : memref<128x384xbf16, #tpu.memory_space<vmem>>, vector<128x384xbf16>
    %cst = arith.constant dense<0.000000e+00> : vector<72x384xf32>
    %6 = tpu.matmul %4, %5, %cst {dimension_numbers = #tpu.dot_dimension_numbers<[1], [0], [0], [1], [0, 0, 1, 1], [], []>} : vector<72x128xbf16>, vector<128x384xbf16>, vector<72x384xf32> -> vector<72x384xf32>
    %7 = arith.addf %3, %6 : vector<72x384xf32>
    %c0_6 = arith.constant 0 : index
    %c0_7 = arith.constant 0 : index
    %8 = vector.load %arg6[%c0_6, %c0_7] : memref<72x384xf32, #tpu.memory_space<vmem>>, vector<72x384xf32>
    tpu.vector_store %arg6[%c0_6, %c0_7], %7 {strides = array<i32>} : memref<72x384xf32, #tpu.memory_space<vmem>>, vector<72x384xf32>,
    %c0_i32_8 = arith.constant 0 : i32
    %9 = arith.cmpi eq, %arg2, %c0_i32_8 : i32
    %10 = arith.extui %9 : i1 to i32
    %c0_i32_9 = arith.constant 0 : i32
    %11 = arith.cmpi ne, %10, %c0_i32_9 : i32
    scf.if %11 {
      %c0_10 = arith.constant 0 : index
      %c0_11 = arith.constant 0 : index
      %12 = vector.load %arg6[%c0_10, %c0_11] : memref<72x384xf32, #tpu.memory_space<vmem>>, vector<72x384xf32>
      %c0_12 = arith.constant 0 : index
      %c0_13 = arith.constant 0 : index
      %13 = vector.load %arg5[%c0_12, %c0_13] : memref<72x384xf32, #tpu.memory_space<vmem>>, vector<72x384xf32>
      tpu.vector_store %arg5[%c0_12, %c0_13], %12 {strides = array<i32>} : memref<72x384xf32, #tpu.memory_space<vmem>>, vector<72x384xf32>,
    } else {
    }
    return
  }
  func.func @transform_0(%arg0: i32, %arg1: i32, %arg2: i32) -> (i32, i32) {
    %c0_i32 = arith.constant 0 : i32
    return %arg0, %arg2 : i32, i32
  }
  func.func @transform_1(%arg0: i32, %arg1: i32, %arg2: i32) -> (i32, i32) {
    %c0_i32 = arith.constant 0 : i32
    return %arg2, %arg1 : i32, i32
  }
  func.func @transform_2(%arg0: i32, %arg1: i32, %arg2: i32) -> (i32, i32) {
    %c0_i32 = arith.constant 0 : i32
    return %arg0, %arg1 : i32, i32
  }
}

module attributes {stable_mosaic.version = 11 : i64} {
  func.func @_mha_kernel(%arg0: i32, %arg1: memref<1x34x384xbf16, #tpu.memory_space<vmem>>, %arg2: memref<1x34x128xf32, #tpu.memory_space<vmem>>) attributes {dimension_semantics = [#tpu.dimension_semantics<parallel>], iteration_bounds = array<i64: 2>, scalar_prefetch = 0 : i64, scratch_operands = 0 : i64, tpu.core_type = #tpu.core_type<tc>, window_params = [{transform_indices = @transform_0, window_bounds = array<i64: 1, 34, 384>}, {transform_indices = @transform_1, window_bounds = array<i64: 1, 34, 128>}]} {
    %c0 = arith.constant 0 : index
    %c0_0 = arith.constant 0 : index
    %c0_1 = arith.constant 0 : index
    %0 = vector.load %arg1[%c0, %c0_0, %c0_1] : memref<1x34x384xbf16, #tpu.memory_space<vmem>>, vector<1x34x384xbf16>
    %1 = vector.shape_cast %0 : vector<1x34x384xbf16> to vector<34x384xbf16>
    %2 = vector.extract_strided_slice %1 {offsets = [0, 0], sizes = [34, 32], strides = [1, 1]} : vector<34x384xbf16> to vector<34x32xbf16>
    %3 = vector.extract_strided_slice %1 {offsets = [0, 128], sizes = [34, 32], strides = [1, 1]} : vector<34x384xbf16> to vector<34x32xbf16>
    %4 = vector.extract_strided_slice %1 {offsets = [0, 256], sizes = [34, 32], strides = [1, 1]} : vector<34x384xbf16> to vector<34x32xbf16>
    %cst = arith.constant dense<0.000000e+00> : vector<34x34xf32>
    %5 = tpu.matmul %2, %3, %cst {dimension_numbers = #tpu.dot_dimension_numbers<[1], [1], [0], [0], [0, 0, 1, 0], [], []>} : vector<34x32xbf16>, vector<34x32xbf16>, vector<34x34xf32> -> vector<34x34xf32>
    %cst_2 = arith.constant 0.176776692 : f32
    %6 = vector.broadcast %cst_2 : f32 to vector<34x34xf32>
    %7 = arith.mulf %5, %6 : vector<34x34xf32>
    %cst_3 = arith.constant dense<0xFF800000> : vector<34xf32>
    %8 = vector.multi_reduction <maximumf>, %7, %cst_3 [1] : vector<34x34xf32> to vector<34xf32>
    %9 = vector.shape_cast %8 : vector<34xf32> to vector<34x1xf32>
    %10 = vector.broadcast %9 : vector<34x1xf32> to vector<34x34xf32>
    %11 = arith.subf %7, %10 : vector<34x34xf32>
    %12 = math.exp %11 : vector<34x34xf32>
    %cst_4 = arith.constant dense<0.000000e+00> : vector<34xf32>
    %13 = vector.multi_reduction <add>, %12, %cst_4 [1] : vector<34x34xf32> to vector<34xf32>
    %14 = vector.shape_cast %13 : vector<34xf32> to vector<34x1xf32>
    %15 = tpu.reciprocal %14 {approx = true} : vector<34x1xf32> -> vector<34x1xf32>
    %16 = vector.broadcast %15 : vector<34x1xf32> to vector<34x34xf32>
    %17 = arith.mulf %12, %16 : vector<34x34xf32>
    %18 = arith.truncf %17 : vector<34x34xf32> to vector<34x34xbf16>
    %cst_5 = arith.constant dense<0.000000e+00> : vector<34x32xf32>
    %19 = tpu.matmul %18, %4, %cst_5 {dimension_numbers = #tpu.dot_dimension_numbers<[1], [0], [0], [1], [0, 0, 1, 1], [], []>} : vector<34x34xbf16>, vector<34x32xbf16>, vector<34x32xf32> -> vector<34x32xf32>
    %c0_6 = arith.constant 0 : index
    %c0_7 = arith.constant 0 : index
    %c0_8 = arith.constant 0 : index
    %20 = vector.load %arg2[%c0_6, %c0_7, %c0_8] : memref<1x34x128xf32, #tpu.memory_space<vmem>>, vector<1x34x32xf32>
    %21 = vector.shape_cast %20 : vector<1x34x32xf32> to vector<34x32xf32>
    %22 = vector.shape_cast %19 : vector<34x32xf32> to vector<1x34x32xf32>
    tpu.vector_store %arg2[%c0_6, %c0_7, %c0_8], %22 {strides = array<i32>} : memref<1x34x128xf32, #tpu.memory_space<vmem>>, vector<1x34x32xf32>,
    %23 = vector.extract_strided_slice %1 {offsets = [0, 32], sizes = [34, 32], strides = [1, 1]} : vector<34x384xbf16> to vector<34x32xbf16>
    %24 = vector.extract_strided_slice %1 {offsets = [0, 160], sizes = [34, 32], strides = [1, 1]} : vector<34x384xbf16> to vector<34x32xbf16>
    %25 = vector.extract_strided_slice %1 {offsets = [0, 288], sizes = [34, 32], strides = [1, 1]} : vector<34x384xbf16> to vector<34x32xbf16>
    %cst_9 = arith.constant dense<0.000000e+00> : vector<34x34xf32>
    %26 = tpu.matmul %23, %24, %cst_9 {dimension_numbers = #tpu.dot_dimension_numbers<[1], [1], [0], [0], [0, 0, 1, 0], [], []>} : vector<34x32xbf16>, vector<34x32xbf16>, vector<34x34xf32> -> vector<34x34xf32>
    %cst_10 = arith.constant 0.176776692 : f32
    %27 = vector.broadcast %cst_10 : f32 to vector<34x34xf32>
    %28 = arith.mulf %26, %27 : vector<34x34xf32>
    %cst_11 = arith.constant dense<0xFF800000> : vector<34xf32>
    %29 = vector.multi_reduction <maximumf>, %28, %cst_11 [1] : vector<34x34xf32> to vector<34xf32>
    %30 = vector.shape_cast %29 : vector<34xf32> to vector<34x1xf32>
    %31 = vector.broadcast %30 : vector<34x1xf32> to vector<34x34xf32>
    %32 = arith.subf %28, %31 : vector<34x34xf32>
    %33 = math.exp %32 : vector<34x34xf32>
    %cst_12 = arith.constant dense<0.000000e+00> : vector<34xf32>
    %34 = vector.multi_reduction <add>, %33, %cst_12 [1] : vector<34x34xf32> to vector<34xf32>
    %35 = vector.shape_cast %34 : vector<34xf32> to vector<34x1xf32>
    %36 = tpu.reciprocal %35 {approx = true} : vector<34x1xf32> -> vector<34x1xf32>
    %37 = vector.broadcast %36 : vector<34x1xf32> to vector<34x34xf32>
    %38 = arith.mulf %33, %37 : vector<34x34xf32>
    %39 = arith.truncf %38 : vector<34x34xf32> to vector<34x34xbf16>
    %cst_13 = arith.constant dense<0.000000e+00> : vector<34x32xf32>
    %40 = tpu.matmul %39, %25, %cst_13 {dimension_numbers = #tpu.dot_dimension_numbers<[1], [0], [0], [1], [0, 0, 1, 1], [], []>} : vector<34x34xbf16>, vector<34x32xbf16>, vector<34x32xf32> -> vector<34x32xf32>
    %c0_14 = arith.constant 0 : index
    %c0_15 = arith.constant 0 : index
    %c32 = arith.constant 32 : index
    %41 = vector.load %arg2[%c0_14, %c0_15, %c32] : memref<1x34x128xf32, #tpu.memory_space<vmem>>, vector<1x34x32xf32>
    %42 = vector.shape_cast %41 : vector<1x34x32xf32> to vector<34x32xf32>
    %43 = vector.shape_cast %40 : vector<34x32xf32> to vector<1x34x32xf32>
    tpu.vector_store %arg2[%c0_14, %c0_15, %c32], %43 {strides = array<i32>} : memref<1x34x128xf32, #tpu.memory_space<vmem>>, vector<1x34x32xf32>,
    %44 = vector.extract_strided_slice %1 {offsets = [0, 64], sizes = [34, 32], strides = [1, 1]} : vector<34x384xbf16> to vector<34x32xbf16>
    %45 = vector.extract_strided_slice %1 {offsets = [0, 192], sizes = [34, 32], strides = [1, 1]} : vector<34x384xbf16> to vector<34x32xbf16>
    %46 = vector.extract_strided_slice %1 {offsets = [0, 320], sizes = [34, 32], strides = [1, 1]} : vector<34x384xbf16> to vector<34x32xbf16>
    %cst_16 = arith.constant dense<0.000000e+00> : vector<34x34xf32>
    %47 = tpu.matmul %44, %45, %cst_16 {dimension_numbers = #tpu.dot_dimension_numbers<[1], [1], [0], [0], [0, 0, 1, 0], [], []>} : vector<34x32xbf16>, vector<34x32xbf16>, vector<34x34xf32> -> vector<34x34xf32>
    %cst_17 = arith.constant 0.176776692 : f32
    %48 = vector.broadcast %cst_17 : f32 to vector<34x34xf32>
    %49 = arith.mulf %47, %48 : vector<34x34xf32>
    %cst_18 = arith.constant dense<0xFF800000> : vector<34xf32>
    %50 = vector.multi_reduction <maximumf>, %49, %cst_18 [1] : vector<34x34xf32> to vector<34xf32>
    %51 = vector.shape_cast %50 : vector<34xf32> to vector<34x1xf32>
    %52 = vector.broadcast %51 : vector<34x1xf32> to vector<34x34xf32>
    %53 = arith.subf %49, %52 : vector<34x34xf32>
    %54 = math.exp %53 : vector<34x34xf32>
    %cst_19 = arith.constant dense<0.000000e+00> : vector<34xf32>
    %55 = vector.multi_reduction <add>, %54, %cst_19 [1] : vector<34x34xf32> to vector<34xf32>
    %56 = vector.shape_cast %55 : vector<34xf32> to vector<34x1xf32>
    %57 = tpu.reciprocal %56 {approx = true} : vector<34x1xf32> -> vector<34x1xf32>
    %58 = vector.broadcast %57 : vector<34x1xf32> to vector<34x34xf32>
    %59 = arith.mulf %54, %58 : vector<34x34xf32>
    %60 = arith.truncf %59 : vector<34x34xf32> to vector<34x34xbf16>
    %cst_20 = arith.constant dense<0.000000e+00> : vector<34x32xf32>
    %61 = tpu.matmul %60, %46, %cst_20 {dimension_numbers = #tpu.dot_dimension_numbers<[1], [0], [0], [1], [0, 0, 1, 1], [], []>} : vector<34x34xbf16>, vector<34x32xbf16>, vector<34x32xf32> -> vector<34x32xf32>
    %c0_21 = arith.constant 0 : index
    %c0_22 = arith.constant 0 : index
    %c64 = arith.constant 64 : index
    %62 = vector.load %arg2[%c0_21, %c0_22, %c64] : memref<1x34x128xf32, #tpu.memory_space<vmem>>, vector<1x34x32xf32>
    %63 = vector.shape_cast %62 : vector<1x34x32xf32> to vector<34x32xf32>
    %64 = vector.shape_cast %61 : vector<34x32xf32> to vector<1x34x32xf32>
    tpu.vector_store %arg2[%c0_21, %c0_22, %c64], %64 {strides = array<i32>} : memref<1x34x128xf32, #tpu.memory_space<vmem>>, vector<1x34x32xf32>,
    %65 = vector.extract_strided_slice %1 {offsets = [0, 96], sizes = [34, 32], strides = [1, 1]} : vector<34x384xbf16> to vector<34x32xbf16>
    %66 = vector.extract_strided_slice %1 {offsets = [0, 224], sizes = [34, 32], strides = [1, 1]} : vector<34x384xbf16> to vector<34x32xbf16>
    %67 = vector.extract_strided_slice %1 {offsets = [0, 352], sizes = [34, 32], strides = [1, 1]} : vector<34x384xbf16> to vector<34x32xbf16>
    %cst_23 = arith.constant dense<0.000000e+00> : vector<34x34xf32>
    %68 = tpu.matmul %65, %66, %cst_23 {dimension_numbers = #tpu.dot_dimension_numbers<[1], [1], [0], [0], [0, 0, 1, 0], [], []>} : vector<34x32xbf16>, vector<34x32xbf16>, vector<34x34xf32> -> vector<34x34xf32>
    %cst_24 = arith.constant 0.176776692 : f32
    %69 = vector.broadcast %cst_24 : f32 to vector<34x34xf32>
    %70 = arith.mulf %68, %69 : vector<34x34xf32>
    %cst_25 = arith.constant dense<0xFF800000> : vector<34xf32>
    %71 = vector.multi_reduction <maximumf>, %70, %cst_25 [1] : vector<34x34xf32> to vector<34xf32>
    %72 = vector.shape_cast %71 : vector<34xf32> to vector<34x1xf32>
    %73 = vector.broadcast %72 : vector<34x1xf32> to vector<34x34xf32>
    %74 = arith.subf %70, %73 : vector<34x34xf32>
    %75 = math.exp %74 : vector<34x34xf32>
    %cst_26 = arith.constant dense<0.000000e+00> : vector<34xf32>
    %76 = vector.multi_reduction <add>, %75, %cst_26 [1] : vector<34x34xf32> to vector<34xf32>
    %77 = vector.shape_cast %76 : vector<34xf32> to vector<34x1xf32>
    %78 = tpu.reciprocal %77 {approx = true} : vector<34x1xf32> -> vector<34x1xf32>
    %79 = vector.broadcast %78 : vector<34x1xf32> to vector<34x34xf32>
    %80 = arith.mulf %75, %79 : vector<34x34xf32>
    %81 = arith.truncf %80 : vector<34x34xf32> to vector<34x34xbf16>
    %cst_27 = arith.constant dense<0.000000e+00> : vector<34x32xf32>
    %82 = tpu.matmul %81, %67, %cst_27 {dimension_numbers = #tpu.dot_dimension_numbers<[1], [0], [0], [1], [0, 0, 1, 1], [], []>} : vector<34x34xbf16>, vector<34x32xbf16>, vector<34x32xf32> -> vector<34x32xf32>
    %c0_28 = arith.constant 0 : index
    %c0_29 = arith.constant 0 : index
    %c96 = arith.constant 96 : index
    %83 = vector.load %arg2[%c0_28, %c0_29, %c96] : memref<1x34x128xf32, #tpu.memory_space<vmem>>, vector<1x34x32xf32>
    %84 = vector.shape_cast %83 : vector<1x34x32xf32> to vector<34x32xf32>
    %85 = vector.shape_cast %82 : vector<34x32xf32> to vector<1x34x32xf32>
    tpu.vector_store %arg2[%c0_28, %c0_29, %c96], %85 {strides = array<i32>} : memref<1x34x128xf32, #tpu.memory_space<vmem>>, vector<1x34x32xf32>,
    return
  }
  func.func @transform_0(%arg0: i32) -> (i32, i32, i32) {
    %c0_i32 = arith.constant 0 : i32
    %c0_i32_0 = arith.constant 0 : i32
    %c0_i32_1 = arith.constant 0 : i32
    return %arg0, %c0_i32, %c0_i32_0 : i32, i32, i32
  }
  func.func @transform_1(%arg0: i32) -> (i32, i32, i32) {
    %c0_i32 = arith.constant 0 : i32
    %c0_i32_0 = arith.constant 0 : i32
    %c0_i32_1 = arith.constant 0 : i32
    return %arg0, %c0_i32, %c0_i32_0 : i32, i32, i32
  }
}

module attributes {stable_mosaic.version = 11 : i64} {
  func.func @_mm_kernel(%arg0: i32, %arg1: i32, %arg2: i32, %arg3: memref<72x128xbf16, #tpu.memory_space<vmem>>, %arg4: memref<128x128xbf16, #tpu.memory_space<vmem>>, %arg5: memref<72x128xf32, #tpu.memory_space<vmem>>, %arg6: memref<72x128xf32, #tpu.memory_space<vmem>>) attributes {dimension_semantics = [#tpu.dimension_semantics<parallel>, #tpu.dimension_semantics<parallel>, #tpu.dimension_semantics<arbitrary>], iteration_bounds = array<i64: 1, 1, 1>, scalar_prefetch = 0 : i64, scratch_operands = 1 : i64, tpu.core_type = #tpu.core_type<tc>, window_params = [{transform_indices = @transform_0, window_bounds = array<i64: 72, 128>}, {transform_indices = @transform_1, window_bounds = array<i64: 128, 128>}, {transform_indices = @transform_2, window_bounds = array<i64: 72, 128>}]} {
    %c0_i32 = arith.constant 0 : i32
    %0 = arith.cmpi eq, %arg2, %c0_i32 : i32
    %1 = arith.extui %0 : i1 to i32
    %c0_i32_0 = arith.constant 0 : i32
    %2 = arith.cmpi ne, %1, %c0_i32_0 : i32
    scf.if %2 {
      %cst_10 = arith.constant 0.000000e+00 : f32
      %12 = vector.broadcast %cst_10 : f32 to vector<72x128xf32>
      %c0_11 = arith.constant 0 : index
      %c0_12 = arith.constant 0 : index
      %13 = vector.load %arg6[%c0_11, %c0_12] : memref<72x128xf32, #tpu.memory_space<vmem>>, vector<72x128xf32>
      tpu.vector_store %arg6[%c0_11, %c0_12], %12 {strides = array<i32>} : memref<72x128xf32, #tpu.memory_space<vmem>>, vector<72x128xf32>,
    } else {
    }
    %c0 = arith.constant 0 : index
    %c0_1 = arith.constant 0 : index
    %3 = vector.load %arg6[%c0, %c0_1] : memref<72x128xf32, #tpu.memory_space<vmem>>, vector<72x128xf32>
    %c0_2 = arith.constant 0 : index
    %c0_3 = arith.constant 0 : index
    %4 = vector.load %arg3[%c0_2, %c0_3] : memref<72x128xbf16, #tpu.memory_space<vmem>>, vector<72x128xbf16>
    %c0_4 = arith.constant 0 : index
    %c0_5 = arith.constant 0 : index
    %5 = vector.load %arg4[%c0_4, %c0_5] : memref<128x128xbf16, #tpu.memory_space<vmem>>, vector<128x128xbf16>
    %cst = arith.constant dense<0.000000e+00> : vector<72x128xf32>
    %6 = tpu.matmul %4, %5, %cst {dimension_numbers = #tpu.dot_dimension_numbers<[1], [0], [0], [1], [0, 0, 1, 1], [], []>} : vector<72x128xbf16>, vector<128x128xbf16>, vector<72x128xf32> -> vector<72x128xf32>
    %7 = arith.addf %3, %6 : vector<72x128xf32>
    %c0_6 = arith.constant 0 : index
    %c0_7 = arith.constant 0 : index
    %8 = vector.load %arg6[%c0_6, %c0_7] : memref<72x128xf32, #tpu.memory_space<vmem>>, vector<72x128xf32>
    tpu.vector_store %arg6[%c0_6, %c0_7], %7 {strides = array<i32>} : memref<72x128xf32, #tpu.memory_space<vmem>>, vector<72x128xf32>,
    %c0_i32_8 = arith.constant 0 : i32
    %9 = arith.cmpi eq, %arg2, %c0_i32_8 : i32
    %10 = arith.extui %9 : i1 to i32
    %c0_i32_9 = arith.constant 0 : i32
    %11 = arith.cmpi ne, %10, %c0_i32_9 : i32
    scf.if %11 {
      %c0_10 = arith.constant 0 : index
      %c0_11 = arith.constant 0 : index
      %12 = vector.load %arg6[%c0_10, %c0_11] : memref<72x128xf32, #tpu.memory_space<vmem>>, vector<72x128xf32>
      %c0_12 = arith.constant 0 : index
      %c0_13 = arith.constant 0 : index
      %13 = vector.load %arg5[%c0_12, %c0_13] : memref<72x128xf32, #tpu.memory_space<vmem>>, vector<72x128xf32>
      tpu.vector_store %arg5[%c0_12, %c0_13], %12 {strides = array<i32>} : memref<72x128xf32, #tpu.memory_space<vmem>>, vector<72x128xf32>,
    } else {
    }
    return
  }
  func.func @transform_0(%arg0: i32, %arg1: i32, %arg2: i32) -> (i32, i32) {
    %c0_i32 = arith.constant 0 : i32
    return %arg0, %arg2 : i32, i32
  }
  func.func @transform_1(%arg0: i32, %arg1: i32, %arg2: i32) -> (i32, i32) {
    %c0_i32 = arith.constant 0 : i32
    return %arg2, %arg1 : i32, i32
  }
  func.func @transform_2(%arg0: i32, %arg1: i32, %arg2: i32) -> (i32, i32) {
    %c0_i32 = arith.constant 0 : i32
    return %arg0, %arg1 : i32, i32
  }
}

module attributes {stable_mosaic.version = 11 : i64} {
  func.func @_mm_kernel(%arg0: i32, %arg1: i32, %arg2: i32, %arg3: memref<72x128xbf16, #tpu.memory_space<vmem>>, %arg4: memref<128x512xbf16, #tpu.memory_space<vmem>>, %arg5: memref<72x512xf32, #tpu.memory_space<vmem>>, %arg6: memref<72x512xf32, #tpu.memory_space<vmem>>) attributes {dimension_semantics = [#tpu.dimension_semantics<parallel>, #tpu.dimension_semantics<parallel>, #tpu.dimension_semantics<arbitrary>], iteration_bounds = array<i64: 1, 2, 1>, scalar_prefetch = 0 : i64, scratch_operands = 1 : i64, tpu.core_type = #tpu.core_type<tc>, window_params = [{transform_indices = @transform_0, window_bounds = array<i64: 72, 128>}, {transform_indices = @transform_1, window_bounds = array<i64: 128, 512>}, {transform_indices = @transform_2, window_bounds = array<i64: 72, 512>}]} {
    %c0_i32 = arith.constant 0 : i32
    %0 = arith.cmpi eq, %arg2, %c0_i32 : i32
    %1 = arith.extui %0 : i1 to i32
    %c0_i32_0 = arith.constant 0 : i32
    %2 = arith.cmpi ne, %1, %c0_i32_0 : i32
    scf.if %2 {
      %cst_10 = arith.constant 0.000000e+00 : f32
      %12 = vector.broadcast %cst_10 : f32 to vector<72x512xf32>
      %c0_11 = arith.constant 0 : index
      %c0_12 = arith.constant 0 : index
      %13 = vector.load %arg6[%c0_11, %c0_12] : memref<72x512xf32, #tpu.memory_space<vmem>>, vector<72x512xf32>
      tpu.vector_store %arg6[%c0_11, %c0_12], %12 {strides = array<i32>} : memref<72x512xf32, #tpu.memory_space<vmem>>, vector<72x512xf32>,
    } else {
    }
    %c0 = arith.constant 0 : index
    %c0_1 = arith.constant 0 : index
    %3 = vector.load %arg6[%c0, %c0_1] : memref<72x512xf32, #tpu.memory_space<vmem>>, vector<72x512xf32>
    %c0_2 = arith.constant 0 : index
    %c0_3 = arith.constant 0 : index
    %4 = vector.load %arg3[%c0_2, %c0_3] : memref<72x128xbf16, #tpu.memory_space<vmem>>, vector<72x128xbf16>
    %c0_4 = arith.constant 0 : index
    %c0_5 = arith.constant 0 : index
    %5 = vector.load %arg4[%c0_4, %c0_5] : memref<128x512xbf16, #tpu.memory_space<vmem>>, vector<128x512xbf16>
    %cst = arith.constant dense<0.000000e+00> : vector<72x512xf32>
    %6 = tpu.matmul %4, %5, %cst {dimension_numbers = #tpu.dot_dimension_numbers<[1], [0], [0], [1], [0, 0, 1, 1], [], []>} : vector<72x128xbf16>, vector<128x512xbf16>, vector<72x512xf32> -> vector<72x512xf32>
    %7 = arith.addf %3, %6 : vector<72x512xf32>
    %c0_6 = arith.constant 0 : index
    %c0_7 = arith.constant 0 : index
    %8 = vector.load %arg6[%c0_6, %c0_7] : memref<72x512xf32, #tpu.memory_space<vmem>>, vector<72x512xf32>
    tpu.vector_store %arg6[%c0_6, %c0_7], %7 {strides = array<i32>} : memref<72x512xf32, #tpu.memory_space<vmem>>, vector<72x512xf32>,
    %c0_i32_8 = arith.constant 0 : i32
    %9 = arith.cmpi eq, %arg2, %c0_i32_8 : i32
    %10 = arith.extui %9 : i1 to i32
    %c0_i32_9 = arith.constant 0 : i32
    %11 = arith.cmpi ne, %10, %c0_i32_9 : i32
    scf.if %11 {
      %c0_10 = arith.constant 0 : index
      %c0_11 = arith.constant 0 : index
      %12 = vector.load %arg6[%c0_10, %c0_11] : memref<72x512xf32, #tpu.memory_space<vmem>>, vector<72x512xf32>
      %c0_12 = arith.constant 0 : index
      %c0_13 = arith.constant 0 : index
      %13 = vector.load %arg5[%c0_12, %c0_13] : memref<72x512xf32, #tpu.memory_space<vmem>>, vector<72x512xf32>
      tpu.vector_store %arg5[%c0_12, %c0_13], %12 {strides = array<i32>} : memref<72x512xf32, #tpu.memory_space<vmem>>, vector<72x512xf32>,
    } else {
    }
    return
  }
  func.func @transform_0(%arg0: i32, %arg1: i32, %arg2: i32) -> (i32, i32) {
    %c0_i32 = arith.constant 0 : i32
    return %arg0, %arg2 : i32, i32
  }
  func.func @transform_1(%arg0: i32, %arg1: i32, %arg2: i32) -> (i32, i32) {
    %c0_i32 = arith.constant 0 : i32
    return %arg2, %arg1 : i32, i32
  }
  func.func @transform_2(%arg0: i32, %arg1: i32, %arg2: i32) -> (i32, i32) {
    %c0_i32 = arith.constant 0 : i32
    return %arg0, %arg1 : i32, i32
  }
}

module attributes {stable_mosaic.version = 11 : i64} {
  func.func @_mm_kernel(%arg0: i32, %arg1: i32, %arg2: i32, %arg3: memref<72x512xbf16, #tpu.memory_space<vmem>>, %arg4: memref<512x128xbf16, #tpu.memory_space<vmem>>, %arg5: memref<72x128xf32, #tpu.memory_space<vmem>>, %arg6: memref<72x128xf32, #tpu.memory_space<vmem>>) attributes {dimension_semantics = [#tpu.dimension_semantics<parallel>, #tpu.dimension_semantics<parallel>, #tpu.dimension_semantics<arbitrary>], iteration_bounds = array<i64: 1, 1, 1>, scalar_prefetch = 0 : i64, scratch_operands = 1 : i64, tpu.core_type = #tpu.core_type<tc>, window_params = [{transform_indices = @transform_0, window_bounds = array<i64: 72, 512>}, {transform_indices = @transform_1, window_bounds = array<i64: 512, 128>}, {transform_indices = @transform_2, window_bounds = array<i64: 72, 128>}]} {
    %c0_i32 = arith.constant 0 : i32
    %0 = arith.cmpi eq, %arg2, %c0_i32 : i32
    %1 = arith.extui %0 : i1 to i32
    %c0_i32_0 = arith.constant 0 : i32
    %2 = arith.cmpi ne, %1, %c0_i32_0 : i32
    scf.if %2 {
      %cst_10 = arith.constant 0.000000e+00 : f32
      %12 = vector.broadcast %cst_10 : f32 to vector<72x128xf32>
      %c0_11 = arith.constant 0 : index
      %c0_12 = arith.constant 0 : index
      %13 = vector.load %arg6[%c0_11, %c0_12] : memref<72x128xf32, #tpu.memory_space<vmem>>, vector<72x128xf32>
      tpu.vector_store %arg6[%c0_11, %c0_12], %12 {strides = array<i32>} : memref<72x128xf32, #tpu.memory_space<vmem>>, vector<72x128xf32>,
    } else {
    }
    %c0 = arith.constant 0 : index
    %c0_1 = arith.constant 0 : index
    %3 = vector.load %arg6[%c0, %c0_1] : memref<72x128xf32, #tpu.memory_space<vmem>>, vector<72x128xf32>
    %c0_2 = arith.constant 0 : index
    %c0_3 = arith.constant 0 : index
    %4 = vector.load %arg3[%c0_2, %c0_3] : memref<72x512xbf16, #tpu.memory_space<vmem>>, vector<72x512xbf16>
    %c0_4 = arith.constant 0 : index
    %c0_5 = arith.constant 0 : index
    %5 = vector.load %arg4[%c0_4, %c0_5] : memref<512x128xbf16, #tpu.memory_space<vmem>>, vector<512x128xbf16>
    %cst = arith.constant dense<0.000000e+00> : vector<72x128xf32>
    %6 = tpu.matmul %4, %5, %cst {dimension_numbers = #tpu.dot_dimension_numbers<[1], [0], [0], [1], [0, 0, 1, 1], [], []>} : vector<72x512xbf16>, vector<512x128xbf16>, vector<72x128xf32> -> vector<72x128xf32>
    %7 = arith.addf %3, %6 : vector<72x128xf32>
    %c0_6 = arith.constant 0 : index
    %c0_7 = arith.constant 0 : index
    %8 = vector.load %arg6[%c0_6, %c0_7] : memref<72x128xf32, #tpu.memory_space<vmem>>, vector<72x128xf32>
    tpu.vector_store %arg6[%c0_6, %c0_7], %7 {strides = array<i32>} : memref<72x128xf32, #tpu.memory_space<vmem>>, vector<72x128xf32>,
    %c0_i32_8 = arith.constant 0 : i32
    %9 = arith.cmpi eq, %arg2, %c0_i32_8 : i32
    %10 = arith.extui %9 : i1 to i32
    %c0_i32_9 = arith.constant 0 : i32
    %11 = arith.cmpi ne, %10, %c0_i32_9 : i32
    scf.if %11 {
      %c0_10 = arith.constant 0 : index
      %c0_11 = arith.constant 0 : index
      %12 = vector.load %arg6[%c0_10, %c0_11] : memref<72x128xf32, #tpu.memory_space<vmem>>, vector<72x128xf32>
      %c0_12 = arith.constant 0 : index
      %c0_13 = arith.constant 0 : index
      %13 = vector.load %arg5[%c0_12, %c0_13] : memref<72x128xf32, #tpu.memory_space<vmem>>, vector<72x128xf32>
      tpu.vector_store %arg5[%c0_12, %c0_13], %12 {strides = array<i32>} : memref<72x128xf32, #tpu.memory_space<vmem>>, vector<72x128xf32>,
    } else {
    }
    return
  }
  func.func @transform_0(%arg0: i32, %arg1: i32, %arg2: i32) -> (i32, i32) {
    %c0_i32 = arith.constant 0 : i32
    return %arg0, %arg2 : i32, i32
  }
  func.func @transform_1(%arg0: i32, %arg1: i32, %arg2: i32) -> (i32, i32) {
    %c0_i32 = arith.constant 0 : i32
    return %arg2, %arg1 : i32, i32
  }
  func.func @transform_2(%arg0: i32, %arg1: i32, %arg2: i32) -> (i32, i32) {
    %c0_i32 = arith.constant 0 : i32
    return %arg0, %arg1 : i32, i32
  }
}

module attributes {stable_mosaic.version = 11 : i64} {
  func.func @_mm_kernel(%arg0: i32, %arg1: i32, %arg2: i32, %arg3: memref<72x128xbf16, #tpu.memory_space<vmem>>, %arg4: memref<512x128xbf16, #tpu.memory_space<vmem>>, %arg5: memref<72x512xf32, #tpu.memory_space<vmem>>, %arg6: memref<72x512xf32, #tpu.memory_space<vmem>>) attributes {dimension_semantics = [#tpu.dimension_semantics<parallel>, #tpu.dimension_semantics<parallel>, #tpu.dimension_semantics<arbitrary>], iteration_bounds = array<i64: 1, 1, 1>, scalar_prefetch = 0 : i64, scratch_operands = 1 : i64, tpu.core_type = #tpu.core_type<tc>, window_params = [{transform_indices = @transform_0, window_bounds = array<i64: 72, 128>}, {transform_indices = @transform_1, window_bounds = array<i64: 512, 128>}, {transform_indices = @transform_2, window_bounds = array<i64: 72, 512>}]} {
    %c0_i32 = arith.constant 0 : i32
    %0 = arith.cmpi eq, %arg2, %c0_i32 : i32
    %1 = arith.extui %0 : i1 to i32
    %c0_i32_0 = arith.constant 0 : i32
    %2 = arith.cmpi ne, %1, %c0_i32_0 : i32
    scf.if %2 {
      %cst_10 = arith.constant 0.000000e+00 : f32
      %12 = vector.broadcast %cst_10 : f32 to vector<72x512xf32>
      %c0_11 = arith.constant 0 : index
      %c0_12 = arith.constant 0 : index
      %13 = vector.load %arg6[%c0_11, %c0_12] : memref<72x512xf32, #tpu.memory_space<vmem>>, vector<72x512xf32>
      tpu.vector_store %arg6[%c0_11, %c0_12], %12 {strides = array<i32>} : memref<72x512xf32, #tpu.memory_space<vmem>>, vector<72x512xf32>,
    } else {
    }
    %c0 = arith.constant 0 : index
    %c0_1 = arith.constant 0 : index
    %3 = vector.load %arg6[%c0, %c0_1] : memref<72x512xf32, #tpu.memory_space<vmem>>, vector<72x512xf32>
    %c0_2 = arith.constant 0 : index
    %c0_3 = arith.constant 0 : index
    %4 = vector.load %arg3[%c0_2, %c0_3] : memref<72x128xbf16, #tpu.memory_space<vmem>>, vector<72x128xbf16>
    %c0_4 = arith.constant 0 : index
    %c0_5 = arith.constant 0 : index
    %5 = vector.load %arg4[%c0_4, %c0_5] : memref<512x128xbf16, #tpu.memory_space<vmem>>, vector<512x128xbf16>
    %cst = arith.constant dense<0.000000e+00> : vector<72x512xf32>
    %6 = tpu.matmul %4, %5, %cst {dimension_numbers = #tpu.dot_dimension_numbers<[1], [1], [0], [0], [0, 0, 1, 0], [], []>} : vector<72x128xbf16>, vector<512x128xbf16>, vector<72x512xf32> -> vector<72x512xf32>
    %7 = arith.addf %3, %6 : vector<72x512xf32>
    %c0_6 = arith.constant 0 : index
    %c0_7 = arith.constant 0 : index
    %8 = vector.load %arg6[%c0_6, %c0_7] : memref<72x512xf32, #tpu.memory_space<vmem>>, vector<72x512xf32>
    tpu.vector_store %arg6[%c0_6, %c0_7], %7 {strides = array<i32>} : memref<72x512xf32, #tpu.memory_space<vmem>>, vector<72x512xf32>,
    %c0_i32_8 = arith.constant 0 : i32
    %9 = arith.cmpi eq, %arg2, %c0_i32_8 : i32
    %10 = arith.extui %9 : i1 to i32
    %c0_i32_9 = arith.constant 0 : i32
    %11 = arith.cmpi ne, %10, %c0_i32_9 : i32
    scf.if %11 {
      %c0_10 = arith.constant 0 : index
      %c0_11 = arith.constant 0 : index
      %12 = vector.load %arg6[%c0_10, %c0_11] : memref<72x512xf32, #tpu.memory_space<vmem>>, vector<72x512xf32>
      %c0_12 = arith.constant 0 : index
      %c0_13 = arith.constant 0 : index
      %13 = vector.load %arg5[%c0_12, %c0_13] : memref<72x512xf32, #tpu.memory_space<vmem>>, vector<72x512xf32>
      tpu.vector_store %arg5[%c0_12, %c0_13], %12 {strides = array<i32>} : memref<72x512xf32, #tpu.memory_space<vmem>>, vector<72x512xf32>,
    } else {
    }
    return
  }
  func.func @transform_0(%arg0: i32, %arg1: i32, %arg2: i32) -> (i32, i32) {
    %c0_i32 = arith.constant 0 : i32
    return %arg0, %arg2 : i32, i32
  }
  func.func @transform_1(%arg0: i32, %arg1: i32, %arg2: i32) -> (i32, i32) {
    %c0_i32 = arith.constant 0 : i32
    return %arg1, %arg2 : i32, i32
  }
  func.func @transform_2(%arg0: i32, %arg1: i32, %arg2: i32) -> (i32, i32) {
    %c0_i32 = arith.constant 0 : i32
    return %arg0, %arg1 : i32, i32
  }
}

module attributes {stable_mosaic.version = 11 : i64} {
  func.func @_mm_kernel(%arg0: i32, %arg1: i32, %arg2: i32, %arg3: memref<72x512xbf16, #tpu.memory_space<vmem>>, %arg4: memref<128x512xbf16, #tpu.memory_space<vmem>>, %arg5: memref<72x128xf32, #tpu.memory_space<vmem>>, %arg6: memref<72x128xf32, #tpu.memory_space<vmem>>) attributes {dimension_semantics = [#tpu.dimension_semantics<parallel>, #tpu.dimension_semantics<parallel>, #tpu.dimension_semantics<arbitrary>], iteration_bounds = array<i64: 1, 1, 2>, scalar_prefetch = 0 : i64, scratch_operands = 1 : i64, tpu.core_type = #tpu.core_type<tc>, window_params = [{transform_indices = @transform_0, window_bounds = array<i64: 72, 512>}, {transform_indices = @transform_1, window_bounds = array<i64: 128, 512>}, {transform_indices = @transform_2, window_bounds = array<i64: 72, 128>}]} {
    %c0_i32 = arith.constant 0 : i32
    %0 = arith.cmpi eq, %arg2, %c0_i32 : i32
    %1 = arith.extui %0 : i1 to i32
    %c0_i32_0 = arith.constant 0 : i32
    %2 = arith.cmpi ne, %1, %c0_i32_0 : i32
    scf.if %2 {
      %cst_9 = arith.constant 0.000000e+00 : f32
      %12 = vector.broadcast %cst_9 : f32 to vector<72x128xf32>
      %c0_10 = arith.constant 0 : index
      %c0_11 = arith.constant 0 : index
      %13 = vector.load %arg6[%c0_10, %c0_11] : memref<72x128xf32, #tpu.memory_space<vmem>>, vector<72x128xf32>
      tpu.vector_store %arg6[%c0_10, %c0_11], %12 {strides = array<i32>} : memref<72x128xf32, #tpu.memory_space<vmem>>, vector<72x128xf32>,
    } else {
    }
    %c0 = arith.constant 0 : index
    %c0_1 = arith.constant 0 : index
    %3 = vector.load %arg6[%c0, %c0_1] : memref<72x128xf32, #tpu.memory_space<vmem>>, vector<72x128xf32>
    %c0_2 = arith.constant 0 : index
    %c0_3 = arith.constant 0 : index
    %4 = vector.load %arg3[%c0_2, %c0_3] : memref<72x512xbf16, #tpu.memory_space<vmem>>, vector<72x512xbf16>
    %c0_4 = arith.constant 0 : index
    %c0_5 = arith.constant 0 : index
    %5 = vector.load %arg4[%c0_4, %c0_5] : memref<128x512xbf16, #tpu.memory_space<vmem>>, vector<128x512xbf16>
    %cst = arith.constant dense<0.000000e+00> : vector<72x128xf32>
    %6 = tpu.matmul %4, %5, %cst {dimension_numbers = #tpu.dot_dimension_numbers<[1], [1], [0], [0], [0, 0, 1, 0], [], []>} : vector<72x512xbf16>, vector<128x512xbf16>, vector<72x128xf32> -> vector<72x128xf32>
    %7 = arith.addf %3, %6 : vector<72x128xf32>
    %c0_6 = arith.constant 0 : index
    %c0_7 = arith.constant 0 : index
    %8 = vector.load %arg6[%c0_6, %c0_7] : memref<72x128xf32, #tpu.memory_space<vmem>>, vector<72x128xf32>
    tpu.vector_store %arg6[%c0_6, %c0_7], %7 {strides = array<i32>} : memref<72x128xf32, #tpu.memory_space<vmem>>, vector<72x128xf32>,
    %c1_i32 = arith.constant 1 : i32
    %9 = arith.cmpi eq, %arg2, %c1_i32 : i32
    %10 = arith.extui %9 : i1 to i32
    %c0_i32_8 = arith.constant 0 : i32
    %11 = arith.cmpi ne, %10, %c0_i32_8 : i32
    scf.if %11 {
      %c0_9 = arith.constant 0 : index
      %c0_10 = arith.constant 0 : index
      %12 = vector.load %arg6[%c0_9, %c0_10] : memref<72x128xf32, #tpu.memory_space<vmem>>, vector<72x128xf32>
      %c0_11 = arith.constant 0 : index
      %c0_12 = arith.constant 0 : index
      %13 = vector.load %arg5[%c0_11, %c0_12] : memref<72x128xf32, #tpu.memory_space<vmem>>, vector<72x128xf32>
      tpu.vector_store %arg5[%c0_11, %c0_12], %12 {strides = array<i32>} : memref<72x128xf32, #tpu.memory_space<vmem>>, vector<72x128xf32>,
    } else {
    }
    return
  }
  func.func @transform_0(%arg0: i32, %arg1: i32, %arg2: i32) -> (i32, i32) {
    %c0_i32 = arith.constant 0 : i32
    return %arg0, %arg2 : i32, i32
  }
  func.func @transform_1(%arg0: i32, %arg1: i32, %arg2: i32) -> (i32, i32) {
    %c0_i32 = arith.constant 0 : i32
    return %arg1, %arg2 : i32, i32
  }
  func.func @transform_2(%arg0: i32, %arg1: i32, %arg2: i32) -> (i32, i32) {
    %c0_i32 = arith.constant 0 : i32
    return %arg0, %arg1 : i32, i32
  }
}

module attributes {stable_mosaic.version = 11 : i64} {
  func.func @_mm_kernel(%arg0: i32, %arg1: i32, %arg2: i32, %arg3: memref<72x128xbf16, #tpu.memory_space<vmem>>, %arg4: memref<128x128xbf16, #tpu.memory_space<vmem>>, %arg5: memref<72x128xf32, #tpu.memory_space<vmem>>, %arg6: memref<72x128xf32, #tpu.memory_space<vmem>>) attributes {dimension_semantics = [#tpu.dimension_semantics<parallel>, #tpu.dimension_semantics<parallel>, #tpu.dimension_semantics<arbitrary>], iteration_bounds = array<i64: 1, 1, 1>, scalar_prefetch = 0 : i64, scratch_operands = 1 : i64, tpu.core_type = #tpu.core_type<tc>, window_params = [{transform_indices = @transform_0, window_bounds = array<i64: 72, 128>}, {transform_indices = @transform_1, window_bounds = array<i64: 128, 128>}, {transform_indices = @transform_2, window_bounds = array<i64: 72, 128>}]} {
    %c0_i32 = arith.constant 0 : i32
    %0 = arith.cmpi eq, %arg2, %c0_i32 : i32
    %1 = arith.extui %0 : i1 to i32
    %c0_i32_0 = arith.constant 0 : i32
    %2 = arith.cmpi ne, %1, %c0_i32_0 : i32
    scf.if %2 {
      %cst_10 = arith.constant 0.000000e+00 : f32
      %12 = vector.broadcast %cst_10 : f32 to vector<72x128xf32>
      %c0_11 = arith.constant 0 : index
      %c0_12 = arith.constant 0 : index
      %13 = vector.load %arg6[%c0_11, %c0_12] : memref<72x128xf32, #tpu.memory_space<vmem>>, vector<72x128xf32>
      tpu.vector_store %arg6[%c0_11, %c0_12], %12 {strides = array<i32>} : memref<72x128xf32, #tpu.memory_space<vmem>>, vector<72x128xf32>,
    } else {
    }
    %c0 = arith.constant 0 : index
    %c0_1 = arith.constant 0 : index
    %3 = vector.load %arg6[%c0, %c0_1] : memref<72x128xf32, #tpu.memory_space<vmem>>, vector<72x128xf32>
    %c0_2 = arith.constant 0 : index
    %c0_3 = arith.constant 0 : index
    %4 = vector.load %arg3[%c0_2, %c0_3] : memref<72x128xbf16, #tpu.memory_space<vmem>>, vector<72x128xbf16>
    %c0_4 = arith.constant 0 : index
    %c0_5 = arith.constant 0 : index
    %5 = vector.load %arg4[%c0_4, %c0_5] : memref<128x128xbf16, #tpu.memory_space<vmem>>, vector<128x128xbf16>
    %cst = arith.constant dense<0.000000e+00> : vector<72x128xf32>
    %6 = tpu.matmul %4, %5, %cst {dimension_numbers = #tpu.dot_dimension_numbers<[1], [1], [0], [0], [0, 0, 1, 0], [], []>} : vector<72x128xbf16>, vector<128x128xbf16>, vector<72x128xf32> -> vector<72x128xf32>
    %7 = arith.addf %3, %6 : vector<72x128xf32>
    %c0_6 = arith.constant 0 : index
    %c0_7 = arith.constant 0 : index
    %8 = vector.load %arg6[%c0_6, %c0_7] : memref<72x128xf32, #tpu.memory_space<vmem>>, vector<72x128xf32>
    tpu.vector_store %arg6[%c0_6, %c0_7], %7 {strides = array<i32>} : memref<72x128xf32, #tpu.memory_space<vmem>>, vector<72x128xf32>,
    %c0_i32_8 = arith.constant 0 : i32
    %9 = arith.cmpi eq, %arg2, %c0_i32_8 : i32
    %10 = arith.extui %9 : i1 to i32
    %c0_i32_9 = arith.constant 0 : i32
    %11 = arith.cmpi ne, %10, %c0_i32_9 : i32
    scf.if %11 {
      %c0_10 = arith.constant 0 : index
      %c0_11 = arith.constant 0 : index
      %12 = vector.load %arg6[%c0_10, %c0_11] : memref<72x128xf32, #tpu.memory_space<vmem>>, vector<72x128xf32>
      %c0_12 = arith.constant 0 : index
      %c0_13 = arith.constant 0 : index
      %13 = vector.load %arg5[%c0_12, %c0_13] : memref<72x128xf32, #tpu.memory_space<vmem>>, vector<72x128xf32>
      tpu.vector_store %arg5[%c0_12, %c0_13], %12 {strides = array<i32>} : memref<72x128xf32, #tpu.memory_space<vmem>>, vector<72x128xf32>,
    } else {
    }
    return
  }
  func.func @transform_0(%arg0: i32, %arg1: i32, %arg2: i32) -> (i32, i32) {
    %c0_i32 = arith.constant 0 : i32
    return %arg0, %arg2 : i32, i32
  }
  func.func @transform_1(%arg0: i32, %arg1: i32, %arg2: i32) -> (i32, i32) {
    %c0_i32 = arith.constant 0 : i32
    return %arg1, %arg2 : i32, i32
  }
  func.func @transform_2(%arg0: i32, %arg1: i32, %arg2: i32) -> (i32, i32) {
    %c0_i32 = arith.constant 0 : i32
    return %arg0, %arg1 : i32, i32
  }
}

module attributes {stable_mosaic.version = 11 : i64} {
  func.func @_mm_kernel(%arg0: i32, %arg1: i32, %arg2: i32, %arg3: memref<72x384xbf16, #tpu.memory_space<vmem>>, %arg4: memref<128x384xbf16, #tpu.memory_space<vmem>>, %arg5: memref<72x128xf32, #tpu.memory_space<vmem>>, %arg6: memref<72x128xf32, #tpu.memory_space<vmem>>) attributes {dimension_semantics = [#tpu.dimension_semantics<parallel>, #tpu.dimension_semantics<parallel>, #tpu.dimension_semantics<arbitrary>], iteration_bounds = array<i64: 1, 1, 1>, scalar_prefetch = 0 : i64, scratch_operands = 1 : i64, tpu.core_type = #tpu.core_type<tc>, window_params = [{transform_indices = @transform_0, window_bounds = array<i64: 72, 384>}, {transform_indices = @transform_1, window_bounds = array<i64: 128, 384>}, {transform_indices = @transform_2, window_bounds = array<i64: 72, 128>}]} {
    %c0_i32 = arith.constant 0 : i32
    %0 = arith.cmpi eq, %arg2, %c0_i32 : i32
    %1 = arith.extui %0 : i1 to i32
    %c0_i32_0 = arith.constant 0 : i32
    %2 = arith.cmpi ne, %1, %c0_i32_0 : i32
    scf.if %2 {
      %cst_10 = arith.constant 0.000000e+00 : f32
      %12 = vector.broadcast %cst_10 : f32 to vector<72x128xf32>
      %c0_11 = arith.constant 0 : index
      %c0_12 = arith.constant 0 : index
      %13 = vector.load %arg6[%c0_11, %c0_12] : memref<72x128xf32, #tpu.memory_space<vmem>>, vector<72x128xf32>
      tpu.vector_store %arg6[%c0_11, %c0_12], %12 {strides = array<i32>} : memref<72x128xf32, #tpu.memory_space<vmem>>, vector<72x128xf32>,
    } else {
    }
    %c0 = arith.constant 0 : index
    %c0_1 = arith.constant 0 : index
    %3 = vector.load %arg6[%c0, %c0_1] : memref<72x128xf32, #tpu.memory_space<vmem>>, vector<72x128xf32>
    %c0_2 = arith.constant 0 : index
    %c0_3 = arith.constant 0 : index
    %4 = vector.load %arg3[%c0_2, %c0_3] : memref<72x384xbf16, #tpu.memory_space<vmem>>, vector<72x384xbf16>
    %c0_4 = arith.constant 0 : index
    %c0_5 = arith.constant 0 : index
    %5 = vector.load %arg4[%c0_4, %c0_5] : memref<128x384xbf16, #tpu.memory_space<vmem>>, vector<128x384xbf16>
    %cst = arith.constant dense<0.000000e+00> : vector<72x128xf32>
    %6 = tpu.matmul %4, %5, %cst {dimension_numbers = #tpu.dot_dimension_numbers<[1], [1], [0], [0], [0, 0, 1, 0], [], []>} : vector<72x384xbf16>, vector<128x384xbf16>, vector<72x128xf32> -> vector<72x128xf32>
    %7 = arith.addf %3, %6 : vector<72x128xf32>
    %c0_6 = arith.constant 0 : index
    %c0_7 = arith.constant 0 : index
    %8 = vector.load %arg6[%c0_6, %c0_7] : memref<72x128xf32, #tpu.memory_space<vmem>>, vector<72x128xf32>
    tpu.vector_store %arg6[%c0_6, %c0_7], %7 {strides = array<i32>} : memref<72x128xf32, #tpu.memory_space<vmem>>, vector<72x128xf32>,
    %c0_i32_8 = arith.constant 0 : i32
    %9 = arith.cmpi eq, %arg2, %c0_i32_8 : i32
    %10 = arith.extui %9 : i1 to i32
    %c0_i32_9 = arith.constant 0 : i32
    %11 = arith.cmpi ne, %10, %c0_i32_9 : i32
    scf.if %11 {
      %c0_10 = arith.constant 0 : index
      %c0_11 = arith.constant 0 : index
      %12 = vector.load %arg6[%c0_10, %c0_11] : memref<72x128xf32, #tpu.memory_space<vmem>>, vector<72x128xf32>
      %c0_12 = arith.constant 0 : index
      %c0_13 = arith.constant 0 : index
      %13 = vector.load %arg5[%c0_12, %c0_13] : memref<72x128xf32, #tpu.memory_space<vmem>>, vector<72x128xf32>
      tpu.vector_store %arg5[%c0_12, %c0_13], %12 {strides = array<i32>} : memref<72x128xf32, #tpu.memory_space<vmem>>, vector<72x128xf32>,
    } else {
    }
    return
  }
  func.func @transform_0(%arg0: i32, %arg1: i32, %arg2: i32) -> (i32, i32) {
    %c0_i32 = arith.constant 0 : i32
    return %arg0, %arg2 : i32, i32
  }
  func.func @transform_1(%arg0: i32, %arg1: i32, %arg2: i32) -> (i32, i32) {
    %c0_i32 = arith.constant 0 : i32
    return %arg1, %arg2 : i32, i32
  }
  func.func @transform_2(%arg0: i32, %arg1: i32, %arg2: i32) -> (i32, i32) {
    %c0_i32 = arith.constant 0 : i32
    return %arg0, %arg1 : i32, i32
  }
}

module attributes {stable_mosaic.version = 11 : i64} {
  func.func @_mm_kernel(%arg0: i32, %arg1: i32, %arg2: i32, %arg3: memref<32x128xbf16, #tpu.memory_space<vmem>>, %arg4: memref<128x128xbf16, #tpu.memory_space<vmem>>, %arg5: memref<1x128xf32, #tpu.memory_space<vmem>>, %arg6: memref<32x128xf32, #tpu.memory_space<vmem>>, %arg7: memref<32x128xf32, #tpu.memory_space<vmem>>) attributes {dimension_semantics = [#tpu.dimension_semantics<parallel>, #tpu.dimension_semantics<parallel>, #tpu.dimension_semantics<arbitrary>], iteration_bounds = array<i64: 1, 1, 1>, scalar_prefetch = 0 : i64, scratch_operands = 1 : i64, tpu.core_type = #tpu.core_type<tc>, window_params = [{transform_indices = @transform_0, window_bounds = array<i64: 32, 128>}, {transform_indices = @transform_1, window_bounds = array<i64: 128, 128>}, {transform_indices = @transform_2, window_bounds = array<i64: 1, 128>}, {transform_indices = @transform_3, window_bounds = array<i64: 32, 128>}]} {
    %c0_i32 = arith.constant 0 : i32
    %0 = arith.cmpi eq, %arg2, %c0_i32 : i32
    %1 = arith.extui %0 : i1 to i32
    %c0_i32_0 = arith.constant 0 : i32
    %2 = arith.cmpi ne, %1, %c0_i32_0 : i32
    scf.if %2 {
      %cst_10 = arith.constant 0.000000e+00 : f32
      %12 = vector.broadcast %cst_10 : f32 to vector<32x128xf32>
      %c0_11 = arith.constant 0 : index
      %c0_12 = arith.constant 0 : index
      %13 = vector.load %arg7[%c0_11, %c0_12] : memref<32x128xf32, #tpu.memory_space<vmem>>, vector<32x128xf32>
      tpu.vector_store %arg7[%c0_11, %c0_12], %12 {strides = array<i32>} : memref<32x128xf32, #tpu.memory_space<vmem>>, vector<32x128xf32>,
    } else {
    }
    %c0 = arith.constant 0 : index
    %c0_1 = arith.constant 0 : index
    %3 = vector.load %arg7[%c0, %c0_1] : memref<32x128xf32, #tpu.memory_space<vmem>>, vector<32x128xf32>
    %c0_2 = arith.constant 0 : index
    %c0_3 = arith.constant 0 : index
    %4 = vector.load %arg3[%c0_2, %c0_3] : memref<32x128xbf16, #tpu.memory_space<vmem>>, vector<32x128xbf16>
    %c0_4 = arith.constant 0 : index
    %c0_5 = arith.constant 0 : index
    %5 = vector.load %arg4[%c0_4, %c0_5] : memref<128x128xbf16, #tpu.memory_space<vmem>>, vector<128x128xbf16>
    %cst = arith.constant dense<0.000000e+00> : vector<32x128xf32>
    %6 = tpu.matmul %4, %5, %cst {dimension_numbers = #tpu.dot_dimension_numbers<[1], [0], [0], [1], [0, 0, 1, 1], [], []>} : vector<32x128xbf16>, vector<128x128xbf16>, vector<32x128xf32> -> vector<32x128xf32>
    %7 = arith.addf %3, %6 : vector<32x128xf32>
    %c0_6 = arith.constant 0 : index
    %c0_7 = arith.constant 0 : index
    %8 = vector.load %arg7[%c0_6, %c0_7] : memref<32x128xf32, #tpu.memory_space<vmem>>, vector<32x128xf32>
    tpu.vector_store %arg7[%c0_6, %c0_7], %7 {strides = array<i32>} : memref<32x128xf32, #tpu.memory_space<vmem>>, vector<32x128xf32>,
    %c0_i32_8 = arith.constant 0 : i32
    %9 = arith.cmpi eq, %arg2, %c0_i32_8 : i32
    %10 = arith.extui %9 : i1 to i32
    %c0_i32_9 = arith.constant 0 : i32
    %11 = arith.cmpi ne, %10, %c0_i32_9 : i32
    scf.if %11 {
      %c0_10 = arith.constant 0 : index
      %c0_11 = arith.constant 0 : index
      %12 = vector.load %arg7[%c0_10, %c0_11] : memref<32x128xf32, #tpu.memory_space<vmem>>, vector<32x128xf32>
      %c0_12 = arith.constant 0 : index
      %c0_13 = arith.constant 0 : index
      %13 = vector.load %arg5[%c0_12, %c0_13] : memref<1x128xf32, #tpu.memory_space<vmem>>, vector<1x128xf32>
      %14 = vector.broadcast %13 : vector<1x128xf32> to vector<32x128xf32>
      %15 = arith.addf %12, %14 : vector<32x128xf32>
      %c0_14 = arith.constant 0 : index
      %c0_15 = arith.constant 0 : index
      %16 = vector.load %arg6[%c0_14, %c0_15] : memref<32x128xf32, #tpu.memory_space<vmem>>, vector<32x128xf32>
      tpu.vector_store %arg6[%c0_14, %c0_15], %15 {strides = array<i32>} : memref<32x128xf32, #tpu.memory_space<vmem>>, vector<32x128xf32>,
    } else {
    }
    return
  }
  func.func @transform_0(%arg0: i32, %arg1: i32, %arg2: i32) -> (i32, i32) {
    %c0_i32 = arith.constant 0 : i32
    return %arg0, %arg2 : i32, i32
  }
  func.func @transform_1(%arg0: i32, %arg1: i32, %arg2: i32) -> (i32, i32) {
    %c0_i32 = arith.constant 0 : i32
    return %arg2, %arg1 : i32, i32
  }
  func.func @transform_2(%arg0: i32, %arg1: i32, %arg2: i32) -> (i32, i32) {
    %c0_i32 = arith.constant 0 : i32
    %c0_i32_0 = arith.constant 0 : i32
    return %c0_i32, %arg1 : i32, i32
  }
  func.func @transform_3(%arg0: i32, %arg1: i32, %arg2: i32) -> (i32, i32) {
    %c0_i32 = arith.constant 0 : i32
    return %arg0, %arg1 : i32, i32
  }
}

module attributes {stable_mosaic.version = 11 : i64} {
  func.func @_mse_kernel(%arg0: i32, %arg1: memref<8x128xf32, #tpu.memory_space<vmem>>, %arg2: memref<8x128xf32, #tpu.memory_space<vmem>>, %arg3: memref<1x1xf32, #tpu.memory_space<smem>>, %arg4: memref<8x128xf32, #tpu.memory_space<vmem>>) attributes {dimension_semantics = [#tpu.dimension_semantics<arbitrary>], iteration_bounds = array<i64: 1>, scalar_prefetch = 0 : i64, scratch_operands = 1 : i64, tpu.core_type = #tpu.core_type<tc>, window_params = [{transform_indices = @transform_0, window_bounds = array<i64: 8, 128>}, {transform_indices = @transform_1, window_bounds = array<i64: 8, 128>}, {transform_indices = @transform_2, window_bounds = array<i64: 1, 1>}]} {
    %c0_i32 = arith.constant 0 : i32
    %0 = arith.cmpi eq, %arg0, %c0_i32 : i32
    %1 = arith.extui %0 : i1 to i32
    %c0_i32_0 = arith.constant 0 : i32
    %2 = arith.cmpi ne, %1, %c0_i32_0 : i32
    scf.if %2 {
      %cst = arith.constant 0.000000e+00 : f32
      %13 = vector.broadcast %cst : f32 to vector<8x128xf32>
      %c0_10 = arith.constant 0 : index
      %c0_11 = arith.constant 0 : index
      %14 = vector.load %arg4[%c0_10, %c0_11] : memref<8x128xf32, #tpu.memory_space<vmem>>, vector<8x128xf32>
      tpu.vector_store %arg4[%c0_10, %c0_11], %13 {strides = array<i32>} : memref<8x128xf32, #tpu.memory_space<vmem>>, vector<8x128xf32>,
    } else {
    }
    %c0 = arith.constant 0 : index
    %c0_1 = arith.constant 0 : index
    %3 = vector.load %arg1[%c0, %c0_1] : memref<8x128xf32, #tpu.memory_space<vmem>>, vector<8x128xf32>
    %c0_2 = arith.constant 0 : index
    %c0_3 = arith.constant 0 : index
    %4 = vector.load %arg2[%c0_2, %c0_3] : memref<8x128xf32, #tpu.memory_space<vmem>>, vector<8x128xf32>
    %5 = arith.subf %3, %4 : vector<8x128xf32>
    %c0_4 = arith.constant 0 : index
    %c0_5 = arith.constant 0 : index
    %6 = vector.load %arg4[%c0_4, %c0_5] : memref<8x128xf32, #tpu.memory_space<vmem>>, vector<8x128xf32>
    %7 = arith.mulf %5, %5 : vector<8x128xf32>
    %8 = arith.addf %6, %7 : vector<8x128xf32>
    %c0_6 = arith.constant 0 : index
    %c0_7 = arith.constant 0 : index
    %9 = vector.load %arg4[%c0_6, %c0_7] : memref<8x128xf32, #tpu.memory_space<vmem>>, vector<8x128xf32>
    tpu.vector_store %arg4[%c0_6, %c0_7], %8 {strides = array<i32>} : memref<8x128xf32, #tpu.memory_space<vmem>>, vector<8x128xf32>,
    %c0_i32_8 = arith.constant 0 : i32
    %10 = arith.cmpi eq, %arg0, %c0_i32_8 : i32
    %11 = arith.extui %10 : i1 to i32
    %c0_i32_9 = arith.constant 0 : i32
    %12 = arith.cmpi ne, %11, %c0_i32_9 : i32
    scf.if %12 {
      %c0_10 = arith.constant 0 : index
      %c0_11 = arith.constant 0 : index
      %13 = vector.load %arg4[%c0_10, %c0_11] : memref<8x128xf32, #tpu.memory_space<vmem>>, vector<8x128xf32>
      %14 = vector.shape_cast %13 : vector<8x128xf32> to vector<1x8x128xf32>
      %cst = arith.constant dense<0.000000e+00> : vector<1xf32>
      %15 = vector.multi_reduction <add>, %14, %cst [1, 2] : vector<1x8x128xf32> to vector<1xf32>
      %16 = vector.shape_cast %15 : vector<1xf32> to vector<1x1x1xf32>
      %17 = vector.extract %16[0, 0, 0] : f32 from vector<1x1x1xf32>
      %cst_12 = arith.constant 0.001953125 : f32
      %18 = arith.mulf %17, %cst_12 : f32
      %c0_13 = arith.constant 0 : index
      %c0_14 = arith.constant 0 : index
      %19 = memref.load %arg3[%c0_13, %c0_14] : memref<1x1xf32, #tpu.memory_space<smem>>
      memref.store %18, %arg3[%c0_13, %c0_14] : memref<1x1xf32, #tpu.memory_space<smem>>
    } else {
    }
    return
  }
  func.func @transform_0(%arg0: i32) -> (i32, i32) {
    %c0_i32 = arith.constant 0 : i32
    %c0_i32_0 = arith.constant 0 : i32
    return %arg0, %c0_i32 : i32, i32
  }
  func.func @transform_1(%arg0: i32) -> (i32, i32) {
    %c0_i32 = arith.constant 0 : i32
    %c0_i32_0 = arith.constant 0 : i32
    return %arg0, %c0_i32 : i32, i32
  }
  func.func @transform_2(%arg0: i32) -> (i32, i32) {
    %c0_i32 = arith.constant 0 : i32
    %c0_i32_0 = arith.constant 0 : i32
    %c0_i32_1 = arith.constant 0 : i32
    return %c0_i32, %c0_i32_0 : i32, i32
  }
}

</mosaic_0001>

<bundles_post_ra>
// kernel: jvp__.30
= control target key start
LH: loop header
LB: loop body
LE: loop exit
PB: predicated region body
PF: predicated region fallthrough
CT: control target
= control target key end

     0   :  { %s994_s12 = smov 0   ;;  %s996_s13 = smov 0   ;;  %s1159_s0 = inlined_call_operand.vmem [shape: bf16[8,128], index: 0, kind: input, shape index: {}]   ;;  %s1160_s1 = inlined_call_operand.vmem [shape: bf16[128,768], index: 1, kind: input, shape index: {}]   ;;  %s1161_s2 = inlined_call_operand.vmem [shape: f32[1,768], index: 2, kind: input, shape index: {}]   ;;  %s1162_s3 = inlined_call_operand.vmem [shape: f32[8,768], index: 3, kind: output, shape index: {}]  }
   0x1   :  { %s998_s14 = smov 0   ;;  %s1000_s15 = smov 0  }
   0x2   :  { %s1002_s16 = smov 0  }
   0x3 LB: > { %s28_s17 = sadd.s32 1, %s965_s15  ;;  %p76_p1 = scmp.ne.s32.totalorder %s957_s13, %s953_s12  ;;  %s969_s16 = sphi %s1002_s16, %s13_s16   ;;  %s965_s15 = sphi %s1000_s15, %s1166_s15   ;;  %s961_s14 = sphi %s998_s14, %s1165_s14   ;;  %s957_s13 = sphi %s996_s13, %s1164_s13   ;;  %s953_s12 = sphi %s994_s12, %s1163_s12  }
   0x4   : > { %p30_p0 = scmp.ge.s32.totalorder %s28_s17, 2  ;;  %p77_p2 = scmp.eq.s32.totalorder %s969_s16, 0 }
   0x5   : > { %s69_s19 = sadd.s32 1, %s957_s13  ;;  %p762_p5 = scmp.ge.s32.totalorder %s969_s16, 2 }
   0x6   : > { %s1168_s17 = smov (%p30_p0, %s28_s17), 0  ;;  %p78_p3 = por %p77_p2, %p76_p1 }
   0x7   : > { %s65_s18 = ssub.s32 %s965_s15, %s1168_s17  ;;  %166 = sbr.rel (%p762_p5) target bundleno = 37 (0x25), region = 20 }
   0x8   : > { %p67_p4 = scmp.eq.s32.totalorder %s65_s18, 0 }
   0xa   : > { %s1029_s20 = scalar_select %p67_p4, %s957_s13, %s69_s19  }
   0xe   : > { %169 = sbr.rel (!%p78_p3) target bundleno = 37 (0x25), region = 24  ;;  %s171_s21 = sand.u32 (%p78_p3), 1, %s957_s13  }
   0xf   : > { %s824_s22 = smul.u32 (%p78_p3), 12, %s965_s15 }
  0x10   : > { %s854_s23 = smul.u32 (%p78_p3), 192, %s171_s21 }
  0x11   : > { %s1037_s26 = scalar_lea.vmem (%p78_p3), %s1160_s1, %s824_s22 }
  0x12   : > { %v194_v0 = vld [vmem:[%s1037_s26] sm:$0xff] (%p78_p3)  ;;  %v196_v1 = vld [vmem:[%s1037_s26 + $0x18] sm:$0xff] (%p78_p3)  ;;  %v198_v2 = vld [vmem:[%s1037_s26 + $0x30] sm:$0xff] (%p78_p3)  ;;  %s1042_s27 = scalar_lea.vmem (%p78_p3), [#allocation3], %s854_s23 }
  0x13   : > { %195 = vst [vmem:[%s1042_s27] sm:$0xff] (%p78_p3), %v194_v0  ;;  %197 = vst [vmem:[%s1042_s27 + $0xc] sm:$0xff] (%p78_p3), %v196_v1  ;;  %v200_v3 = vld [vmem:[%s1037_s26 + $0x48] sm:$0xff] (%p78_p3)  ;;  %v202_v4 = vld [vmem:[%s1037_s26 + $0x60] sm:$0xff] (%p78_p3) }
  0x14   : > { %199 = vst [vmem:[%s1042_s27 + $0x18] sm:$0xff] (%p78_p3), %v198_v2  ;;  %v204_v5 = vld [vmem:[%s1037_s26 + $0x78] sm:$0xff] (%p78_p3)  ;;  %201 = vst [vmem:[%s1042_s27 + $0x24] sm:$0xff] (%p78_p3), %v200_v3  ;;  %v206_v6 = vld [vmem:[%s1037_s26 + $0x90] sm:$0xff] (%p78_p3) }
  0x15   : > { %203 = vst [vmem:[%s1042_s27 + $0x30] sm:$0xff] %v202_v4  ;;  %205 = vst [vmem:[%s1042_s27 + $0x3c] sm:$0xff] %v204_v5  ;;  %v208_v7 = vld [vmem:[%s1037_s26 + $0xa8] sm:$0xff]  ;;  %v210_v8 = vld [vmem:[%s1037_s26 + $0xc0] sm:$0xff] }
  0x16   : > { %207 = vst [vmem:[%s1042_s27 + $0x48] sm:$0xff] %v206_v6  ;;  %209 = vst [vmem:[%s1042_s27 + $0x54] sm:$0xff] %v208_v7  ;;  %v212_v9 = vld [vmem:[%s1037_s26 + $0xd8] sm:$0xff]  ;;  %v214_v10 = vld [vmem:[%s1037_s26 + $0xf0] sm:$0xff] }
  0x17   : > { %211 = vst [vmem:[%s1042_s27 + $0x60] sm:$0xff] %v210_v8  ;;  %v216_v11 = vld [vmem:[%s1037_s26 + $0x108] sm:$0xff]  ;;  %213 = vst [vmem:[%s1042_s27 + $0x6c] sm:$0xff] %v212_v9  ;;  %v218_v12 = vld [vmem:[%s1037_s26 + $0x120] sm:$0xff] }
  0x18   : > { %215 = vst [vmem:[%s1042_s27 + $0x78] sm:$0xff] %v214_v10  ;;  %217 = vst [vmem:[%s1042_s27 + $0x84] sm:$0xff] %v216_v11  ;;  %v220_v13 = vld [vmem:[%s1037_s26 + $0x138] sm:$0xff]  ;;  %v222_v14 = vld [vmem:[%s1037_s26 + $0x150] sm:$0xff] }
  0x19   : > { %219 = vst [vmem:[%s1042_s27 + $0x90] sm:$0xff] %v218_v12  ;;  %221 = vst [vmem:[%s1042_s27 + $0x9c] sm:$0xff] %v220_v13  ;;  %v224_v15 = vld [vmem:[%s1037_s26 + $0x168] sm:$0xff]  ;;  %v766_v17 = vld [vmem:[%s1037_s26 + $0x20] sm:$0xf] }
  0x1a   : > { %223 = vst [vmem:[%s1042_s27 + $0xa8] sm:$0xff] %v222_v14  ;;  %v764_v16 = vld [vmem:[%s1037_s26 + $0x8] sm:$0xf]  ;;  %225 = vst [vmem:[%s1042_s27 + $0xb4] sm:$0xff] %v224_v15  ;;  %v768_v18 = vld [vmem:[%s1037_s26 + $0x38] sm:$0xf] }
  0x1b   : > { %765 = vst [vmem:[%s1042_s27 + $0x8] sm:$0xf] %v764_v16  ;;  %767 = vst [vmem:[%s1042_s27 + $0x14] sm:$0xf] %v766_v17  ;;  %v770_v19 = vld [vmem:[%s1037_s26 + $0x50] sm:$0xf] }
  0x1c   : > { %v772_v20 = vld [vmem:[%s1037_s26 + $0x68] sm:$0xf]  ;;  %769 = vst [vmem:[%s1042_s27 + $0x20] sm:$0xf] %v768_v18  ;;  %771 = vst [vmem:[%s1042_s27 + $0x2c] sm:$0xf] %v770_v19 }
  0x1d   : > { %773 = vst [vmem:[%s1042_s27 + $0x38] sm:$0xf] %v772_v20  ;;  %v774_v21 = vld [vmem:[%s1037_s26 + $0x80] sm:$0xf]  ;;  %v776_v22 = vld [vmem:[%s1037_s26 + $0x98] sm:$0xf] }
  0x1e   : > { %v778_v23 = vld [vmem:[%s1037_s26 + $0xb0] sm:$0xf]  ;;  %775 = vst [vmem:[%s1042_s27 + $0x44] sm:$0xf] %v774_v21  ;;  %777 = vst [vmem:[%s1042_s27 + $0x50] sm:$0xf] %v776_v22 }
  0x1f   : > { %779 = vst [vmem:[%s1042_s27 + $0x5c] sm:$0xf] %v778_v23  ;;  %v780_v24 = vld [vmem:[%s1037_s26 + $0xc8] sm:$0xf]  ;;  %v782_v25 = vld [vmem:[%s1037_s26 + $0xe0] sm:$0xf] }
  0x20   : > { %v784_v26 = vld [vmem:[%s1037_s26 + $0xf8] sm:$0xf]  ;;  %781 = vst [vmem:[%s1042_s27 + $0x68] sm:$0xf] %v780_v24  ;;  %783 = vst [vmem:[%s1042_s27 + $0x74] sm:$0xf] %v782_v25 }
  0x21   : > { %785 = vst [vmem:[%s1042_s27 + $0x80] sm:$0xf] %v784_v26  ;;  %v786_v27 = vld [vmem:[%s1037_s26 + $0x110] sm:$0xf]  ;;  %v788_v28 = vld [vmem:[%s1037_s26 + $0x128] sm:$0xf] }
  0x22   : > { %v790_v29 = vld [vmem:[%s1037_s26 + $0x140] sm:$0xf]  ;;  %787 = vst [vmem:[%s1042_s27 + $0x8c] sm:$0xf] %v786_v27  ;;  %789 = vst [vmem:[%s1042_s27 + $0x98] sm:$0xf] %v788_v28 }
  0x23   : > { %791 = vst [vmem:[%s1042_s27 + $0xa4] sm:$0xf] %v790_v29  ;;  %v792_v30 = vld [vmem:[%s1037_s26 + $0x158] sm:$0xf]  ;;  %v794_v31 = vld [vmem:[%s1037_s26 + $0x170] sm:$0xf] }
  0x24   : > { %793 = vst [vmem:[%s1042_s27 + $0xb0] sm:$0xf] %v792_v30  ;;  %795 = vst [vmem:[%s1042_s27 + $0xbc] sm:$0xf] %v794_v31 }
  0x25 PF: > { %p796_p6 = scmp.ge.s32.totalorder %s969_s16, 1  ;;  %p277_p7 = scmp.lt.s32.totalorder %s969_s16, 3 }
  0x27   : > { %p278_p8 = pnand %p796_p6, %p277_p7 }
  0x28   : > { %s284_s28 = sand.u32 (!%p278_p8), 1, %s953_s12   ;;  %v971_v32 = vmov (!%p278_p8), 0.0   ;;  %vm972_vm0 = vmmov (!%p278_p8), 0   ;;  %v973_v33 = vmov (!%p278_p8), 0   ;;  %v357_v58 = vld [vmem:[%s1159_s0] sm:$0xf] (!%p278_p8)  ;;  %v613_v59 = vlaneseq (!%p278_p8) }
  0x29   : > { %281 = sbr.rel (%p278_p8) target bundleno = 294 (0x126), region = 54  ;;  %834 = vmatprep.subr.bf16.mxu1 (!%p278_p8), %v971_v32  ;;  %850 = vmatprep.mubr.msk.bf16.mxu1 (!%p278_p8), %vm972_vm0, %v971_v32 }
  0x2a   : > { %s855_s29 = smul.u32 (!%p278_p8), 192, %s284_s28  ;;  %550 = vmatprep.mubr.bf16.mxu0 (!%p278_p8), %v973_v33  ;;  %v614_v60 = vshrl.u32 (!%p278_p8), %v613_v59, 7 }
  0x2b   : > { %s331_s6 = smul.u32 (!%p278_p8), 3, %s961_s14 }
  0x2c   : > { %s1108_s30 = scalar_lea.vmem (!%p278_p8), [#allocation3], %s855_s29  ;;  %v623_v61 = vsub.s32 (!%p278_p8), 2, %v614_v60  ;;  %v615_v62 = vsub.s32 (!%p278_p8), 0, %v614_v60  ;;  %v619_v0 = vsub.s32 (!%p278_p8), 1, %v614_v60 }
  0x2d   : > { %v899_v34 = vld [vmem:[%s1108_s30 + $0x4] ss:$12 sps:$4 sm:$0xff] (!%p278_p8)   ;;  %v901_v35 = vld [vmem:[%s1108_s30 + $0x8] ss:$12 sps:$4 sm:$0xff] (!%p278_p8)   ;;  %v902_v36 = vld [vmem:[%s1108_s30] ss:$12 sps:$4 sm:$0xff] (!%p278_p8)  }
  0x2e   : > { %518 = vmatprep.subr.bf16.mxu0 (!%p278_p8), %v899_v34  ;;  %835 = vmatpush3.bf16.msra.mxu1 (!%p278_p8), %v901_v35  ;;  %v903_v37 = vld [vmem:[%s1108_s30 + $0x1c] ss:$12 sps:$4 sm:$0xff] (!%p278_p8)   ;;  %v905_v38 = vld [vmem:[%s1108_s30 + $0x20] ss:$12 sps:$4 sm:$0xff] (!%p278_p8)   ;;  %v906_v39 = vld [vmem:[%s1108_s30 + $0x18] ss:$12 sps:$4 sm:$0xff] (!%p278_p8)  }
  0x2f   : > { %519 = vmatpush1.bf16.msra.mxu0 (!%p278_p8), %v902_v36  ;;  %836 = vmatprep.subr.bf16.mxu1 (!%p278_p8), %v971_v32  ;;  %v907_v40 = vld [vmem:[%s1108_s30 + $0x34] ss:$12 sps:$4 sm:$0xff] (!%p278_p8)   ;;  %v909_v41 = vld [vmem:[%s1108_s30 + $0x38] ss:$12 sps:$4 sm:$0xff] (!%p278_p8)   ;;  %v910_v42 = vld [vmem:[%s1108_s30 + $0x30] ss:$12 sps:$4 sm:$0xff] (!%p278_p8)  }
  0x30   : > { %520 = vmatprep.subr.bf16.mxu0 %v903_v37  ;;  %v911_v43 = vld [vmem:[%s1108_s30 + $0x4c] ss:$12 sps:$4 sm:$0xff]   ;;  %v913_v44 = vld [vmem:[%s1108_s30 + $0x50] ss:$12 sps:$4 sm:$0xff]   ;;  %v914_v45 = vld [vmem:[%s1108_s30 + $0x48] ss:$12 sps:$4 sm:$0xff]  }
  0x31   : > { %v915_v46 = vld [vmem:[%s1108_s30 + $0x64] ss:$12 sps:$4 sm:$0xff]   ;;  %v917_v47 = vld [vmem:[%s1108_s30 + $0x68] ss:$12 sps:$4 sm:$0xff]   ;;  %v918_v48 = vld [vmem:[%s1108_s30 + $0x60] ss:$12 sps:$4 sm:$0xff]  }
  0x32   : > { %837 = vmatpush3.bf16.msra.mxu1 %v905_v38  ;;  %v919_v49 = vld [vmem:[%s1108_s30 + $0x7c] ss:$12 sps:$4 sm:$0xff]   ;;  %v921_v50 = vld [vmem:[%s1108_s30 + $0x80] ss:$12 sps:$4 sm:$0xff]   ;;  %v922_v51 = vld [vmem:[%s1108_s30 + $0x78] ss:$12 sps:$4 sm:$0xff]  }
  0x33   : > { %521 = vmatpush1.bf16.msra.mxu0 %v906_v39  ;;  %838 = vmatprep.subr.bf16.mxu1 %v971_v32  ;;  %v923_v52 = vld [vmem:[%s1108_s30 + $0x94] ss:$12 sps:$4 sm:$0xff]   ;;  %v925_v53 = vld [vmem:[%s1108_s30 + $0x98] ss:$12 sps:$4 sm:$0xff]   ;;  %v926_v54 = vld [vmem:[%s1108_s30 + $0x90] ss:$12 sps:$4 sm:$0xff]  }
  0x34   : > { %522 = vmatprep.subr.bf16.mxu0 %v907_v40  ;;  %v927_v55 = vld [vmem:[%s1108_s30 + $0xac] ss:$12 sps:$4 sm:$0xff]   ;;  %v929_v56 = vld [vmem:[%s1108_s30 + $0xb0] ss:$12 sps:$4 sm:$0xff]   ;;  %v930_v57 = vld [vmem:[%s1108_s30 + $0xa8] ss:$12 sps:$4 sm:$0xff]  }
  0x35   : > { %p332_p9 = scmp.lt.s32.totalorder %s331_s6, 5 }
  0x36   : > { %839 = vmatpush3.bf16.msra.mxu1 %v909_v41 }
  0x37   : > { %523 = vmatpush1.bf16.msra.mxu0 %v910_v42  ;;  %840 = vmatprep.subr.bf16.mxu1 %v971_v32  ;;  %s1170_s6 = smov (!%p332_p9, %s331_s6), 5 }
  0x38   : > { %524 = vmatprep.subr.bf16.mxu0 %v911_v43  ;;  %s334_s9 = scalar_lea.vmem %s1161_s2, %s1170_s6  ;;  %s797_s10 = sshll.u32 %s1170_s6, 3 }
  0x39   : > { %v611_v63 = vld [vmem:[%s334_s9] sm:$0x7]  ;;  %s344_s14 = scalar_lea.vmem %s1162_s3, %s797_s10 }
  0x3a   : > { %841 = vmatpush3.bf16.msra.mxu1 %v913_v44  ;;  %v624_v1 = vrot.slane %v611_v63, %v623_v61  ;;  %v616_v2 = vrot.slane %v611_v63, %v615_v62  ;;  %v620_v3 = vrot.slane %v611_v63, %v619_v0 }
  0x3b   : > { %525 = vmatpush1.bf16.msra.mxu0 %v914_v45  ;;  %842 = vmatprep.subr.bf16.mxu1 %v971_v32 }
  0x3c   : > { %526 = vmatprep.subr.bf16.mxu0 %v915_v46 }
  0x3e   : > { %843 = vmatpush3.bf16.msra.mxu1 %v917_v47 }
  0x3f   : > { %527 = vmatpush1.bf16.msra.mxu0 %v918_v48  ;;  %844 = vmatprep.subr.bf16.mxu1 %v971_v32 }
  0x40   : > { %528 = vmatprep.subr.bf16.mxu0 %v919_v49 }
  0x42   : > { %845 = vmatpush3.bf16.msra.mxu1 %v921_v50 }
  0x43   : > { %529 = vmatpush1.bf16.msra.mxu0 %v922_v51  ;;  %846 = vmatprep.subr.bf16.mxu1 %v971_v32 }
  0x44   : > { %530 = vmatprep.subr.bf16.mxu0 %v923_v52 }
  0x46   : > { %847 = vmatpush3.bf16.msra.mxu1 %v925_v53 }
  0x47   : > { %531 = vmatpush1.bf16.msra.mxu0 %v926_v54  ;;  %848 = vmatprep.subr.bf16.mxu1 %v971_v32 }
  0x48   : > { %532 = vmatprep.subr.bf16.mxu0 %v927_v55 }
  0x4a   : > { %849 = vmatpush3.bf16.msra.mxu1 %v929_v56 }
  0x4b   : > { %533 = vmatpush1.bf16.msra.mxu0 %v930_v57 }
  0x4d   : > { %851 = vmatmul.mubr.bf16.vlgmr.msra.gmra.mrb[0].mxu1 %v357_v58 }
  0x4e   : > { %551 = vmatmul.mubr.bf16.vlgmr.msra.gmra.mrb[0].mxu0 %v357_v58 }
 0x120   : > { %v593_v4 = vpop.f32.mrb[0].mxu1 }
 0x121   : > { %v552_v5 = vpop.f32.mrb[0].mxu0  ;;  %v852_v6 = vpop.f32.mrb[1].mxu1  ;;  %v630_v7 = vadd.f32 %v624_v1, %v593_v4 }
 0x122   : > { %v628_v8 = vadd.f32 %v616_v2, %v552_v5  ;;  %v554_v9 = vpop.f32.mrb[1].mxu0  ;;  %v596_v10 = vpop.f32.mrb[2].mxu1 }
 0x123   : > { %v629_v11 = vadd.f32 %v620_v3, %v554_v9  ;;  %v556_v12 = vpop.f32.mrb[2].mxu0  ;;  %v853_v13 = vpop.f32.mrb[3].mxu1  ;;  %633 = vst [vmem:[%s344_s14 + $0x10] sm:$0xff] %v630_v7 }
 0x124   : > { %631 = vst [vmem:[%s344_s14] sm:$0xff] %v628_v8  ;;  %v557_v14 = vpop.f32.mrb[3].mxu0 }
 0x125   : > { %632 = vst [vmem:[%s344_s14 + $0x8] sm:$0xff] %v629_v11 }
 0x126 PF: > { %s13_s16 = sadd.s32 1, %s969_s16   ;;  %s1163_s12 = smov %s957_s13 }
 0x127   : > { %p10_p10 = scmp.ge.s32.totalorder %s13_s16, 4   ;;  %s1164_s13 = smov %s1029_s20 }
 0x128   : > { %s1165_s14 = smov %s965_s15  ;;  %s1166_s15 = smov %s1168_s17 }
 0x129   :  { %12 = sbr.rel (!%p10_p10) target bundleno = 3 (0x3), region = 113 }

// kernel: _lambda_.3
= control target key start
LH: loop header
LB: loop body
LE: loop exit
PB: predicated region body
PF: predicated region fallthrough
CT: control target
= control target key end

     0   :  { %8 = vsyncpa [#allocation4], 0  ;;  %s279_s12 = smov [#allocation3]   ;;  %s354_s0 = inlined_call_operand.vmem [shape: bf16[32,128], index: 0, kind: input, shape index: {}]   ;;  %s355_s1 = inlined_call_operand.vmem [shape: bf16[128,128], index: 1, kind: input, shape index: {}]   ;;  %s356_s2 = inlined_call_operand.hbm [shape: f32[1,128], index: 2, kind: input, shape index: {}]   ;;  %s357_s3 = inlined_call_operand.vmem [shape: f32[32,128], index: 3, kind: output, shape index: {}]  }
   0x1   :  { %s19_s13 = sshll.u32 %s279_s12, 4  ;;  %s255_s16 = scalar_lea.hbm %s356_s2, 16  ;;  %s20_s13 = int_to_ptr.vmem [resolvable:$true] %s19_s13 }
   0x2   :  { %p256_p0 = scmp.ne.s32.totalorder %s356_s2, %s255_s16  ;;  %p259_p1 = scmp.lt.u32.totalorder %s255_s16, %s356_s2 }
   0x4   :  { %p261_p2 = pnand %p259_p1, %p256_p0 }
   0x6   :  { %264 = shalt.err (!%p261_p2)
}
   0x7   :  { %s265_s21 = scalar_lea.vmem %s20_s13, 16  ;;  %s269_s22 = scalar_lea.vmem %s20_s13, 32 }
   0x8   :  { %p266_p3 = scmp.ne.s32.totalorder %s20_s13, %s265_s21  ;;  %p270_p4 = scmp.lt.s32.totalorder %s20_s13, %s20_s13 }
   0x9   :  { %p271_p5 = scmp.lt.s32.totalorder %s269_s22, %s265_s21 }
   0xb   :  { %p272_p6 = por %p271_p5, %p270_p4 }
   0xd   :  { %p273_p7 = pnand %p272_p6, %p266_p3 }
   0xf   :  { %276 = shalt.err (!%p273_p7)
}
  0x10   :  { %22 = dma.hbm_to_vmem [thread:$0]  %s356_s2, 16, %s20_s13, [#allocation4]  }
  0x11   :  { %277 = dma.done.wait [#allocation4], 16  }
  0x12   :  { %278 = vsyncadd [#allocation4], 4294967280  ;;  %v245_v0 = vld [vmem:[%s355_s1] sm:$0xff]   ;;  %v246_v1 = vld [vmem:[%s355_s1 + $0x8] sm:$0xff]  }
  0x13   :  { %224 = vmatprep.subr.bf16.mxu0 %v245_v0  ;;  %v247_v2 = vld [vmem:[%s355_s1 + $0x10] sm:$0xff]   ;;  %v248_v3 = vld [vmem:[%s355_s1 + $0x18] sm:$0xff]   ;;  %v253_v4 = vld [vmem:[%s354_s0] sm:$0xff]  }
  0x14   :  { %225 = vmatpush3.bf16.msra.mxu0 %v245_v0  ;;  %240 = vmatprep.mubr.bf16.mxu0 %v253_v4  ;;  %v249_v5 = vld [vmem:[%s355_s1 + $0x20] sm:$0xff]   ;;  %v250_v6 = vld [vmem:[%s355_s1 + $0x28] sm:$0xff]   ;;  %v251_v7 = vld [vmem:[%s355_s1 + $0x30] sm:$0xff]  }
  0x15   :  { %226 = vmatprep.subr.bf16.mxu0 %v246_v1  ;;  %v252_v8 = vld [vmem:[%s355_s1 + $0x38] sm:$0xff]   ;;  %v254_v9 = vld [vmem:[%s354_s0 + $0x8] sm:$0xff]   ;;  %v213_v10 = vld [vmem:[#allocation3] ss:$0 sm:$0xff] }
  0x18   :  { %227 = vmatpush3.bf16.msra.mxu0 %v246_v1 }
  0x19   :  { %228 = vmatprep.subr.bf16.mxu0 %v247_v2 }
  0x1c   :  { %229 = vmatpush3.bf16.msra.mxu0 %v247_v2 }
  0x1d   :  { %230 = vmatprep.subr.bf16.mxu0 %v248_v3 }
  0x20   :  { %231 = vmatpush3.bf16.msra.mxu0 %v248_v3 }
  0x21   :  { %232 = vmatprep.subr.bf16.mxu0 %v249_v5 }
  0x24   :  { %233 = vmatpush3.bf16.msra.mxu0 %v249_v5 }
  0x25   :  { %234 = vmatprep.subr.bf16.mxu0 %v250_v6 }
  0x28   :  { %235 = vmatpush3.bf16.msra.mxu0 %v250_v6 }
  0x29   :  { %236 = vmatprep.subr.bf16.mxu0 %v251_v7 }
  0x2c   :  { %237 = vmatpush3.bf16.msra.mxu0 %v251_v7 }
  0x2d   :  { %238 = vmatprep.subr.bf16.mxu0 %v252_v8 }
  0x30   :  { %239 = vmatpush3.bf16.msra.mxu0 %v252_v8 }
  0x33   :  { %241 = vmatmul.mubr.bf16.vlgmr.msra.gmra.mrb[0].mxu0 %v254_v9 }
 0x106   :  { %v242_v11 = vpop.f32.mrb[0].mxu0 }
 0x107   :  { %v192_v12 = vadd.f32 %v242_v11, %v213_v10  ;;  %v153_v13 = vpop.f32.mrb[1].mxu0 }
 0x108   :  { %v190_v14 = vadd.f32 %v213_v10, %v153_v13  ;;  %v243_v15 = vpop.f32.mrb[2].mxu0 }
 0x109   :  { %196 = vst [vmem:[%s357_s3 + $0x10] sm:$0xff] %v192_v12  ;;  %v193_v16 = vadd.f32 %v243_v15, %v213_v10  ;;  %v156_v17 = vpop.f32.mrb[3].mxu0 }
 0x10a   :  { %194 = vst [vmem:[%s357_s3] sm:$0xff] %v190_v14  ;;  %v191_v18 = vadd.f32 %v213_v10, %v156_v17 }
 0x10b   :  { %197 = vst [vmem:[%s357_s3 + $0x18] sm:$0xff] %v193_v16 }
 0x10c   :  { %195 = vst [vmem:[%s357_s3 + $0x8] sm:$0xff] %v191_v18 }
 0x10d   :  { %202 = vsyncpa [#allocation4], 1 }

// kernel: jvp__.25
= control target key start
LH: loop header
LB: loop body
LE: loop exit
PB: predicated region body
PF: predicated region fallthrough
CT: control target
= control target key end

     0   :  { %v653_v0 = vmov 0.0   ;;  %vm654_vm0 = vmmov 0   ;;  %v655_v3 = vmov 0   ;;  %s862_s1 = inlined_call_operand.vmem [shape: bf16[128,384], index: 1, kind: input, shape index: {}]   ;;  %s863_s0 = inlined_call_operand.vmem [shape: bf16[72,128], index: 0, kind: input, shape index: {}]   ;;  %s864_s2 = inlined_call_operand.vmem [shape: f32[72,384], index: 2, kind: output, shape index: {}]  }
   0x1   :  { %577 = vmatprep.subr.bf16.mxu1 %v653_v0  ;;  %v616_v1 = vld [vmem:[%s862_s1 + $0x4] ss:$12 sps:$4 sm:$0xff]   ;;  %593 = vmatprep.mubr.msk.bf16.mxu1 %vm654_vm0, %v653_v0  ;;  %v618_v2 = vld [vmem:[%s862_s1 + $0x8] ss:$12 sps:$4 sm:$0xff]   ;;  %v619_v4 = vld [vmem:[%s862_s1] ss:$12 sps:$4 sm:$0xff]  }
   0x2   :  { %299 = vmatprep.mubr.bf16.mxu0 %v655_v3  ;;  %267 = vmatprep.subr.bf16.mxu0 %v616_v1  ;;  %v620_v5 = vld [vmem:[%s862_s1 + $0x1c] ss:$12 sps:$4 sm:$0xff]   ;;  %v622_v6 = vld [vmem:[%s862_s1 + $0x20] ss:$12 sps:$4 sm:$0xff]   ;;  %v623_v7 = vld [vmem:[%s862_s1 + $0x18] ss:$12 sps:$4 sm:$0xff]  }
   0x3   :  { %578 = vmatpush3.bf16.msra.mxu1 %v618_v2  ;;  %268 = vmatpush1.bf16.msra.mxu0 %v619_v4  ;;  %v624_v8 = vld [vmem:[%s862_s1 + $0x34] ss:$12 sps:$4 sm:$0xff]   ;;  %v626_v9 = vld [vmem:[%s862_s1 + $0x38] ss:$12 sps:$4 sm:$0xff]   ;;  %v627_v10 = vld [vmem:[%s862_s1 + $0x30] ss:$12 sps:$4 sm:$0xff]  }
   0x4   :  { %579 = vmatprep.subr.bf16.mxu1 %v653_v0  ;;  %269 = vmatprep.subr.bf16.mxu0 %v620_v5  ;;  %v628_v11 = vld [vmem:[%s862_s1 + $0x4c] ss:$12 sps:$4 sm:$0xff]   ;;  %v630_v12 = vld [vmem:[%s862_s1 + $0x50] ss:$12 sps:$4 sm:$0xff]   ;;  %v631_v13 = vld [vmem:[%s862_s1 + $0x48] ss:$12 sps:$4 sm:$0xff]  }
   0x5   :  { %v632_v14 = vld [vmem:[%s862_s1 + $0x64] ss:$12 sps:$4 sm:$0xff]   ;;  %v634_v15 = vld [vmem:[%s862_s1 + $0x68] ss:$12 sps:$4 sm:$0xff]   ;;  %v635_v16 = vld [vmem:[%s862_s1 + $0x60] ss:$12 sps:$4 sm:$0xff]  }
   0x6   :  { %v636_v17 = vld [vmem:[%s862_s1 + $0x7c] ss:$12 sps:$4 sm:$0xff]   ;;  %v638_v18 = vld [vmem:[%s862_s1 + $0x80] ss:$12 sps:$4 sm:$0xff]   ;;  %v639_v19 = vld [vmem:[%s862_s1 + $0x78] ss:$12 sps:$4 sm:$0xff]  }
   0x7   :  { %580 = vmatpush3.bf16.msra.mxu1 %v622_v6  ;;  %270 = vmatpush1.bf16.msra.mxu0 %v623_v7  ;;  %v640_v20 = vld [vmem:[%s862_s1 + $0x94] ss:$12 sps:$4 sm:$0xff]   ;;  %v642_v21 = vld [vmem:[%s862_s1 + $0x98] ss:$12 sps:$4 sm:$0xff]   ;;  %v643_v22 = vld [vmem:[%s862_s1 + $0x90] ss:$12 sps:$4 sm:$0xff]  }
   0x8   :  { %581 = vmatprep.subr.bf16.mxu1 %v653_v0  ;;  %271 = vmatprep.subr.bf16.mxu0 %v624_v8  ;;  %v644_v23 = vld [vmem:[%s862_s1 + $0xac] ss:$12 sps:$4 sm:$0xff]   ;;  %v646_v24 = vld [vmem:[%s862_s1 + $0xb0] ss:$12 sps:$4 sm:$0xff]   ;;  %v647_v25 = vld [vmem:[%s862_s1 + $0xa8] ss:$12 sps:$4 sm:$0xff]  }
   0x9   :  { %v648_v26 = vld [vmem:[%s863_s0] sm:$0xff]   ;;  %v649_v27 = vld [vmem:[%s863_s0 + $0x8] sm:$0xff]   ;;  %v650_v28 = vld [vmem:[%s863_s0 + $0x10] sm:$0xff]  }
   0xa   :  { %v651_v29 = vld [vmem:[%s863_s0 + $0x18] sm:$0xff]   ;;  %v652_v30 = vld [vmem:[%s863_s0 + $0x20] ss:$0 sps:$4 sm:$0xff]  }
   0xb   :  { %582 = vmatpush3.bf16.msra.mxu1 %v626_v9  ;;  %272 = vmatpush1.bf16.msra.mxu0 %v627_v10 }
   0xc   :  { %583 = vmatprep.subr.bf16.mxu1 %v653_v0  ;;  %273 = vmatprep.subr.bf16.mxu0 %v628_v11 }
   0xf   :  { %584 = vmatpush3.bf16.msra.mxu1 %v630_v12  ;;  %274 = vmatpush1.bf16.msra.mxu0 %v631_v13 }
  0x10   :  { %585 = vmatprep.subr.bf16.mxu1 %v653_v0  ;;  %275 = vmatprep.subr.bf16.mxu0 %v632_v14 }
  0x13   :  { %586 = vmatpush3.bf16.msra.mxu1 %v634_v15  ;;  %276 = vmatpush1.bf16.msra.mxu0 %v635_v16 }
  0x14   :  { %587 = vmatprep.subr.bf16.mxu1 %v653_v0  ;;  %277 = vmatprep.subr.bf16.mxu0 %v636_v17 }
  0x17   :  { %588 = vmatpush3.bf16.msra.mxu1 %v638_v18  ;;  %278 = vmatpush1.bf16.msra.mxu0 %v639_v19 }
  0x18   :  { %589 = vmatprep.subr.bf16.mxu1 %v653_v0  ;;  %279 = vmatprep.subr.bf16.mxu0 %v640_v20 }
  0x1b   :  { %590 = vmatpush3.bf16.msra.mxu1 %v642_v21  ;;  %280 = vmatpush1.bf16.msra.mxu0 %v643_v22 }
  0x1c   :  { %591 = vmatprep.subr.bf16.mxu1 %v653_v0  ;;  %281 = vmatprep.subr.bf16.mxu0 %v644_v23 }
  0x1f   :  { %592 = vmatpush3.bf16.msra.mxu1 %v646_v24  ;;  %282 = vmatpush1.bf16.msra.mxu0 %v647_v25 }
  0x22   :  { %594 = vmatmul.mubr.bf16.vlgmr.msra.gmra.mrb[0].mxu1 %v648_v26  ;;  %300 = vmatmul.mubr.bf16.vlgmr.msra.gmra.mrb[0].mxu0 %v648_v26 }
  0x23   :  { %597 = vmatprep.mubr.msk.bf16.mxu1 %vm654_vm0, %v653_v0  ;;  %309 = vmatprep.mubr.bf16.mxu0 %v655_v3 }
  0x2a   :  { %598 = vmatmul.mubr.bf16.gmra.mrb[4].mxu1 %v649_v27  ;;  %310 = vmatmul.mubr.bf16.gmra.mrb[4].mxu0 %v649_v27 }
  0x2b   :  { %601 = vmatprep.mubr.msk.bf16.mxu1 %vm654_vm0, %v653_v0  ;;  %319 = vmatprep.mubr.bf16.mxu0 %v655_v3 }
  0x32   :  { %602 = vmatmul.mubr.bf16.gmra.mrb[8].mxu1 %v650_v28  ;;  %320 = vmatmul.mubr.bf16.gmra.mrb[8].mxu0 %v650_v28 }
  0x33   :  { %605 = vmatprep.mubr.msk.bf16.mxu1 %vm654_vm0, %v653_v0  ;;  %329 = vmatprep.mubr.bf16.mxu0 %v655_v3 }
  0x3a   :  { %606 = vmatmul.mubr.bf16.gmra.mrb[12].mxu1 %v651_v29  ;;  %330 = vmatmul.mubr.bf16.gmra.mrb[12].mxu0 %v651_v29 }
  0x3b   :  { %609 = vmatprep.mubr.msk.bf16.mxu1 %vm654_vm0, %v653_v0  ;;  %339 = vmatprep.mubr.bf16.mxu0 %v655_v3 }
  0x42   :  { %610 = vmatmul.mubr.bf16.gmra.mrb[16].mxu1 %v652_v30  ;;  %340 = vmatmul.mubr.bf16.gmra.mrb[16].mxu0 %v652_v30 }
  0xf5   :  { %v382_v31 = vpop.f32.mrb[0].mxu1  ;;  %v301_v32 = vpop.f32.mrb[0].mxu0 }
  0xf6   :  { %506 = vst [vmem:[%s864_s2 + $0x10] sm:$0xff] %v382_v31  ;;  %v595_v33 = vpop.f32.mrb[1].mxu1  ;;  %504 = vst [vmem:[%s864_s2] sm:$0xff] %v301_v32  ;;  %v303_v34 = vpop.f32.mrb[1].mxu0 }
  0xf7   :  { %v385_v35 = vpop.f32.mrb[2].mxu1  ;;  %505 = vst [vmem:[%s864_s2 + $0x8] sm:$0xff] %v303_v34  ;;  %v305_v36 = vpop.f32.mrb[2].mxu0 }
  0xf8   :  { %509 = vst [vmem:[%s864_s2 + $0x28] sm:$0xff] %v385_v35  ;;  %v596_v37 = vpop.f32.mrb[3].mxu1  ;;  %507 = vst [vmem:[%s864_s2 + $0x18] sm:$0xff] %v305_v36  ;;  %v307_v38 = vpop.f32.mrb[3].mxu0 }
  0xf9   :  { %508 = vst [vmem:[%s864_s2 + $0x20] sm:$0xff] %v307_v38 }
  0xfd   :  { %v390_v39 = vpop.f32.mrb[4].mxu1  ;;  %v311_v40 = vpop.f32.mrb[4].mxu0 }
  0xfe   :  { %512 = vst [vmem:[%s864_s2 + $0x40] sm:$0xff] %v390_v39  ;;  %v599_v41 = vpop.f32.mrb[5].mxu1  ;;  %510 = vst [vmem:[%s864_s2 + $0x30] sm:$0xff] %v311_v40  ;;  %v313_v42 = vpop.f32.mrb[5].mxu0 }
  0xff   :  { %v393_v43 = vpop.f32.mrb[6].mxu1  ;;  %511 = vst [vmem:[%s864_s2 + $0x38] sm:$0xff] %v313_v42  ;;  %v315_v44 = vpop.f32.mrb[6].mxu0 }
 0x100   :  { %515 = vst [vmem:[%s864_s2 + $0x58] sm:$0xff] %v393_v43  ;;  %v600_v45 = vpop.f32.mrb[7].mxu1  ;;  %513 = vst [vmem:[%s864_s2 + $0x48] sm:$0xff] %v315_v44  ;;  %v317_v46 = vpop.f32.mrb[7].mxu0 }
 0x101   :  { %514 = vst [vmem:[%s864_s2 + $0x50] sm:$0xff] %v317_v46 }
 0x105   :  { %v398_v47 = vpop.f32.mrb[8].mxu1  ;;  %v321_v48 = vpop.f32.mrb[8].mxu0 }
 0x106   :  { %518 = vst [vmem:[%s864_s2 + $0x70] sm:$0xff] %v398_v47  ;;  %v603_v49 = vpop.f32.mrb[9].mxu1  ;;  %516 = vst [vmem:[%s864_s2 + $0x60] sm:$0xff] %v321_v48  ;;  %v323_v50 = vpop.f32.mrb[9].mxu0 }
 0x107   :  { %v401_v51 = vpop.f32.mrb[10].mxu1  ;;  %517 = vst [vmem:[%s864_s2 + $0x68] sm:$0xff] %v323_v50  ;;  %v325_v52 = vpop.f32.mrb[10].mxu0 }
 0x108   :  { %521 = vst [vmem:[%s864_s2 + $0x88] sm:$0xff] %v401_v51  ;;  %v604_v53 = vpop.f32.mrb[11].mxu1  ;;  %519 = vst [vmem:[%s864_s2 + $0x78] sm:$0xff] %v325_v52  ;;  %v327_v54 = vpop.f32.mrb[11].mxu0 }
 0x109   :  { %520 = vst [vmem:[%s864_s2 + $0x80] sm:$0xff] %v327_v54 }
 0x10d   :  { %v406_v55 = vpop.f32.mrb[12].mxu1  ;;  %v331_v56 = vpop.f32.mrb[12].mxu0 }
 0x10e   :  { %524 = vst [vmem:[%s864_s2 + $0xa0] sm:$0xff] %v406_v55  ;;  %v607_v57 = vpop.f32.mrb[13].mxu1  ;;  %522 = vst [vmem:[%s864_s2 + $0x90] sm:$0xff] %v331_v56  ;;  %v333_v58 = vpop.f32.mrb[13].mxu0 }
 0x10f   :  { %v409_v59 = vpop.f32.mrb[14].mxu1  ;;  %523 = vst [vmem:[%s864_s2 + $0x98] sm:$0xff] %v333_v58  ;;  %v335_v60 = vpop.f32.mrb[14].mxu0 }
 0x110   :  { %527 = vst [vmem:[%s864_s2 + $0xb8] sm:$0xff] %v409_v59  ;;  %v608_v61 = vpop.f32.mrb[15].mxu1  ;;  %525 = vst [vmem:[%s864_s2 + $0xa8] sm:$0xff] %v335_v60  ;;  %v337_v62 = vpop.f32.mrb[15].mxu0 }
 0x111   :  { %526 = vst [vmem:[%s864_s2 + $0xb0] sm:$0xff] %v337_v62 }
 0x115   :  { %v414_v63 = vpop.f32.mrb[16].mxu1  ;;  %v341_v0 = vpop.f32.mrb[16].mxu0 }
 0x116   :  { %530 = vst [vmem:[%s864_s2 + $0xd0] sm:$0xff] %v414_v63  ;;  %v611_v1 = vpop.f32.mrb[17].mxu1  ;;  %528 = vst [vmem:[%s864_s2 + $0xc0] sm:$0xff] %v341_v0  ;;  %v343_v2 = vpop.f32.mrb[17].mxu0 }
 0x117   :  { %v417_v3 = vpop.f32.mrb[18].mxu1  ;;  %529 = vst [vmem:[%s864_s2 + $0xc8] sm:$0xff] %v343_v2  ;;  %v345_v4 = vpop.f32.mrb[18].mxu0 }
 0x118   :  { %v612_v5 = vpop.f32.mrb[19].mxu1  ;;  %v346_v6 = vpop.f32.mrb[19].mxu0 }

// kernel: jvp__.27
= control target key start
LH: loop header
LB: loop body
LE: loop exit
PB: predicated region body
PF: predicated region fallthrough
CT: control target
= control target key end

     0   :  { %v343_v0 = vmov 0.0   ;;  %vm344_vm0 = vmmov 0   ;;  %s431_s1 = inlined_call_operand.vmem [shape: bf16[128,128], index: 1, kind: input, shape index: {}]   ;;  %s432_s0 = inlined_call_operand.vmem [shape: bf16[72,128], index: 0, kind: input, shape index: {}]   ;;  %s433_s2 = inlined_call_operand.vmem [shape: f32[72,128], index: 2, kind: output, shape index: {}]  }
   0x1   :  { %276 = vmatprep.subr.bf16.mxu0 %v343_v0  ;;  %v330_v1 = vld [vmem:[%s431_s1] sm:$0xff]   ;;  %312 = vmatprep.subr.bf16.mxu1 %v343_v0  ;;  %v331_v2 = vld [vmem:[%s431_s1 + $0x8] sm:$0xff]   ;;  %v332_v3 = vld [vmem:[%s431_s1 + $0x10] sm:$0xff]  }
   0x2   :  { %292 = vmatprep.mubr.msk.bf16.mxu0 %vm344_vm0, %v343_v0  ;;  %304 = vmatprep.mubr.msk.bf16.mxu1 %vm344_vm0, %v343_v0  ;;  %v333_v4 = vld [vmem:[%s431_s1 + $0x18] sm:$0xff]   ;;  %v334_v5 = vld [vmem:[%s431_s1 + $0x20] sm:$0xff]   ;;  %v335_v6 = vld [vmem:[%s431_s1 + $0x28] sm:$0xff]  }
   0x3   :  { %277 = vmatpush3.bf16.msra.mxu0 %v330_v1  ;;  %320 = vmatpush3.bf16.msra.mxu1 %v330_v1  ;;  %v336_v7 = vld [vmem:[%s431_s1 + $0x30] sm:$0xff]   ;;  %v337_v8 = vld [vmem:[%s431_s1 + $0x38] sm:$0xff]   ;;  %v338_v9 = vld [vmem:[%s432_s0] sm:$0xff]  }
   0x4   :  { %278 = vmatprep.subr.bf16.mxu0 %v343_v0  ;;  %313 = vmatprep.subr.bf16.mxu1 %v343_v0  ;;  %v339_v10 = vld [vmem:[%s432_s0 + $0x18] sm:$0xff]   ;;  %v340_v11 = vld [vmem:[%s432_s0 + $0x8] sm:$0xff]   ;;  %v341_v12 = vld [vmem:[%s432_s0 + $0x20] ss:$0 sps:$4 sm:$0xff]  }
   0x5   :  { %v342_v13 = vld [vmem:[%s432_s0 + $0x10] sm:$0xff]  }
   0x7   :  { %279 = vmatpush3.bf16.msra.mxu0 %v331_v2  ;;  %321 = vmatpush3.bf16.msra.mxu1 %v331_v2 }
   0x8   :  { %280 = vmatprep.subr.bf16.mxu0 %v343_v0  ;;  %314 = vmatprep.subr.bf16.mxu1 %v343_v0 }
   0xb   :  { %281 = vmatpush3.bf16.msra.mxu0 %v332_v3  ;;  %322 = vmatpush3.bf16.msra.mxu1 %v332_v3 }
   0xc   :  { %282 = vmatprep.subr.bf16.mxu0 %v343_v0  ;;  %315 = vmatprep.subr.bf16.mxu1 %v343_v0 }
   0xf   :  { %283 = vmatpush3.bf16.msra.mxu0 %v333_v4  ;;  %323 = vmatpush3.bf16.msra.mxu1 %v333_v4 }
  0x10   :  { %284 = vmatprep.subr.bf16.mxu0 %v343_v0  ;;  %316 = vmatprep.subr.bf16.mxu1 %v343_v0 }
  0x13   :  { %285 = vmatpush3.bf16.msra.mxu0 %v334_v5  ;;  %324 = vmatpush3.bf16.msra.mxu1 %v334_v5 }
  0x14   :  { %286 = vmatprep.subr.bf16.mxu0 %v343_v0  ;;  %317 = vmatprep.subr.bf16.mxu1 %v343_v0 }
  0x17   :  { %287 = vmatpush3.bf16.msra.mxu0 %v335_v6  ;;  %325 = vmatpush3.bf16.msra.mxu1 %v335_v6 }
  0x18   :  { %288 = vmatprep.subr.bf16.mxu0 %v343_v0  ;;  %318 = vmatprep.subr.bf16.mxu1 %v343_v0 }
  0x1b   :  { %289 = vmatpush3.bf16.msra.mxu0 %v336_v7  ;;  %326 = vmatpush3.bf16.msra.mxu1 %v336_v7 }
  0x1c   :  { %290 = vmatprep.subr.bf16.mxu0 %v343_v0  ;;  %319 = vmatprep.subr.bf16.mxu1 %v343_v0 }
  0x1f   :  { %291 = vmatpush3.bf16.msra.mxu0 %v337_v8  ;;  %327 = vmatpush3.bf16.msra.mxu1 %v337_v8 }
  0x22   :  { %293 = vmatmul.mubr.bf16.vlgmr.msra.gmra.mrb[0].mxu0 %v338_v9  ;;  %305 = vmatmul.mubr.bf16.vlgmr.msra.gmra.mrb[0].mxu1 %v339_v10 }
  0x23   :  { %296 = vmatprep.mubr.msk.bf16.mxu0 %vm344_vm0, %v343_v0  ;;  %308 = vmatprep.mubr.msk.bf16.mxu1 %vm344_vm0, %v343_v0 }
  0x2a   :  { %297 = vmatmul.mubr.bf16.gmra.mrb[4].mxu0 %v340_v11  ;;  %309 = vmatmul.mubr.bf16.gmra.mrb[4].mxu1 %v341_v12 }
  0x2b   :  { %300 = vmatprep.mubr.msk.bf16.mxu0 %vm344_vm0, %v343_v0 }
  0x32   :  { %301 = vmatmul.mubr.bf16.gmra.mrb[8].mxu0 %v342_v13 }
  0xf5   :  { %v169_v14 = vpop.f32.mrb[0].mxu0  ;;  %v193_v15 = vpop.f32.mrb[0].mxu1 }
  0xf6   :  { %237 = vst [vmem:[%s433_s2] sm:$0xff] %v169_v14  ;;  %v294_v16 = vpop.f32.mrb[1].mxu0  ;;  %243 = vst [vmem:[%s433_s2 + $0x30] sm:$0xff] %v193_v15  ;;  %v306_v17 = vpop.f32.mrb[1].mxu1 }
  0xf7   :  { %v172_v18 = vpop.f32.mrb[2].mxu0  ;;  %v196_v19 = vpop.f32.mrb[2].mxu1 }
  0xf8   :  { %238 = vst [vmem:[%s433_s2 + $0x8] sm:$0xff] %v172_v18  ;;  %v295_v20 = vpop.f32.mrb[3].mxu0  ;;  %244 = vst [vmem:[%s433_s2 + $0x38] sm:$0xff] %v196_v19  ;;  %v307_v21 = vpop.f32.mrb[3].mxu1 }
  0xfd   :  { %v177_v22 = vpop.f32.mrb[4].mxu0  ;;  %v201_v23 = vpop.f32.mrb[4].mxu1 }
  0xfe   :  { %239 = vst [vmem:[%s433_s2 + $0x10] sm:$0xff] %v177_v22  ;;  %v298_v24 = vpop.f32.mrb[5].mxu0  ;;  %245 = vst [vmem:[%s433_s2 + $0x40] sm:$0xff] %v201_v23  ;;  %v310_v25 = vpop.f32.mrb[5].mxu1 }
  0xff   :  { %v180_v26 = vpop.f32.mrb[6].mxu0  ;;  %v204_v27 = vpop.f32.mrb[6].mxu1 }
 0x100   :  { %240 = vst [vmem:[%s433_s2 + $0x18] sm:$0xff] %v180_v26  ;;  %v299_v28 = vpop.f32.mrb[7].mxu0  ;;  %v311_v29 = vpop.f32.mrb[7].mxu1 }
 0x105   :  { %v185_v30 = vpop.f32.mrb[8].mxu0 }
 0x106   :  { %241 = vst [vmem:[%s433_s2 + $0x20] sm:$0xff] %v185_v30  ;;  %v302_v31 = vpop.f32.mrb[9].mxu0 }
 0x107   :  { %v188_v32 = vpop.f32.mrb[10].mxu0 }
 0x108   :  { %242 = vst [vmem:[%s433_s2 + $0x28] sm:$0xff] %v188_v32  ;;  %v303_v33 = vpop.f32.mrb[11].mxu0 }

// kernel: jvp__.26
= control target key start
LH: loop header
LB: loop body
LE: loop exit
PB: predicated region body
PF: predicated region fallthrough
CT: control target
= control target key end

     0   :  { %s1553_s6 = smov 0   ;;  %s1994_s0 = inlined_call_operand.vmem [shape: bf16[2,34,384], index: 0, kind: input, shape index: {}]   ;;  %s1995_s1 = inlined_call_operand.vmem [shape: f32[2,34,128], index: 1, kind: output, shape index: {}]  }
   0x1 LB: > { %s1190_s7 = sadd.s32 4294967295, %s1536_s6   ;;  %p1194_p0 = scmp.ge.s32.totalorder %s1536_s6, 1  ;;  %s1536_s6 = sphi %s1553_s6, %s11_s6  }
   0x2   : > { %p87_p1 = scmp.lt.s32.totalorder %s1536_s6, 3 }
   0x4   : > { %p88_p2 = pnand %p1194_p0, %p87_p1 }
   0x5   : > { %p107_p3 = scmp.lt.s32.totalorder (!%p88_p2), %s1190_s7, 1  ;;  %v1538_v0 = vmov (!%p88_p2), 0.0   ;;  %vm1539_vm0 = vmmov (!%p88_p2), 0   ;;  %vm149_vm1 = vcmask (!%p88_p2), 261120   ;;  %vm229_vm2 = vcmask (!%p88_p2), 277504   ;;  %s1540_s12 = smov (!%p88_p2), 96  }
   0x6   : > { %91 = sbr.rel (%p88_p2) target bundleno = 1645 (0x66d), region = 24  ;;  %1280 = vmatprep.subr.bf16.mxu0 (!%p88_p2), %v1538_v0  ;;  %1286 = vmatprep.mubr.msk.bf16.mxu0 (!%p88_p2), %vm1539_vm0, %v1538_v0  ;;  %vm242_vm3 = vcmask (!%p88_p2), 271360   ;;  %vm313_vm4 = vcmask (!%p88_p2), 1040384   ;;  %s1541_s13 = smov (!%p88_p2), 64   ;;  %vm377_vm5 = vcmask (!%p88_p2), 254976   ;;  %vm624_vm6 = vcmask (!%p88_p2), 523520  }
   0x7   : > { %1298 = vmatprep.subr.bf16.mxu1 (!%p88_p2), %v1538_v0  ;;  %1304 = vmatprep.mubr.msk.bf16.mxu1 (!%p88_p2), %vm1539_vm0, %v1538_v0  ;;  %s1542_s14 = smov (!%p88_p2), 32   ;;  %vm629_vm7 = vcmask (!%p88_p2), 517376   ;;  %vm876_vm8 = vcmask (!%p88_p2), 785920   ;;  %vm881_vm9 = vcmask (!%p88_p2), 779776   ;;  %vm1128_vm10 = vcmask (!%p88_p2), 1048320  }
   0x8   : > { %vm1133_vm11 = vcmask (!%p88_p2), 1042176  }
   0xd   : > { %s1997_s7 = smov (!%p107_p3, %s1190_s7), 1 }
   0xe   : > { %s1424_s8 = smul.u32 60, %s1997_s7 }
   0xf   : > { %s1425_s15 = smul.u32 40, %s1997_s7 }
  0x10   : > { %s1573_s11 = scalar_lea.vmem %s1994_s0, %s1424_s8 }
  0x11   : > { %v1576_v1 = vld [vmem:[%s1573_s11 + $0x4] ss:$12 sps:$4 sm:$0xff]   ;;  %v1581_v3 = vld [vmem:[%s1573_s11 + $0x1c] ss:$12 sps:$4 sm:$0xff]   ;;  %v1594_v8 = vld [vmem:[%s1573_s11] ss:$12 sps:$4 sm:$0xff]   ;;  %s1744_s18 = scalar_lea.vmem %s1995_s1, %s1425_s15 }
  0x12   : > { %v160_v2 = vsel %vm149_vm1, %v1576_v1, 0  ;;  %v163_v4 = vsel %vm149_vm1, %v1581_v3, 0  ;;  %v126_v5 = vld [vmem:[%s1573_s11 + $0x30] sm:$0x11]  ;;  %v1601_v9 = vld [vmem:[%s1573_s11 + $0x18] ss:$12 sps:$4 sm:$0xff]  }
  0x13   : > { %1281 = vmatpush3.bf16.xpose.msra.mxu0 %v160_v2  ;;  %v1588_v6 = vcombine.high %v126_v5, %v126_v5  ;;  %v1607_v10 = vcombine.low %v126_v5, %v126_v5  ;;  %v1632_v53 = vld [vmem:[%s1573_s11 + $0x8] ss:$12 sps:$4 sm:$0xff]   ;;  %v1637_v54 = vld [vmem:[%s1573_s11 + $0x20] ss:$12 sps:$4 sm:$0xff]  }
  0x14   : > { %1282 = vmatprep.subr.bf16.mxu0 %v1538_v0  ;;  %1299 = vmatpush3.bf16.msra.mxu1 %v1632_v53  ;;  %v1642_v55 = vld [vmem:[%s1573_s11 + $0x38] ss:$0 sps:$4 sm:$0x11]  }
  0x15   : > { %v166_v7 = vsel %vm149_vm1, %v1588_v6, 0  ;;  %1300 = vmatprep.subr.bf16.mxu1 %v1538_v0  ;;  %v315_v56 = vsel %vm313_vm4, %v1642_v55, 0 }
  0x18   : > { %1301 = vmatpush3.bf16.msra.mxu1 %v1637_v54 }
  0x19   : > { %1302 = vmatprep.subr.bf16.mxu1 %v1538_v0 }
  0x1b   : > { %1283 = vmatpush3.bf16.xpose.msra.mxu0 %v163_v4 }
  0x1c   : > { %1284 = vmatprep.subr.bf16.mxu0 %v1538_v0  ;;  %1303 = vmatpush3.bf16.msra.mxu1 %v315_v56 }
  0x1d   : > { %1316 = vmatprep.subr.bf16.mxu1 %v1538_v0 }
  0x23   : > { %1285 = vmatpush3.bf16.xpose.msra.mxu0 %v166_v7 }
  0x24   : > { %1334 = vmatprep.subr.bf16.mxu0 %v1538_v0 }
  0x2a   : > { %1287 = vmatmul.mubr.msk.bf16.vlgmr.msra.gmra.mrb[0].mxu0 %vm149_vm1, %v1594_v8 }
  0x2b   : > { %1290 = vmatprep.mubr.msk.bf16.mxu0 %vm1539_vm0, %v1538_v0 }
  0x32   : > { %1291 = vmatmul.mubr.msk.bf16.gmra.mrb[4].mxu0 %vm149_vm1, %v1601_v9 }
  0x33   : > { %1294 = vmatprep.mubr.msk.bf16.mxu0 %vm1539_vm0, %v1538_v0 }
  0x3a   : > { %1295 = vmatmul.mubr.msk.bf16.gmra.mrb[8].mxu0 %vm149_vm1, %v1607_v10 }
  0x3b   : > { %1340 = vmatprep.mubr.msk.bf16.mxu0 %vm1539_vm0, %v1538_v0 }
  0xfd   : > { %v202_v11 = vpop.f32.mrb[0].mxu0 }
  0xfe   : > { %v224_v12 = vmul.f32 0.17677669, %v202_v11  ;;  %v1288_v13 = vpop.f32.mrb[1].mxu0 }
  0xff   : > { %v205_v14 = vpop.f32.mrb[2].mxu0 }
 0x100   : > { %v225_v15 = vmul.f32 0.17677669, %v205_v14  ;;  %v1289_v16 = vpop.f32.mrb[3].mxu0  ;;  %v230_v17 = vsel %vm229_vm2, %v224_v12, -inf }
 0x101   : > { %231 = vmax.xlane.f32.xlu0 %v230_v17 }
 0x102   : > { %v233_v18 = vsel %vm229_vm2, %v225_v15, -inf }
 0x105   : > { %234 = vmax.xlane.f32.xlu0 %v233_v18  ;;  %v210_v19 = vpop.f32.mrb[4].mxu0 }
 0x106   : > { %v226_v20 = vmul.f32 0.17677669, %v210_v19  ;;  %v1292_v21 = vpop.f32.mrb[5].mxu0 }
 0x107   : > { %v213_v22 = vpop.f32.mrb[6].mxu0 }
 0x108   : > { %v227_v23 = vmul.f32 0.17677669, %v213_v22  ;;  %v1293_v24 = vpop.f32.mrb[7].mxu0  ;;  %v236_v25 = vsel %vm229_vm2, %v226_v20, -inf }
 0x109   : > { %237 = vmax.xlane.f32.xlu1 %v236_v25 }
 0x10a   : > { %v239_v26 = vsel %vm229_vm2, %v227_v23, -inf }
 0x10d   : > { %240 = vmax.xlane.f32.xlu1 %v239_v26  ;;  %v218_v27 = vpop.f32.mrb[8].mxu0 }
 0x10e   : > { %v228_v28 = vmul.f32 0.17677669, %v218_v27  ;;  %v1296_v29 = vpop.f32.mrb[9].mxu0 }
 0x10f   : > { %v221_v30 = vpop.f32.mrb[10].mxu0 }
 0x110   : > { %v243_v31 = vsel %vm242_vm3, %v228_v28, -inf  ;;  %v1297_v32 = vpop.f32.mrb[11].mxu0 }
 0x111   : > { %244 = vmax.xlane.f32.xlu0 %v243_v31 }
 0x18e   : > { %v232_v33 = vpop.xlane.xlu0 %231 }
 0x18f   : > { %v246_v34 = vsub.f32 %v224_v12, %v232_v33 }
 0x191   : > { %v251_v35 = vmul.f32 1.442695, %v246_v34 }
 0x192   : > { %v235_v36 = vpop.xlane.xlu0 %234 }
 0x193   : > { %1450 = vpow2.f32 %v251_v35  ;;  %v247_v37 = vsub.f32 %v225_v15, %v235_v36 }
 0x195   : > { %v253_v38 = vmul.f32 1.442695, %v247_v37 }
 0x196   : > { %v238_v39 = vpop.xlane.xlu1 %237 }
 0x197   : > { %1452 = vpow2.f32 %v253_v38  ;;  %v248_v40 = vsub.f32 %v226_v20, %v238_v39 }
 0x199   : > { %v255_v41 = vmul.f32 1.442695, %v248_v40 }
 0x19a   : > { %v241_v42 = vpop.xlane.xlu1 %240 }
 0x19b   : > { %1454 = vpow2.f32 %v255_v41  ;;  %v249_v43 = vsub.f32 %v227_v23, %v241_v42 }
 0x19d   : > { %v1618_v44 = vpop.eup %1450  ;;  %v257_v45 = vmul.f32 1.442695, %v249_v43 }
 0x19e   : > { %v261_v46 = vsel %vm229_vm2, %v1618_v44, 0.0  ;;  %v245_v57 = vpop.xlane.xlu0 %244 }
 0x19f   : > { %1456 = vpow2.f32 %v257_v45  ;;  %262 = vadd.xlane.f32.xlu1 %v261_v46  ;;  %v250_v58 = vsub.f32 %v228_v28, %v245_v57 }
 0x1a1   : > { %v1453_v47 = vpop.eup %1452  ;;  %v259_v59 = vmul.f32 1.442695, %v250_v58 }
 0x1a2   : > { %v264_v48 = vsel %vm229_vm2, %v1453_v47, 0.0 }
 0x1a3   : > { %265 = vadd.xlane.f32.xlu0 %v264_v48  ;;  %1458 = vpow2.f32 %v259_v59 }
 0x1a5   : > { %v1623_v49 = vpop.eup %1454 }
 0x1a6   : > { %v267_v50 = vsel %vm229_vm2, %v1623_v49, 0.0 }
 0x1a7   : > { %268 = vadd.xlane.f32.xlu1 %v267_v50 }
 0x1a9   : > { %v1627_v51 = vpop.eup %1456 }
 0x1aa   : > { %v270_v52 = vsel %vm229_vm2, %v1627_v51, 0.0 }
 0x1ab   : > { %271 = vadd.xlane.f32.xlu0 %v270_v52 }
 0x1ad   : > { %v1459_v60 = vpop.eup %1458 }
 0x1ae   : > { %v273_v61 = vsel %vm242_vm3, %v1459_v60, 0.0 }
 0x1b8   : > { %387 = vrot.lane.b32.xlu1 %v1581_v3, %s1540_s12 }
 0x1c1   : > { %385 = vrot.lane.b32.xlu0 %v1576_v1, %s1540_s12 }
 0x1c5   : > { %637 = vrot.lane.b32.xlu0 %v1576_v1, %s1541_s13 }
 0x1c9   : > { %639 = vrot.lane.b32.xlu0 %v1581_v3, %s1541_s13 }
 0x1cd   : > { %641 = vrot.lane.b32.xlu0 %v1588_v6, %s1541_s13 }
 0x1d1   : > { %889 = vrot.lane.b32.xlu0 %v1576_v1, %s1542_s14 }
 0x1d5   : > { %891 = vrot.lane.b32.xlu0 %v1581_v3, %s1542_s14 }
 0x1d9   : > { %893 = vrot.lane.b32.xlu0 %v1588_v6, %s1542_s14 }
 0x1dc   : > { %274 = vadd.xlane.f32.xlu1 %v273_v61 }
 0x1dd   : > { %885 = vrot.lane.b32.xlu0 %v1601_v9, %s1542_s14 }
 0x1e1   : > { %528 = vrot.lane.b32.xlu0 %v1632_v53, %s1540_s12 }
 0x1ed   : > { %389 = vrot.lane.b32.xlu1 %v1588_v6, %s1540_s12 }
 0x1f1   : > { %379 = vrot.lane.b32.xlu1 %v1594_v8, %s1540_s12 }
 0x1f5   : > { %381 = vrot.lane.b32.xlu1 %v1601_v9, %s1540_s12 }
 0x1f9   : > { %383 = vrot.lane.b32.xlu1 %v1607_v10, %s1540_s12 }
 0x1fd   : > { %631 = vrot.lane.b32.xlu1 %v1594_v8, %s1541_s13 }
 0x201   : > { %633 = vrot.lane.b32.xlu1 %v1601_v9, %s1541_s13 }
 0x205   : > { %635 = vrot.lane.b32.xlu1 %v1607_v10, %s1541_s13 }
 0x209   : > { %883 = vrot.lane.b32.xlu1 %v1594_v8, %s1542_s14 }
 0x20d   : > { %887 = vrot.lane.b32.xlu1 %v1607_v10, %s1542_s14 }
 0x22c   : > { %v263_v62 = vpop.xlane.xlu1 %262 }
 0x22d   : > { %1460 = vrcp.f32 %v263_v62 }
 0x230   : > { %v266_v63 = vpop.xlane.xlu0 %265 }
 0x231   : > { %1462 = vrcp.f32 %v266_v63 }
 0x234   : > { %v269_v1 = vpop.xlane.xlu1 %268 }
 0x235   : > { %1464 = vrcp.f32 %v269_v1 }
 0x237   : > { %v1461_v3 = vpop.eup %1460 }
 0x238   : > { %v272_v2 = vpop.xlane.xlu0 %271  ;;  %v281_v6 = vmul.f32 %v1461_v3, %v1618_v44  ;;  %v388_v14 = vpop.permute.xlu1 %387 }
 0x239   : > { %1466 = vrcp.f32 %v272_v2  ;;  %v404_v16 = vsel %vm149_vm1, %v388_v14, 0 }
 0x23b   : > { %v1463_v4 = vpop.eup %1462 }
 0x23c   : > { %v386_v5 = vpop.permute.xlu0 %385  ;;  %v282_v7 = vmul.f32 %v1463_v4, %v1453_v47 }
 0x23d   : > { %v401_v9 = vsel %vm149_vm1, %v386_v5, 0 }
 0x23e   : > { %v286_v8 = vpack.c.bf16 %v282_v7, %v281_v6 }
 0x23f   : > { %v1465_v10 = vpop.eup %1464 }
 0x240   : > { %1305 = vmatmul.mubr.msk.bf16.vlgmr.msra.gmra.mrb[0].mxu1 %vm229_vm2, %v286_v8  ;;  %v283_v12 = vmul.f32 %v1465_v10, %v1623_v49  ;;  %v638_v23 = vpop.permute.xlu0 %637 }
 0x241   : > { %1317 = vmatpush3.bf16.xpose.msra.mxu1 %v401_v9  ;;  %1308 = vmatprep.mubr.msk.bf16.mxu1 %vm1539_vm0, %v1538_v0  ;;  %v653_v25 = vsel %vm149_vm1, %v638_v23, 0 }
 0x242   : > { %1318 = vmatprep.subr.bf16.mxu1 %v1538_v0 }
 0x243   : > { %v1467_v11 = vpop.eup %1466 }
 0x244   : > { %v284_v13 = vmul.f32 %v1467_v11, %v1627_v51  ;;  %v640_v26 = vpop.permute.xlu0 %639 }
 0x245   : > { %v656_v28 = vsel %vm149_vm1, %v640_v26, 0 }
 0x246   : > { %v287_v15 = vpack.c.bf16 %v284_v13, %v283_v12 }
 0x248   : > { %1309 = vmatmul.mubr.msk.bf16.gmra.mrb[4].mxu1 %vm229_vm2, %v287_v15  ;;  %v642_v29 = vpop.permute.xlu0 %641 }
 0x249   : > { %1319 = vmatpush3.bf16.xpose.msra.mxu1 %v404_v16  ;;  %1312 = vmatprep.mubr.msk.bf16.mxu1 %vm1539_vm0, %v1538_v0  ;;  %v659_v31 = vsel %vm149_vm1, %v642_v29, 0 }
 0x24a   : > { %1320 = vmatprep.subr.bf16.mxu1 %v1538_v0 }
 0x24c   : > { %v890_v32 = vpop.permute.xlu0 %889 }
 0x24d   : > { %v905_v34 = vsel %vm149_vm1, %v890_v32, 0 }
 0x250   : > { %v892_v35 = vpop.permute.xlu0 %891 }
 0x251   : > { %v908_v37 = vsel %vm149_vm1, %v892_v35, 0 }
 0x254   : > { %v894_v38 = vpop.permute.xlu0 %893 }
 0x255   : > { %v911_v40 = vsel %vm149_vm1, %v894_v38, 0 }
 0x258   : > { %v886_v42 = vpop.permute.xlu0 %885 }
 0x25c   : > { %v529_v52 = vpop.permute.xlu0 %528 }
 0x25d   : > { %1335 = vmatpush3.bf16.msra.mxu0 %v529_v52 }
 0x25e   : > { %1336 = vmatprep.subr.bf16.mxu0 %v1538_v0 }
 0x269   : > { %v275_v17 = vpop.xlane.xlu1 %274 }
 0x26a   : > { %1468 = vrcp.f32 %v275_v17 }
 0x26d   : > { %v390_v18 = vpop.permute.xlu1 %389 }
 0x26e   : > { %v407_v19 = vsel %vm149_vm1, %v390_v18, 0 }
 0x26f   : > { %1321 = vmatpush3.bf16.xpose.msra.mxu1 %v407_v19 }
 0x270   : > { %1352 = vmatprep.subr.bf16.mxu1 %v1538_v0 }
 0x271   : > { %v380_v24 = vpop.permute.xlu1 %379 }
 0x274   : > { %v1469_v20 = vpop.eup %1468 }
 0x275   : > { %v285_v21 = vmul.f32 %v1469_v20, %v1459_v60  ;;  %v382_v27 = vpop.permute.xlu1 %381 }
 0x277   : > { %v288_v22 = vpack.c.bf16 %v285_v21, %v285_v21 }
 0x279   : > { %1313 = vmatmul.mubr.msk.bf16.gmra.mrb[8].mxu1 %vm229_vm2, %v288_v22  ;;  %v384_v30 = vpop.permute.xlu1 %383 }
 0x27a   : > { %1322 = vmatprep.mubr.msk.bf16.mxu1 %vm1539_vm0, %v1538_v0 }
 0x27d   : > { %v632_v33 = vpop.permute.xlu1 %631 }
 0x281   : > { %1323 = vmatmul.mubr.msk.bf16.vlgmr.msra.gmra.mrb[12].mxu1 %vm149_vm1, %v380_v24  ;;  %v634_v36 = vpop.permute.xlu1 %633 }
 0x282   : > { %1353 = vmatpush3.bf16.xpose.msra.mxu1 %v653_v25  ;;  %1326 = vmatprep.mubr.msk.bf16.mxu1 %vm1539_vm0, %v1538_v0 }
 0x283   : > { %1354 = vmatprep.subr.bf16.mxu1 %v1538_v0 }
 0x285   : > { %v636_v39 = vpop.permute.xlu1 %635 }
 0x289   : > { %1327 = vmatmul.mubr.msk.bf16.gmra.mrb[16].mxu1 %vm149_vm1, %v382_v27  ;;  %v884_v41 = vpop.permute.xlu1 %883 }
 0x28a   : > { %1355 = vmatpush3.bf16.xpose.msra.mxu1 %v656_v28  ;;  %1330 = vmatprep.mubr.msk.bf16.mxu1 %vm1539_vm0, %v1538_v0 }
 0x28b   : > { %1356 = vmatprep.subr.bf16.mxu1 %v1538_v0 }
 0x28d   : > { %v888_v43 = vpop.permute.xlu1 %887 }
 0x291   : > { %1331 = vmatmul.mubr.msk.bf16.gmra.mrb[20].mxu1 %vm149_vm1, %v384_v30 }
 0x292   : > { %1357 = vmatpush3.bf16.xpose.msra.mxu1 %v659_v31  ;;  %1358 = vmatprep.mubr.msk.bf16.mxu1 %vm1539_vm0, %v1538_v0 }
 0x293   : > { %1388 = vmatprep.subr.bf16.mxu1 %v1538_v0 }
 0x299   : > { %1359 = vmatmul.mubr.msk.bf16.vlgmr.msra.gmra.mrb[24].mxu1 %vm149_vm1, %v632_v33 }
 0x29a   : > { %1389 = vmatpush3.bf16.xpose.msra.mxu1 %v905_v34  ;;  %1362 = vmatprep.mubr.msk.bf16.mxu1 %vm1539_vm0, %v1538_v0 }
 0x29b   : > { %1390 = vmatprep.subr.bf16.mxu1 %v1538_v0 }
 0x2a1   : > { %1363 = vmatmul.mubr.msk.bf16.gmra.mrb[28].mxu1 %vm149_vm1, %v634_v36 }
 0x2a2   : > { %1391 = vmatpush3.bf16.xpose.msra.mxu1 %v908_v37  ;;  %1366 = vmatprep.mubr.msk.bf16.mxu1 %vm1539_vm0, %v1538_v0 }
 0x2a3   : > { %1392 = vmatprep.subr.bf16.mxu1 %v1538_v0 }
 0x2a9   : > { %1367 = vmatmul.mubr.msk.bf16.gmra.mrb[32].mxu1 %vm149_vm1, %v636_v39 }
 0x2aa   : > { %1393 = vmatpush3.bf16.xpose.msra.mxu1 %v911_v40  ;;  %1394 = vmatprep.mubr.msk.bf16.mxu1 %vm1539_vm0, %v1538_v0 }
 0x2b1   : > { %1395 = vmatmul.mubr.msk.bf16.vlgmr.msra.gmra.mrb[36].mxu1 %vm149_vm1, %v884_v41 }
 0x2b2   : > { %1398 = vmatprep.mubr.msk.bf16.mxu1 %vm1539_vm0, %v1538_v0 }
 0x2b9   : > { %1399 = vmatmul.mubr.msk.bf16.gmra.mrb[40].mxu1 %vm149_vm1, %v886_v42 }
 0x2ba   : > { %1402 = vmatprep.mubr.msk.bf16.mxu1 %vm1539_vm0, %v1538_v0 }
 0x2c1   : > { %1403 = vmatmul.mubr.msk.bf16.gmra.mrb[44].mxu1 %vm149_vm1, %v888_v43 }
 0x313   : > { %v351_v44 = vpop.f32.mrb[0].mxu1 }
 0x314   : > { %373 = vst.msk [vmem:[%s1744_s18] sm:$0xff] %vm149_vm1, %v351_v44  ;;  %v1306_v45 = vpop.f32.mrb[1].mxu1 }
 0x315   : > { %v354_v46 = vpop.f32.mrb[2].mxu1 }
 0x316   : > { %374 = vst.msk [vmem:[%s1744_s18 + $0x8] sm:$0xff] %vm149_vm1, %v354_v46  ;;  %v1307_v47 = vpop.f32.mrb[3].mxu1 }
 0x31b   : > { %v359_v48 = vpop.f32.mrb[4].mxu1 }
 0x31c   : > { %375 = vst.msk [vmem:[%s1744_s18 + $0x10] sm:$0xff] %vm149_vm1, %v359_v48  ;;  %v1310_v49 = vpop.f32.mrb[5].mxu1 }
 0x31d   : > { %v362_v50 = vpop.f32.mrb[6].mxu1 }
 0x31e   : > { %376 = vst.msk [vmem:[%s1744_s18 + $0x18] sm:$0xff] %vm149_vm1, %v362_v50  ;;  %v1311_v51 = vpop.f32.mrb[7].mxu1 }
 0x34c   : > { %v367_v56 = vpop.f32.mrb[8].mxu1 }
 0x34d   : > { %378 = vst.msk [vmem:[%s1744_s18 + $0x20] sm:$0x3] %vm377_vm5, %v367_v56  ;;  %v1314_v57 = vpop.f32.mrb[9].mxu1 }
 0x34e   : > { %v370_v58 = vpop.f32.mrb[10].mxu1 }
 0x34f   : > { %v1315_v59 = vpop.f32.mrb[11].mxu1 }
 0x354   : > { %v443_v60 = vpop.f32.mrb[12].mxu1 }
 0x355   : > { %v1756_v61 = vmul.f32 0.17677669, %v443_v60  ;;  %v1324_v62 = vpop.f32.mrb[13].mxu1 }
 0x356   : > { %v446_v63 = vpop.f32.mrb[14].mxu1 }
 0x357   : > { %v1758_v1 = vmul.f32 0.17677669, %v446_v63  ;;  %v1325_v2 = vpop.f32.mrb[15].mxu1  ;;  %v470_v3 = vsel %vm229_vm2, %v1756_v61, -inf }
 0x358   : > { %471 = vmax.xlane.f32.xlu0 %v470_v3 }
 0x359   : > { %v473_v4 = vsel %vm229_vm2, %v1758_v1, -inf }
 0x35a   : > { %474 = vmax.xlane.f32.xlu1 %v473_v4 }
 0x35c   : > { %v451_v5 = vpop.f32.mrb[16].mxu1 }
 0x35d   : > { %v1328_v6 = vpop.f32.mrb[17].mxu1  ;;  %v1768_v29 = vmul.f32 0.17677669, %v451_v5 }
 0x35e   : > { %v454_v7 = vpop.f32.mrb[18].mxu1 }
 0x35f   : > { %v1329_v9 = vpop.f32.mrb[19].mxu1  ;;  %v1772_v31 = vmul.f32 0.17677669, %v454_v7  ;;  %v476_v32 = vsel %vm229_vm2, %v1768_v29, -inf }
 0x361   : > { %v479_v40 = vsel %vm229_vm2, %v1772_v31, -inf }
 0x364   : > { %v459_v8 = vpop.f32.mrb[20].mxu1 }
 0x365   : > { %v1332_v10 = vpop.f32.mrb[21].mxu1  ;;  %v1780_v39 = vmul.f32 0.17677669, %v459_v8 }
 0x366   : > { %v462_v11 = vpop.f32.mrb[22].mxu1 }
 0x367   : > { %v1333_v12 = vpop.f32.mrb[23].mxu1  ;;  %v482_v44 = vsel %vm242_vm3, %v1780_v39, -inf }
 0x36b   : > { %530 = vrot.lane.b32.xlu1 %v1637_v54, %s1540_s12 }
 0x36c   : > { %v695_v13 = vpop.f32.mrb[24].mxu1 }
 0x36d   : > { %v1360_v14 = vpop.f32.mrb[25].mxu1  ;;  %v1770_v30 = vmul.f32 0.17677669, %v695_v13 }
 0x36e   : > { %532 = vrot.lane.b32.xlu0 %v1642_v55, %s1540_s12  ;;  %v698_v15 = vpop.f32.mrb[26].mxu1 }
 0x36f   : > { %v1361_v16 = vpop.f32.mrb[27].mxu1  ;;  %v722_v36 = vsel %vm229_vm2, %v1770_v30, -inf  ;;  %v1788_v43 = vmul.f32 0.17677669, %v698_v15 }
 0x371   : > { %v725_v52 = vsel %vm229_vm2, %v1788_v43, -inf }
 0x374   : > { %v703_v17 = vpop.f32.mrb[28].mxu1 }
 0x375   : > { %v1364_v18 = vpop.f32.mrb[29].mxu1  ;;  %v1776_v35 = vmul.f32 0.17677669, %v703_v17 }
 0x376   : > { %v706_v19 = vpop.f32.mrb[30].mxu1 }
 0x377   : > { %v1365_v20 = vpop.f32.mrb[31].mxu1  ;;  %v728_v42 = vsel %vm229_vm2, %v1776_v35, -inf  ;;  %v1796_v51 = vmul.f32 0.17677669, %v706_v19 }
 0x379   : > { %v731_v59 = vsel %vm229_vm2, %v1796_v51, -inf }
 0x37c   : > { %v711_v21 = vpop.f32.mrb[32].mxu1 }
 0x37d   : > { %v1368_v22 = vpop.f32.mrb[33].mxu1  ;;  %v1784_v41 = vmul.f32 0.17677669, %v711_v21 }
 0x37e   : > { %v714_v23 = vpop.f32.mrb[34].mxu1 }
 0x37f   : > { %v1369_v24 = vpop.f32.mrb[35].mxu1  ;;  %v734_v48 = vsel %vm242_vm3, %v1784_v41, -inf }
 0x384   : > { %v947_v25 = vpop.f32.mrb[36].mxu1 }
 0x385   : > { %v1396_v26 = vpop.f32.mrb[37].mxu1  ;;  %v1804_v58 = vmul.f32 0.17677669, %v947_v25 }
 0x386   : > { %v950_v27 = vpop.f32.mrb[38].mxu1 }
 0x387   : > { %v1397_v28 = vpop.f32.mrb[39].mxu1  ;;  %v1792_v45 = vmul.f32 0.17677669, %v950_v27  ;;  %v974_v63 = vsel %vm229_vm2, %v1804_v58, -inf }
 0x389   : > { %v977_v56 = vsel %vm229_vm2, %v1792_v45, -inf }
 0x38c   : > { %v955_v33 = vpop.f32.mrb[40].mxu1 }
 0x38d   : > { %477 = vmax.xlane.f32.xlu0 %v476_v32  ;;  %v1400_v34 = vpop.f32.mrb[41].mxu1  ;;  %v1810_v62 = vmul.f32 0.17677669, %v955_v33 }
 0x38e   : > { %v958_v37 = vpop.f32.mrb[42].mxu1 }
 0x38f   : > { %723 = vmax.xlane.f32.xlu1 %v722_v36  ;;  %v1401_v38 = vpop.f32.mrb[43].mxu1  ;;  %v1802_v57 = vmul.f32 0.17677669, %v958_v37  ;;  %v980_v2 = vsel %vm229_vm2, %v1810_v62, -inf }
 0x391   : > { %480 = vmax.xlane.f32.xlu0 %v479_v40  ;;  %v983_v60 = vsel %vm229_vm2, %v1802_v57, -inf }
 0x393   : > { %729 = vmax.xlane.f32.xlu1 %v728_v42 }
 0x394   : > { %v963_v46 = vpop.f32.mrb[44].mxu1 }
 0x395   : > { %483 = vmax.xlane.f32.xlu0 %v482_v44  ;;  %v1404_v47 = vpop.f32.mrb[45].mxu1  ;;  %v1820_v3 = vmul.f32 0.17677669, %v963_v46 }
 0x396   : > { %v966_v49 = vpop.f32.mrb[46].mxu1 }
 0x397   : > { %735 = vmax.xlane.f32.xlu1 %v734_v48  ;;  %v1405_v50 = vpop.f32.mrb[47].mxu1  ;;  %v986_v4 = vsel %vm242_vm3, %v1820_v3, -inf }
 0x399   : > { %726 = vmax.xlane.f32.xlu0 %v725_v52 }
 0x39b   : > { %978 = vmax.xlane.f32.xlu1 %v977_v56 }
 0x39d   : > { %732 = vmax.xlane.f32.xlu0 %v731_v59 }
 0x39f   : > { %984 = vmax.xlane.f32.xlu1 %v983_v60 }
 0x3a1   : > { %975 = vmax.xlane.f32.xlu0 %v974_v63 }
 0x3a5   : > { %981 = vmax.xlane.f32.xlu0 %v980_v2 }
 0x3b0   : > { %780 = vrot.lane.b32.xlu1 %v1632_v53, %s1541_s13 }
 0x3bb   : > { %782 = vrot.lane.b32.xlu0 %v1637_v54, %s1541_s13 }
 0x3da   : > { %987 = vmax.xlane.f32.xlu0 %v986_v4 }
 0x3e5   : > { %v472_v5 = vpop.xlane.xlu0 %471 }
 0x3e6   : > { %v485_v6 = vsub.f32 %v1756_v61, %v472_v5 }
 0x3e7   : > { %v475_v7 = vpop.xlane.xlu1 %474 }
 0x3e8   : > { %v490_v9 = vmul.f32 1.442695, %v485_v6  ;;  %v486_v8 = vsub.f32 %v1758_v1, %v475_v7 }
 0x3e9   : > { %v533_v12 = vpop.permute.xlu0 %532 }
 0x3ea   : > { %1470 = vpow2.f32 %v490_v9  ;;  %v492_v10 = vmul.f32 1.442695, %v486_v8  ;;  %v546_v13 = vsel %vm313_vm4, %v533_v12, 0 }
 0x3eb   : > { %v531_v11 = vpop.permute.xlu1 %530 }
 0x3ec   : > { %1472 = vpow2.f32 %v492_v10  ;;  %1337 = vmatpush3.bf16.msra.mxu0 %v531_v11 }
 0x3ed   : > { %1338 = vmatprep.subr.bf16.mxu0 %v1538_v0 }
 0x3f0   : > { %1339 = vmatpush3.bf16.msra.mxu0 %v546_v13 }
 0x3f1   : > { %1370 = vmatprep.subr.bf16.mxu0 %v1538_v0 }
 0x3f4   : > { %v1829_v14 = vpop.eup %1470 }
 0x3f5   : > { %v500_v61 = vsel %vm229_vm2, %v1829_v14, 0.0 }
 0x3f6   : > { %v1833_v15 = vpop.eup %1472  ;;  %501 = vadd.xlane.f32.xlu1 %v500_v61 }
 0x3f7   : > { %v503_v1 = vsel %vm229_vm2, %v1833_v15, 0.0 }
 0x3f8   : > { %504 = vadd.xlane.f32.xlu0 %v503_v1 }
 0x41a   : > { %v478_v16 = vpop.xlane.xlu0 %477 }
 0x41b   : > { %v487_v17 = vsub.f32 %v1768_v29, %v478_v16 }
 0x41c   : > { %v724_v18 = vpop.xlane.xlu1 %723 }
 0x41d   : > { %v494_v19 = vmul.f32 1.442695, %v487_v17  ;;  %v737_v22 = vsub.f32 %v1770_v30, %v724_v18 }
 0x41e   : > { %v481_v20 = vpop.xlane.xlu0 %480 }
 0x41f   : > { %1474 = vpow2.f32 %v494_v19  ;;  %v488_v21 = vsub.f32 %v1772_v31, %v481_v20  ;;  %v742_v27 = vmul.f32 1.442695, %v737_v22 }
 0x420   : > { %v730_v24 = vpop.xlane.xlu1 %729 }
 0x421   : > { %v496_v23 = vmul.f32 1.442695, %v488_v21  ;;  %v739_v28 = vsub.f32 %v1776_v35, %v730_v24 }
 0x422   : > { %v484_v25 = vpop.xlane.xlu0 %483 }
 0x423   : > { %1476 = vpow2.f32 %v496_v23  ;;  %v489_v26 = vsub.f32 %v1780_v39, %v484_v25  ;;  %v746_v31 = vmul.f32 1.442695, %v739_v28 }
 0x424   : > { %v736_v34 = vpop.xlane.xlu1 %735 }
 0x425   : > { %v498_v32 = vmul.f32 1.442695, %v489_v26  ;;  %v741_v40 = vsub.f32 %v1784_v41, %v736_v34 }
 0x426   : > { %v727_v33 = vpop.xlane.xlu0 %726 }
 0x427   : > { %1478 = vpow2.f32 %v498_v32  ;;  %v738_v29 = vsub.f32 %v1788_v43, %v727_v33  ;;  %v750_v48 = vmul.f32 1.442695, %v741_v40 }
 0x428   : > { %1480 = vpow2.f32 %v742_v27  ;;  %v979_v43 = vpop.xlane.xlu1 %978 }
 0x429   : > { %v1843_v36 = vpop.eup %1474  ;;  %v744_v30 = vmul.f32 1.442695, %v738_v29  ;;  %v990_v49 = vsub.f32 %v1792_v45, %v979_v43 }
 0x42a   : > { %v733_v37 = vpop.xlane.xlu0 %732  ;;  %v506_v38 = vsel %vm229_vm2, %v1843_v36, 0.0 }
 0x42b   : > { %1482 = vpow2.f32 %v744_v30  ;;  %v740_v39 = vsub.f32 %v1796_v51, %v733_v37  ;;  %507 = vadd.xlane.f32.xlu1 %v506_v38  ;;  %v996_v56 = vmul.f32 1.442695, %v990_v49 }
 0x42c   : > { %1484 = vpow2.f32 %v746_v31  ;;  %v985_v60 = vpop.xlane.xlu1 %984 }
 0x42d   : > { %v1848_v35 = vpop.eup %1476  ;;  %v748_v42 = vmul.f32 1.442695, %v740_v39  ;;  %v992_v4 = vsub.f32 %v1802_v57, %v985_v60 }
 0x42e   : > { %v976_v44 = vpop.xlane.xlu0 %975  ;;  %v509_v46 = vsel %vm229_vm2, %v1848_v35, 0.0 }
 0x42f   : > { %510 = vadd.xlane.f32.xlu0 %v509_v46  ;;  %1486 = vpow2.f32 %v748_v42  ;;  %v989_v16 = vsub.f32 %v1804_v58, %v976_v44 }
 0x430   : > { %1488 = vpow2.f32 %v750_v48  ;;  %v781_v58 = vpop.permute.xlu1 %780 }
 0x431   : > { %v1853_v47 = vpop.eup %1478  ;;  %1490 = vpow2.f32 %v996_v56  ;;  %v994_v17 = vmul.f32 1.442695, %v989_v16 }
 0x432   : > { %v982_v50 = vpop.xlane.xlu0 %981  ;;  %v512_v51 = vsel %vm242_vm3, %v1853_v47, 0.0  ;;  %v1858_v52 = vpop.eup %1480 }
 0x433   : > { %513 = vadd.xlane.f32.xlu1 %v512_v51  ;;  %v991_v59 = vsub.f32 %v1810_v62, %v982_v50  ;;  %v752_v63 = vsel %vm229_vm2, %v1858_v52, 0.0  ;;  %v1000_v62 = vmul.f32 1.442695, %v992_v4 }
 0x435   : > { %v1860_v41 = vpop.eup %1482  ;;  %v998_v5 = vmul.f32 1.442695, %v991_v59 }
 0x436   : > { %v755_v45 = vsel %vm229_vm2, %v1860_v41, 0.0  ;;  %v1867_v2 = vpop.eup %1484  ;;  %v783_v18 = vpop.permute.xlu0 %782 }
 0x437   : > { %753 = vadd.xlane.f32.xlu1 %v752_v63  ;;  %756 = vadd.xlane.f32.xlu0 %v755_v45  ;;  %v758_v6 = vsel %vm229_vm2, %v1867_v2, 0.0  ;;  %1492 = vpow2.f32 %v998_v5 }
 0x438   : > { %1494 = vpow2.f32 %v1000_v62 }
 0x439   : > { %v1872_v7 = vpop.eup %1486  ;;  %1496 = vpow2.f32 %v994_v17 }
 0x43a   : > { %v761_v9 = vsel %vm229_vm2, %v1872_v7, 0.0  ;;  %v1876_v8 = vpop.eup %1488 }
 0x43b   : > { %759 = vadd.xlane.f32.xlu1 %v758_v6  ;;  %v764_v10 = vsel %vm242_vm3, %v1876_v8, 0.0  ;;  %v1880_v57 = vpop.eup %1490 }
 0x43c   : > { %v1007_v11 = vsel %vm229_vm2, %v1880_v57, 0.0 }
 0x43f   : > { %762 = vadd.xlane.f32.xlu1 %v761_v9 }
 0x441   : > { %v1884_v12 = vpop.eup %1492 }
 0x442   : > { %v1010_v13 = vsel %vm229_vm2, %v1884_v12, 0.0  ;;  %v1888_v61 = vpop.eup %1494 }
 0x443   : > { %765 = vadd.xlane.f32.xlu1 %v764_v10  ;;  %v1013_v1 = vsel %vm229_vm2, %v1888_v61, 0.0  ;;  %v1895_v20 = vpop.eup %1496 }
 0x444   : > { %v1004_v23 = vsel %vm229_vm2, %v1895_v20, 0.0 }
 0x447   : > { %1008 = vadd.xlane.f32.xlu1 %v1007_v11 }
 0x44b   : > { %1011 = vadd.xlane.f32.xlu1 %v1010_v13 }
 0x44d   : > { %784 = vrot.lane.b32.xlu0 %v1642_v55, %s1541_s13 }
 0x44f   : > { %1014 = vadd.xlane.f32.xlu1 %v1013_v1 }
 0x467   : > { %v988_v19 = vpop.xlane.xlu0 %987 }
 0x468   : > { %v993_v21 = vsub.f32 %v1820_v3, %v988_v19 }
 0x46a   : > { %v1002_v22 = vmul.f32 1.442695, %v993_v21 }
 0x46c   : > { %1498 = vpow2.f32 %v1002_v22  ;;  %1005 = vadd.xlane.f32.xlu0 %v1004_v23 }
 0x476   : > { %v1900_v24 = vpop.eup %1498 }
 0x477   : > { %v1016_v25 = vsel %vm242_vm3, %v1900_v24, 0.0 }
 0x478   : > { %1017 = vadd.xlane.f32.xlu1 %v1016_v25 }
 0x482   : > { %1034 = vrot.lane.b32.xlu0 %v1637_v54, %s1542_s14 }
 0x483   : > { %v502_v26 = vpop.xlane.xlu1 %501 }
 0x484   : > { %1500 = vrcp.f32 %v502_v26 }
 0x485   : > { %v505_v27 = vpop.xlane.xlu0 %504 }
 0x486   : > { %1502 = vrcp.f32 %v505_v27  ;;  %1036 = vrot.lane.b32.xlu0 %v1642_v55, %s1542_s14 }
 0x489   : > { %1032 = vrot.lane.b32.xlu1 %v1632_v53, %s1542_s14 }
 0x48e   : > { %v1501_v3 = vpop.eup %1500 }
 0x48f   : > { %v520_v32 = vmul.f32 %v1501_v3, %v1829_v14 }
 0x490   : > { %v1503_v28 = vpop.eup %1502 }
 0x491   : > { %v521_v33 = vmul.f32 %v1503_v28, %v1833_v15 }
 0x493   : > { %v525_v29 = vpack.c.bf16 %v521_v33, %v520_v32 }
 0x495   : > { %1341 = vmatmul.mubr.msk.bf16.vlgmr.msra.gmra.mrb[12].mxu0 %vm229_vm2, %v525_v29 }
 0x496   : > { %1371 = vmatpush3.bf16.msra.mxu0 %v781_v58  ;;  %1344 = vmatprep.mubr.msk.bf16.mxu0 %vm1539_vm0, %v1538_v0 }
 0x497   : > { %1372 = vmatprep.subr.bf16.mxu0 %v1538_v0 }
 0x49a   : > { %1373 = vmatpush3.bf16.msra.mxu0 %v783_v18 }
 0x49b   : > { %1374 = vmatprep.subr.bf16.mxu0 %v1538_v0 }
 0x4b8   : > { %v508_v54 = vpop.xlane.xlu1 %507 }
 0x4b9   : > { %1504 = vrcp.f32 %v508_v54 }
 0x4bc   : > { %v511_v53 = vpop.xlane.xlu0 %510 }
 0x4bd   : > { %1506 = vrcp.f32 %v511_v53 }
 0x4c0   : > { %v514_v55 = vpop.xlane.xlu1 %513 }
 0x4c1   : > { %1508 = vrcp.f32 %v514_v55 }
 0x4c3   : > { %v1505_v34 = vpop.eup %1504 }
 0x4c4   : > { %v754_v14 = vpop.xlane.xlu1 %753  ;;  %v757_v15 = vpop.xlane.xlu0 %756  ;;  %v522_v37 = vmul.f32 %v1505_v34, %v1843_v36 }
 0x4c5   : > { %1510 = vrcp.f32 %v754_v14 }
 0x4c6   : > { %1512 = vrcp.f32 %v757_v15 }
 0x4c7   : > { %v1507_v31 = vpop.eup %1506 }
 0x4c8   : > { %v760_v30 = vpop.xlane.xlu1 %759  ;;  %v523_v38 = vmul.f32 %v1507_v31, %v1848_v35  ;;  %v785_v39 = vpop.permute.xlu0 %784 }
 0x4c9   : > { %v798_v40 = vsel %vm313_vm4, %v785_v39, 0 }
 0x4ca   : > { %v526_v42 = vpack.c.bf16 %v523_v38, %v522_v37  ;;  %1375 = vmatpush3.bf16.msra.mxu0 %v798_v40 }
 0x4cb   : > { %v1509_v43 = vpop.eup %1508  ;;  %1406 = vmatprep.subr.bf16.mxu0 %v1538_v0 }
 0x4cc   : > { %1345 = vmatmul.mubr.msk.bf16.gmra.mrb[16].mxu0 %vm229_vm2, %v526_v42  ;;  %v763_v44 = vpop.xlane.xlu1 %762  ;;  %v524_v46 = vmul.f32 %v1509_v43, %v1853_v47 }
 0x4cd   : > { %1348 = vmatprep.mubr.msk.bf16.mxu0 %vm1539_vm0, %v1538_v0  ;;  %1514 = vrcp.f32 %v763_v44 }
 0x4ce   : > { %v527_v35 = vpack.c.bf16 %v524_v46, %v524_v46  ;;  %1516 = vrcp.f32 %v760_v30 }
 0x4cf   : > { %v1511_v36 = vpop.eup %1510 }
 0x4d0   : > { %v1513_v48 = vpop.eup %1512  ;;  %v772_v49 = vmul.f32 %v1511_v36, %v1858_v52  ;;  %v766_v51 = vpop.xlane.xlu1 %765 }
 0x4d1   : > { %v773_v50 = vmul.f32 %v1513_v48, %v1860_v41  ;;  %1518 = vrcp.f32 %v766_v51 }
 0x4d3   : > { %v777_v56 = vpack.c.bf16 %v773_v50, %v772_v49 }
 0x4d4   : > { %1349 = vmatmul.mubr.msk.bf16.gmra.mrb[20].mxu0 %vm229_vm2, %v527_v35  ;;  %v1009_v5 = vpop.xlane.xlu1 %1008 }
 0x4d5   : > { %1376 = vmatprep.mubr.msk.bf16.mxu0 %vm1539_vm0, %v1538_v0 }
 0x4d7   : > { %v1515_v59 = vpop.eup %1514 }
 0x4d8   : > { %v1517_v47 = vpop.eup %1516  ;;  %v775_v60 = vmul.f32 %v1515_v59, %v1872_v7  ;;  %v1012_v6 = vpop.xlane.xlu1 %1011 }
 0x4d9   : > { %v774_v63 = vmul.f32 %v1517_v47, %v1867_v2 }
 0x4db   : > { %v778_v45 = vpack.c.bf16 %v775_v60, %v774_v63  ;;  %v1519_v4 = vpop.eup %1518 }
 0x4dc   : > { %1377 = vmatmul.mubr.msk.bf16.vlgmr.msra.gmra.mrb[24].mxu0 %vm229_vm2, %v777_v56  ;;  %v776_v52 = vmul.f32 %v1519_v4, %v1876_v8  ;;  %v1015_v62 = vpop.xlane.xlu1 %1014 }
 0x4dd   : > { %1380 = vmatprep.mubr.msk.bf16.mxu0 %vm1539_vm0, %v1538_v0 }
 0x4de   : > { %v779_v41 = vpack.c.bf16 %v776_v52, %v776_v52 }
 0x4e4   : > { %1381 = vmatmul.mubr.msk.bf16.gmra.mrb[28].mxu0 %vm229_vm2, %v778_v45 }
 0x4e5   : > { %1384 = vmatprep.mubr.msk.bf16.mxu0 %vm1539_vm0, %v1538_v0 }
 0x4ec   : > { %1385 = vmatmul.mubr.msk.bf16.gmra.mrb[32].mxu0 %vm229_vm2, %v779_v41 }
 0x4ed   : > { %1412 = vmatprep.mubr.msk.bf16.mxu0 %vm1539_vm0, %v1538_v0 }
 0x4f9   : > { %v1006_v7 = vpop.xlane.xlu0 %1005 }
 0x4fa   : > { %1520 = vrcp.f32 %v1006_v7 }
 0x4fb   : > { %1522 = vrcp.f32 %v1009_v5 }
 0x4fc   : > { %1524 = vrcp.f32 %v1015_v62 }
 0x4fd   : > { %v1035_v9 = vpop.permute.xlu0 %1034  ;;  %1526 = vrcp.f32 %v1012_v6 }
 0x501   : > { %v1037_v11 = vpop.permute.xlu0 %1036 }
 0x502   : > { %v1050_v16 = vsel %vm313_vm4, %v1037_v11, 0 }
 0x504   : > { %v1521_v8 = vpop.eup %1520 }
 0x505   : > { %v1018_v2 = vpop.xlane.xlu1 %1017  ;;  %v1523_v13 = vpop.eup %1522  ;;  %v1024_v1 = vmul.f32 %v1521_v8, %v1895_v20 }
 0x506   : > { %v1025_v17 = vmul.f32 %v1523_v13, %v1880_v57  ;;  %1528 = vrcp.f32 %v1018_v2  ;;  %v1525_v19 = vpop.eup %1524 }
 0x507   : > { %v1527_v21 = vpop.eup %1526  ;;  %v1027_v22 = vmul.f32 %v1525_v19, %v1888_v61 }
 0x508   : > { %v1029_v18 = vpack.c.bf16 %v1025_v17, %v1024_v1  ;;  %v1026_v20 = vmul.f32 %v1527_v21, %v1884_v12 }
 0x509   : > { %v1033_v10 = vpop.permute.xlu1 %1032 }
 0x50a   : > { %1407 = vmatpush3.bf16.msra.mxu0 %v1033_v10  ;;  %v1030_v23 = vpack.c.bf16 %v1027_v22, %v1026_v20 }
 0x50b   : > { %1408 = vmatprep.subr.bf16.mxu0 %v1538_v0 }
 0x50e   : > { %1409 = vmatpush3.bf16.msra.mxu0 %v1035_v9 }
 0x50f   : > { %1410 = vmatprep.subr.bf16.mxu0 %v1538_v0 }
 0x510   : > { %v1529_v25 = vpop.eup %1528 }
 0x511   : > { %v1028_v57 = vmul.f32 %v1529_v25, %v1900_v24 }
 0x512   : > { %1411 = vmatpush3.bf16.msra.mxu0 %v1050_v16 }
 0x513   : > { %v1031_v58 = vpack.c.bf16 %v1028_v57, %v1028_v57 }
 0x515   : > { %1413 = vmatmul.mubr.msk.bf16.vlgmr.msra.gmra.mrb[36].mxu0 %vm229_vm2, %v1029_v18 }
 0x516   : > { %1416 = vmatprep.mubr.msk.bf16.mxu0 %vm1539_vm0, %v1538_v0 }
 0x51d   : > { %1417 = vmatmul.mubr.msk.bf16.gmra.mrb[40].mxu0 %vm229_vm2, %v1030_v23 }
 0x51e   : > { %1420 = vmatprep.mubr.msk.bf16.mxu0 %vm1539_vm0, %v1538_v0 }
 0x525   : > { %1421 = vmatmul.mubr.msk.bf16.gmra.mrb[44].mxu0 %vm229_vm2, %v1031_v58 }
 0x568   : > { %v582_v26 = vpop.f32.mrb[12].mxu0 }
 0x569   : > { %609 = vrot.lane.b32.xlu0 %v582_v26, %s1542_s14  ;;  %v1342_v27 = vpop.f32.mrb[13].mxu0 }
 0x56a   : > { %v585_v3 = vpop.f32.mrb[14].mxu0 }
 0x56b   : > { %v1343_v61 = vpop.f32.mrb[15].mxu0 }
 0x56d   : > { %611 = vrot.lane.b32.xlu0 %v585_v3, %s1542_s14 }
 0x59f   : > { %v590_v12 = vpop.f32.mrb[16].mxu0 }
 0x5a0   : > { %613 = vrot.lane.b32.xlu1 %v590_v12, %s1542_s14  ;;  %v1346_v28 = vpop.f32.mrb[17].mxu0 }
 0x5a1   : > { %v593_v32 = vpop.f32.mrb[18].mxu0 }
 0x5a2   : > { %615 = vrot.lane.b32.xlu0 %v593_v32, %s1542_s14  ;;  %v1347_v0 = vpop.f32.mrb[19].mxu0 }
 0x5a7   : > { %v598_v24 = vpop.f32.mrb[20].mxu0 }
 0x5a8   : > { %617 = vrot.lane.b32.xlu1 %v598_v24, %s1542_s14  ;;  %v1350_v33 = vpop.f32.mrb[21].mxu0 }
 0x5a9   : > { %v601_v29 = vpop.f32.mrb[22].mxu0 }
 0x5aa   : > { %v1351_v54 = vpop.f32.mrb[23].mxu0 }
 0x5af   : > { %v834_v53 = vpop.f32.mrb[24].mxu0 }
 0x5b0   : > { %861 = vrot.lane.b32.xlu0 %v834_v53, %s1541_s13  ;;  %v1378_v55 = vpop.f32.mrb[25].mxu0 }
 0x5b1   : > { %v837_v14 = vpop.f32.mrb[26].mxu0 }
 0x5b2   : > { %863 = vrot.lane.b32.xlu1 %v837_v14, %s1541_s13  ;;  %v1379_v15 = vpop.f32.mrb[27].mxu0 }
 0x5b7   : > { %v842_v34 = vpop.f32.mrb[28].mxu0 }
 0x5b8   : > { %865 = vrot.lane.b32.xlu0 %v842_v34, %s1541_s13  ;;  %v1382_v31 = vpop.f32.mrb[29].mxu0 }
 0x5b9   : > { %v845_v30 = vpop.f32.mrb[30].mxu0 }
 0x5ba   : > { %867 = vrot.lane.b32.xlu1 %v845_v30, %s1541_s13  ;;  %v1383_v37 = vpop.f32.mrb[31].mxu0 }
 0x5bf   : > { %v850_v38 = vpop.f32.mrb[32].mxu0 }
 0x5c0   : > { %869 = vrot.lane.b32.xlu0 %v850_v38, %s1541_s13  ;;  %v1386_v39 = vpop.f32.mrb[33].mxu0 }
 0x5c1   : > { %v853_v40 = vpop.f32.mrb[34].mxu0 }
 0x5c2   : > { %v1387_v42 = vpop.f32.mrb[35].mxu0 }
 0x5db   : > { %v610_v43 = vpop.permute.xlu0 %609 }
 0x5dc   : > { %625 = vst.msk [vmem:[%s1744_s18] sm:$0xff] %vm624_vm6, %v610_v43 }
 0x5df   : > { %v612_v44 = vpop.permute.xlu0 %611 }
 0x5e0   : > { %626 = vst.msk [vmem:[%s1744_s18 + $0x8] sm:$0xff] %vm624_vm6, %v612_v44 }
 0x5e8   : > { %v1086_v46 = vpop.f32.mrb[36].mxu0 }
 0x5e9   : > { %1113 = vrot.lane.b32.xlu1 %v1086_v46, %s1540_s12  ;;  %v1414_v36 = vpop.f32.mrb[37].mxu0 }
 0x5ea   : > { %v1089_v35 = vpop.f32.mrb[38].mxu0 }
 0x5eb   : > { %1115 = vrot.lane.b32.xlu0 %v1089_v35, %s1540_s12  ;;  %v1415_v48 = vpop.f32.mrb[39].mxu0 }
 0x5f0   : > { %v1094_v49 = vpop.f32.mrb[40].mxu0 }
 0x5f1   : > { %1117 = vrot.lane.b32.xlu1 %v1094_v49, %s1540_s12  ;;  %v1418_v50 = vpop.f32.mrb[41].mxu0 }
 0x5f2   : > { %v1097_v51 = vpop.f32.mrb[42].mxu0 }
 0x5f3   : > { %1119 = vrot.lane.b32.xlu0 %v1097_v51, %s1540_s12  ;;  %v1419_v56 = vpop.f32.mrb[43].mxu0 }
 0x5f8   : > { %v1102_v59 = vpop.f32.mrb[44].mxu0 }
 0x5f9   : > { %1121 = vrot.lane.b32.xlu1 %v1102_v59, %s1540_s12  ;;  %v1422_v47 = vpop.f32.mrb[45].mxu0 }
 0x5fa   : > { %v1105_v60 = vpop.f32.mrb[46].mxu0 }
 0x5fb   : > { %v1423_v63 = vpop.f32.mrb[47].mxu0 }
 0x612   : > { %v614_v45 = vpop.permute.xlu1 %613 }
 0x613   : > { %627 = vst.msk [vmem:[%s1744_s18 + $0x10] sm:$0xff] %vm624_vm6, %v614_v45 }
 0x614   : > { %v616_v4 = vpop.permute.xlu0 %615 }
 0x615   : > { %628 = vst.msk [vmem:[%s1744_s18 + $0x18] sm:$0xff] %vm624_vm6, %v616_v4 }
 0x61a   : > { %v618_v52 = vpop.permute.xlu1 %617 }
 0x61b   : > { %630 = vst.msk [vmem:[%s1744_s18 + $0x20] sm:$0x3] %vm629_vm7, %v618_v52 }
 0x622   : > { %v862_v41 = vpop.permute.xlu0 %861 }
 0x623   : > { %877 = vst.msk [vmem:[%s1744_s18] sm:$0xff] %vm876_vm8, %v862_v41 }
 0x624   : > { %v864_v5 = vpop.permute.xlu1 %863 }
 0x625   : > { %878 = vst.msk [vmem:[%s1744_s18 + $0x8] sm:$0xff] %vm876_vm8, %v864_v5 }
 0x62a   : > { %v866_v6 = vpop.permute.xlu0 %865 }
 0x62b   : > { %879 = vst.msk [vmem:[%s1744_s18 + $0x10] sm:$0xff] %vm876_vm8, %v866_v6 }
 0x62c   : > { %v868_v7 = vpop.permute.xlu1 %867 }
 0x62d   : > { %880 = vst.msk [vmem:[%s1744_s18 + $0x18] sm:$0xff] %vm876_vm8, %v868_v7 }
 0x632   : > { %v870_v62 = vpop.permute.xlu0 %869 }
 0x633   : > { %882 = vst.msk [vmem:[%s1744_s18 + $0x20] sm:$0x3] %vm881_vm9, %v870_v62 }
 0x65b   : > { %v1114_v2 = vpop.permute.xlu1 %1113 }
 0x65c   : > { %1129 = vst.msk [vmem:[%s1744_s18] sm:$0xff] %vm1128_vm10, %v1114_v2 }
 0x65d   : > { %v1116_v9 = vpop.permute.xlu0 %1115 }
 0x65e   : > { %1130 = vst.msk [vmem:[%s1744_s18 + $0x8] sm:$0xff] %vm1128_vm10, %v1116_v9 }
 0x663   : > { %v1118_v10 = vpop.permute.xlu1 %1117 }
 0x664   : > { %1131 = vst.msk [vmem:[%s1744_s18 + $0x10] sm:$0xff] %vm1128_vm10, %v1118_v10 }
 0x665   : > { %v1120_v8 = vpop.permute.xlu0 %1119 }
 0x666   : > { %1132 = vst.msk [vmem:[%s1744_s18 + $0x18] sm:$0xff] %vm1128_vm10, %v1120_v8 }
 0x66b   : > { %v1122_v11 = vpop.permute.xlu1 %1121 }
 0x66c   : > { %1134 = vst.msk [vmem:[%s1744_s18 + $0x20] sm:$0x3] %vm1133_vm11, %v1122_v11 }
 0x66d PF: > { %s11_s6 = sadd.s32 1, %s1536_s6  }
 0x66e   : > { %p8_p4 = scmp.ge.s32.totalorder %s11_s6, 4  }
 0x670   :  { %10 = sbr.rel (!%p8_p4) target bundleno = 1 (0x1), region = 54 }

// kernel: jvp__.28
= control target key start
LH: loop header
LB: loop body
LE: loop exit
PB: predicated region body
PF: predicated region fallthrough
CT: control target
= control target key end

     0   :  { %s1294_s9 = smov 0   ;;  %s1296_s10 = smov 0   ;;  %s1609_s0 = inlined_call_operand.vmem [shape: bf16[72,128], index: 0, kind: input, shape index: {}]   ;;  %s1610_s1 = inlined_call_operand.vmem [shape: bf16[128,1024], index: 1, kind: input, shape index: {}]   ;;  %s1611_s2 = inlined_call_operand.vmem [shape: f32[72,1024], index: 2, kind: output, shape index: {}]  }
   0x1   :  { %s1298_s11 = smov 0   ;;  %s1300_s12 = smov 0  }
   0x2   :  { %s1302_s13 = smov 0  }
   0x3 LB: > { %s27_s14 = sadd.s32 1, %s1272_s12  ;;  %s1090_s15 = sadd.s32 4294967295, %s1276_s13   ;;  %s1276_s13 = sphi %s1302_s13, %s12_s13   ;;  %s1272_s12 = sphi %s1300_s12, %s1616_s12   ;;  %s1268_s11 = sphi %s1298_s11, %s1615_s11   ;;  %s1264_s10 = sphi %s1296_s10, %s1614_s10   ;;  %s1260_s9 = sphi %s1294_s9, %s1613_s9  }
   0x4   : > { %p29_p0 = scmp.ge.s32.totalorder %s27_s14, 2  ;;  %p75_p1 = scmp.ne.s32.totalorder %s1264_s10, %s1260_s9 }
   0x5   : > { %p76_p2 = scmp.eq.s32.totalorder %s1276_s13, 0  ;;  %p107_p4 = scmp.eq.s32.totalorder %s1090_s15, 1 }
   0x6   : > { %s1618_s14 = smov (%p29_p0, %s27_s14), 0  ;;  %s68_s17 = sadd.s32 1, %s1264_s10 }
   0x7   : > { %p77_p3 = por %p76_p2, %p75_p1  ;;  %s64_s16 = ssub.s32 %s1272_s12, %s1618_s14 }
   0x8   : > { %p66_p5 = scmp.eq.s32.totalorder %s64_s16, 0  ;;  %p1329_p6 = por %p107_p4, %p75_p1 }
   0x9   : > { %p1094_p7 = scmp.ge.s32.totalorder %s1276_s13, 2 }
   0xa   : > { %s1334_s19 = scalar_select %p66_p5, %s1264_s10, %s68_s17  }
   0xb   : > { %141 = sbr.rel (%p1094_p7) target bundleno = 38 (0x26), region = 20 }
  0x12   : > { %144 = sbr.rel (!%p77_p3) target bundleno = 38 (0x26), region = 24  ;;  %s146_s20 = sand.u32 (%p77_p3), 1, %s1264_s10  }
  0x13   : > { %s1141_s21 = sshll.u32 (%p77_p3), %s1272_s12, 4  ;;  %s1095_s22 = sshll.u32 (%p77_p3), %s146_s20, 8 }
  0x14   : > { %s1342_s25 = scalar_lea.vmem (%p77_p3), %s1610_s1, %s1141_s21  ;;  %s1347_s26 = scalar_lea.vmem (%p77_p3), [#allocation3], %s1095_s22 }
  0x15   : > { %v167_v0 = vld [vmem:[%s1342_s25] sm:$0xff] (%p77_p3)  ;;  %v169_v1 = vld [vmem:[%s1342_s25 + $0x8] sm:$0xff] (%p77_p3) }
  0x16   : > { %v171_v2 = vld [vmem:[%s1342_s25 + $0x20] sm:$0xff] (%p77_p3)  ;;  %168 = vst [vmem:[%s1347_s26] sm:$0xff] (%p77_p3), %v167_v0  ;;  %170 = vst [vmem:[%s1347_s26 + $0x8] sm:$0xff] (%p77_p3), %v169_v1  ;;  %v173_v3 = vld [vmem:[%s1342_s25 + $0x28] sm:$0xff] (%p77_p3) }
  0x17   : > { %172 = vst [vmem:[%s1347_s26 + $0x10] sm:$0xff] (%p77_p3), %v171_v2  ;;  %v175_v4 = vld [vmem:[%s1342_s25 + $0x40] sm:$0xff] (%p77_p3)  ;;  %v177_v5 = vld [vmem:[%s1342_s25 + $0x48] sm:$0xff] (%p77_p3)  ;;  %174 = vst [vmem:[%s1347_s26 + $0x18] sm:$0xff] (%p77_p3), %v173_v3 }
  0x18   : > { %176 = vst [vmem:[%s1347_s26 + $0x20] sm:$0xff] (%p77_p3), %v175_v4  ;;  %178 = vst [vmem:[%s1347_s26 + $0x28] sm:$0xff] (%p77_p3), %v177_v5  ;;  %v179_v6 = vld [vmem:[%s1342_s25 + $0x60] sm:$0xff] (%p77_p3)  ;;  %v181_v7 = vld [vmem:[%s1342_s25 + $0x68] sm:$0xff] (%p77_p3) }
  0x19   : > { %v183_v8 = vld [vmem:[%s1342_s25 + $0x80] sm:$0xff]  ;;  %180 = vst [vmem:[%s1347_s26 + $0x30] sm:$0xff] %v179_v6  ;;  %182 = vst [vmem:[%s1347_s26 + $0x38] sm:$0xff] %v181_v7  ;;  %v185_v9 = vld [vmem:[%s1342_s25 + $0x88] sm:$0xff] }
  0x1a   : > { %184 = vst [vmem:[%s1347_s26 + $0x40] sm:$0xff] %v183_v8  ;;  %v187_v10 = vld [vmem:[%s1342_s25 + $0xa0] sm:$0xff]  ;;  %v189_v11 = vld [vmem:[%s1342_s25 + $0xa8] sm:$0xff]  ;;  %186 = vst [vmem:[%s1347_s26 + $0x48] sm:$0xff] %v185_v9 }
  0x1b   : > { %188 = vst [vmem:[%s1347_s26 + $0x50] sm:$0xff] %v187_v10  ;;  %190 = vst [vmem:[%s1347_s26 + $0x58] sm:$0xff] %v189_v11  ;;  %v191_v12 = vld [vmem:[%s1342_s25 + $0xc0] sm:$0xff]  ;;  %v193_v13 = vld [vmem:[%s1342_s25 + $0xc8] sm:$0xff] }
  0x1c   : > { %v195_v14 = vld [vmem:[%s1342_s25 + $0xe0] sm:$0xff]  ;;  %192 = vst [vmem:[%s1347_s26 + $0x60] sm:$0xff] %v191_v12  ;;  %194 = vst [vmem:[%s1347_s26 + $0x68] sm:$0xff] %v193_v13  ;;  %v197_v15 = vld [vmem:[%s1342_s25 + $0xe8] sm:$0xff] }
  0x1d   : > { %196 = vst [vmem:[%s1347_s26 + $0x70] sm:$0xff] %v195_v14  ;;  %v199_v16 = vld [vmem:[%s1342_s25 + $0x100] sm:$0xff]  ;;  %v201_v17 = vld [vmem:[%s1342_s25 + $0x108] sm:$0xff]  ;;  %198 = vst [vmem:[%s1347_s26 + $0x78] sm:$0xff] %v197_v15 }
  0x1e   : > { %200 = vst [vmem:[%s1347_s26 + $0x80] sm:$0xff] %v199_v16  ;;  %202 = vst [vmem:[%s1347_s26 + $0x88] sm:$0xff] %v201_v17  ;;  %v203_v18 = vld [vmem:[%s1342_s25 + $0x120] sm:$0xff]  ;;  %v205_v19 = vld [vmem:[%s1342_s25 + $0x128] sm:$0xff] }
  0x1f   : > { %v207_v20 = vld [vmem:[%s1342_s25 + $0x140] sm:$0xff]  ;;  %204 = vst [vmem:[%s1347_s26 + $0x90] sm:$0xff] %v203_v18  ;;  %206 = vst [vmem:[%s1347_s26 + $0x98] sm:$0xff] %v205_v19  ;;  %v209_v21 = vld [vmem:[%s1342_s25 + $0x148] sm:$0xff] }
  0x20   : > { %208 = vst [vmem:[%s1347_s26 + $0xa0] sm:$0xff] %v207_v20  ;;  %v211_v22 = vld [vmem:[%s1342_s25 + $0x160] sm:$0xff]  ;;  %v213_v23 = vld [vmem:[%s1342_s25 + $0x168] sm:$0xff]  ;;  %210 = vst [vmem:[%s1347_s26 + $0xa8] sm:$0xff] %v209_v21 }
  0x21   : > { %212 = vst [vmem:[%s1347_s26 + $0xb0] sm:$0xff] %v211_v22  ;;  %214 = vst [vmem:[%s1347_s26 + $0xb8] sm:$0xff] %v213_v23  ;;  %v215_v24 = vld [vmem:[%s1342_s25 + $0x180] sm:$0xff]  ;;  %v217_v25 = vld [vmem:[%s1342_s25 + $0x188] sm:$0xff] }
  0x22   : > { %v219_v26 = vld [vmem:[%s1342_s25 + $0x1a0] sm:$0xff]  ;;  %216 = vst [vmem:[%s1347_s26 + $0xc0] sm:$0xff] %v215_v24  ;;  %218 = vst [vmem:[%s1347_s26 + $0xc8] sm:$0xff] %v217_v25  ;;  %v221_v27 = vld [vmem:[%s1342_s25 + $0x1a8] sm:$0xff] }
  0x23   : > { %220 = vst [vmem:[%s1347_s26 + $0xd0] sm:$0xff] %v219_v26  ;;  %v223_v28 = vld [vmem:[%s1342_s25 + $0x1c0] sm:$0xff]  ;;  %v225_v29 = vld [vmem:[%s1342_s25 + $0x1c8] sm:$0xff]  ;;  %222 = vst [vmem:[%s1347_s26 + $0xd8] sm:$0xff] %v221_v27 }
  0x24   : > { %224 = vst [vmem:[%s1347_s26 + $0xe0] sm:$0xff] %v223_v28  ;;  %226 = vst [vmem:[%s1347_s26 + $0xe8] sm:$0xff] %v225_v29  ;;  %v227_v30 = vld [vmem:[%s1342_s25 + $0x1e0] sm:$0xff]  ;;  %v229_v31 = vld [vmem:[%s1342_s25 + $0x1e8] sm:$0xff] }
  0x25   : > { %228 = vst [vmem:[%s1347_s26 + $0xf0] sm:$0xff] %v227_v30  ;;  %230 = vst [vmem:[%s1347_s26 + $0xf8] sm:$0xff] %v229_v31 }
  0x26 PF: > { %p1098_p8 = scmp.ge.s32.totalorder %s1276_s13, 1  ;;  %p235_p9 = scmp.lt.s32.totalorder %s1276_s13, 3 }
  0x28   : > { %p236_p10 = pnand %p1098_p8, %p235_p9 }
  0x29   : > { %s242_s27 = sand.u32 (!%p236_p10), 1, %s1260_s9   ;;  %v1278_v32 = vmov (!%p236_p10), 0   ;;  %v1233_v1 = vld [vmem:[%s1609_s0] sm:$0xff] (!%p236_p10)   ;;  %v1234_v2 = vld [vmem:[%s1609_s0 + $0x8] sm:$0xff] (!%p236_p10)   ;;  %v1235_v3 = vld [vmem:[%s1609_s0 + $0x10] sm:$0xff] (!%p236_p10)  }
  0x2a   : > { %239 = sbr.rel (%p236_p10) target bundleno = 331 (0x14b), region = 47  ;;  %s1099_s28 = sshll.u32 (!%p236_p10), %s242_s27, 8  ;;  %621 = vmatprep.mubr.bf16.mxu0 (!%p236_p10), %v1278_v32  ;;  %702 = vmatprep.mubr.bf16.mxu1 (!%p236_p10), %v1278_v32  ;;  %v1236_v4 = vld [vmem:[%s1609_s0 + $0x18] sm:$0xff] (!%p236_p10)   ;;  %v1237_v5 = vld [vmem:[%s1609_s0 + $0x20] ss:$0 sps:$4 sm:$0xff] (!%p236_p10)  }
  0x2b   : > { %s1417_s29 = scalar_lea.vmem (!%p236_p10), [#allocation3], %s1099_s28  ;;  %s1143_s20 = smul.u32 (!%p236_p10), 288, %s242_s27 }
  0x2c   : > { %v1185_v33 = vld [vmem:[%s1417_s29 + $0x4] ss:$16 sps:$4 sm:$0xff] (!%p236_p10)   ;;  %v1187_v34 = vld [vmem:[%s1417_s29 + $0xc] ss:$16 sps:$4 sm:$0xff] (!%p236_p10)   ;;  %v1189_v35 = vld [vmem:[%s1417_s29] ss:$16 sps:$4 sm:$0xff] (!%p236_p10)  }
  0x2d   : > { %589 = vmatprep.subr.bf16.mxu0 (!%p236_p10), %v1185_v33  ;;  %v1190_v36 = vld [vmem:[%s1417_s29 + $0x8] ss:$16 sps:$4 sm:$0xff] (!%p236_p10)   ;;  %670 = vmatprep.subr.bf16.mxu1 (!%p236_p10), %v1187_v34  ;;  %v1191_v37 = vld [vmem:[%s1417_s29 + $0x24] ss:$16 sps:$4 sm:$0xff] (!%p236_p10)   ;;  %v1193_v38 = vld [vmem:[%s1417_s29 + $0x2c] ss:$16 sps:$4 sm:$0xff] (!%p236_p10)  }
  0x2e   : > { %590 = vmatpush1.bf16.msra.mxu0 (!%p236_p10), %v1189_v35  ;;  %671 = vmatpush1.bf16.msra.mxu1 (!%p236_p10), %v1190_v36  ;;  %v1195_v39 = vld [vmem:[%s1417_s29 + $0x20] ss:$16 sps:$4 sm:$0xff] (!%p236_p10)   ;;  %v1196_v40 = vld [vmem:[%s1417_s29 + $0x28] ss:$16 sps:$4 sm:$0xff] (!%p236_p10)   ;;  %v1197_v41 = vld [vmem:[%s1417_s29 + $0x44] ss:$16 sps:$4 sm:$0xff] (!%p236_p10)  }
  0x2f   : > { %591 = vmatprep.subr.bf16.mxu0 (!%p236_p10), %v1191_v37  ;;  %672 = vmatprep.subr.bf16.mxu1 (!%p236_p10), %v1193_v38  ;;  %v1199_v42 = vld [vmem:[%s1417_s29 + $0x4c] ss:$16 sps:$4 sm:$0xff] (!%p236_p10)   ;;  %v1201_v43 = vld [vmem:[%s1417_s29 + $0x40] ss:$16 sps:$4 sm:$0xff] (!%p236_p10)   ;;  %v1202_v44 = vld [vmem:[%s1417_s29 + $0x48] ss:$16 sps:$4 sm:$0xff] (!%p236_p10)  }
  0x30   : > { %v1203_v45 = vld [vmem:[%s1417_s29 + $0x64] ss:$16 sps:$4 sm:$0xff] (!%p236_p10)   ;;  %v1205_v46 = vld [vmem:[%s1417_s29 + $0x6c] ss:$16 sps:$4 sm:$0xff] (!%p236_p10)   ;;  %v1207_v47 = vld [vmem:[%s1417_s29 + $0x60] ss:$16 sps:$4 sm:$0xff] (!%p236_p10)  }
  0x31   : > { %v1208_v48 = vld [vmem:[%s1417_s29 + $0x68] ss:$16 sps:$4 sm:$0xff]   ;;  %v1209_v49 = vld [vmem:[%s1417_s29 + $0x84] ss:$16 sps:$4 sm:$0xff]   ;;  %v1211_v50 = vld [vmem:[%s1417_s29 + $0x8c] ss:$16 sps:$4 sm:$0xff]  }
  0x32   : > { %592 = vmatpush1.bf16.msra.mxu0 %v1195_v39  ;;  %673 = vmatpush1.bf16.msra.mxu1 %v1196_v40  ;;  %v1213_v51 = vld [vmem:[%s1417_s29 + $0x80] ss:$16 sps:$4 sm:$0xff]   ;;  %v1214_v52 = vld [vmem:[%s1417_s29 + $0x88] ss:$16 sps:$4 sm:$0xff]   ;;  %v1215_v53 = vld [vmem:[%s1417_s29 + $0xa4] ss:$16 sps:$4 sm:$0xff]  }
  0x33   : > { %593 = vmatprep.subr.bf16.mxu0 %v1197_v41  ;;  %674 = vmatprep.subr.bf16.mxu1 %v1199_v42  ;;  %v1217_v54 = vld [vmem:[%s1417_s29 + $0xac] ss:$16 sps:$4 sm:$0xff]   ;;  %v1219_v55 = vld [vmem:[%s1417_s29 + $0xa0] ss:$16 sps:$4 sm:$0xff]   ;;  %v1220_v56 = vld [vmem:[%s1417_s29 + $0xa8] ss:$16 sps:$4 sm:$0xff]  }
  0x34   : > { %v1221_v57 = vld [vmem:[%s1417_s29 + $0xc4] ss:$16 sps:$4 sm:$0xff]   ;;  %v1223_v58 = vld [vmem:[%s1417_s29 + $0xcc] ss:$16 sps:$4 sm:$0xff]   ;;  %v1225_v59 = vld [vmem:[%s1417_s29 + $0xc0] ss:$16 sps:$4 sm:$0xff]  }
  0x35   : > { %v1226_v60 = vld [vmem:[%s1417_s29 + $0xc8] ss:$16 sps:$4 sm:$0xff]   ;;  %v1227_v61 = vld [vmem:[%s1417_s29 + $0xe4] ss:$16 sps:$4 sm:$0xff]   ;;  %v1229_v62 = vld [vmem:[%s1417_s29 + $0xec] ss:$16 sps:$4 sm:$0xff]  }
  0x36   : > { %594 = vmatpush1.bf16.msra.mxu0 %v1201_v43  ;;  %675 = vmatpush1.bf16.msra.mxu1 %v1202_v44  ;;  %v1231_v63 = vld [vmem:[%s1417_s29 + $0xe0] ss:$16 sps:$4 sm:$0xff]   ;;  %v1232_v0 = vld [vmem:[%s1417_s29 + $0xe8] ss:$16 sps:$4 sm:$0xff]   ;;  %s1476_s21 = scalar_lea.vmem [#allocation4], %s1143_s20  ;;  %s1142_s9 = sshll.u32 (%p1329_p6), %s1268_s11, 5 }
  0x37   : > { %595 = vmatprep.subr.bf16.mxu0 %v1203_v45  ;;  %676 = vmatprep.subr.bf16.mxu1 %v1205_v46  ;;  %s1523_s24 = scalar_lea.vmem (%p1329_p6), %s1611_s2, %s1142_s9 }
  0x3a   : > { %596 = vmatpush1.bf16.msra.mxu0 %v1207_v47  ;;  %677 = vmatpush1.bf16.msra.mxu1 %v1208_v48 }
  0x3b   : > { %597 = vmatprep.subr.bf16.mxu0 %v1209_v49  ;;  %678 = vmatprep.subr.bf16.mxu1 %v1211_v50 }
  0x3e   : > { %598 = vmatpush1.bf16.msra.mxu0 %v1213_v51  ;;  %679 = vmatpush1.bf16.msra.mxu1 %v1214_v52 }
  0x3f   : > { %599 = vmatprep.subr.bf16.mxu0 %v1215_v53  ;;  %680 = vmatprep.subr.bf16.mxu1 %v1217_v54 }
  0x42   : > { %600 = vmatpush1.bf16.msra.mxu0 %v1219_v55  ;;  %681 = vmatpush1.bf16.msra.mxu1 %v1220_v56 }
  0x43   : > { %601 = vmatprep.subr.bf16.mxu0 %v1221_v57  ;;  %682 = vmatprep.subr.bf16.mxu1 %v1223_v58 }
  0x46   : > { %602 = vmatpush1.bf16.msra.mxu0 %v1225_v59  ;;  %683 = vmatpush1.bf16.msra.mxu1 %v1226_v60 }
  0x47   : > { %603 = vmatprep.subr.bf16.mxu0 %v1227_v61  ;;  %684 = vmatprep.subr.bf16.mxu1 %v1229_v62 }
  0x4a   : > { %604 = vmatpush1.bf16.msra.mxu0 %v1231_v63  ;;  %685 = vmatpush1.bf16.msra.mxu1 %v1232_v0 }
  0x4d   : > { %622 = vmatmul.mubr.bf16.vlgmr.msra.gmra.mrb[0].mxu0 %v1233_v1  ;;  %703 = vmatmul.mubr.bf16.vlgmr.msra.gmra.mrb[0].mxu1 %v1233_v1 }
  0x4e   : > { %631 = vmatprep.mubr.bf16.mxu0 %v1278_v32  ;;  %712 = vmatprep.mubr.bf16.mxu1 %v1278_v32 }
  0x55   : > { %632 = vmatmul.mubr.bf16.gmra.mrb[4].mxu0 %v1234_v2  ;;  %713 = vmatmul.mubr.bf16.gmra.mrb[4].mxu1 %v1234_v2 }
  0x56   : > { %641 = vmatprep.mubr.bf16.mxu0 %v1278_v32  ;;  %722 = vmatprep.mubr.bf16.mxu1 %v1278_v32 }
  0x5d   : > { %642 = vmatmul.mubr.bf16.gmra.mrb[8].mxu0 %v1235_v3  ;;  %723 = vmatmul.mubr.bf16.gmra.mrb[8].mxu1 %v1235_v3 }
  0x5e   : > { %651 = vmatprep.mubr.bf16.mxu0 %v1278_v32  ;;  %732 = vmatprep.mubr.bf16.mxu1 %v1278_v32 }
  0x65   : > { %652 = vmatmul.mubr.bf16.gmra.mrb[12].mxu0 %v1236_v4  ;;  %733 = vmatmul.mubr.bf16.gmra.mrb[12].mxu1 %v1236_v4 }
  0x66   : > { %661 = vmatprep.mubr.bf16.mxu0 %v1278_v32  ;;  %742 = vmatprep.mubr.bf16.mxu1 %v1278_v32 }
  0x6d   : > { %662 = vmatmul.mubr.bf16.gmra.mrb[16].mxu0 %v1237_v5  ;;  %743 = vmatmul.mubr.bf16.gmra.mrb[16].mxu1 %v1237_v5 }
 0x120   : > { %v623_v6 = vpop.f32.mrb[0].mxu0  ;;  %v704_v7 = vpop.f32.mrb[0].mxu1 }
 0x121   : > { %862 = vst [vmem:[%s1476_s21] sm:$0xff] %v623_v6  ;;  %864 = vst [vmem:[%s1476_s21 + $0x10] sm:$0xff] %v704_v7  ;;  %v625_v8 = vpop.f32.mrb[1].mxu0  ;;  %v706_v9 = vpop.f32.mrb[1].mxu1 }
 0x122   : > { %863 = vst [vmem:[%s1476_s21 + $0x8] sm:$0xff] %v625_v8  ;;  %865 = vst [vmem:[%s1476_s21 + $0x18] sm:$0xff] %v706_v9  ;;  %v627_v10 = vpop.f32.mrb[2].mxu0  ;;  %v708_v11 = vpop.f32.mrb[2].mxu1 }
 0x123   : > { %866 = vst [vmem:[%s1476_s21 + $0x20] sm:$0xff] %v627_v10  ;;  %868 = vst [vmem:[%s1476_s21 + $0x30] sm:$0xff] %v708_v11  ;;  %v629_v12 = vpop.f32.mrb[3].mxu0  ;;  %v710_v13 = vpop.f32.mrb[3].mxu1 }
 0x124   : > { %867 = vst [vmem:[%s1476_s21 + $0x28] sm:$0xff] %v629_v12  ;;  %869 = vst [vmem:[%s1476_s21 + $0x38] sm:$0xff] %v710_v13 }
 0x128   : > { %v633_v14 = vpop.f32.mrb[4].mxu0  ;;  %v714_v15 = vpop.f32.mrb[4].mxu1  ;;  %v923_v46 = vld [vmem:[%s1476_s21] sm:$0xff] (%p1329_p6)  ;;  %v927_v48 = vld [vmem:[%s1476_s21 + $0x10] sm:$0xff] (%p1329_p6) }
 0x129   : > { %870 = vst [vmem:[%s1476_s21 + $0x40] sm:$0xff] %v633_v14  ;;  %872 = vst [vmem:[%s1476_s21 + $0x50] sm:$0xff] %v714_v15  ;;  %v635_v16 = vpop.f32.mrb[5].mxu0  ;;  %v716_v17 = vpop.f32.mrb[5].mxu1  ;;  %v925_v47 = vld [vmem:[%s1476_s21 + $0x8] sm:$0xff] (%p1329_p6)  ;;  %v929_v49 = vld [vmem:[%s1476_s21 + $0x18] sm:$0xff] (%p1329_p6) }
 0x12a   : > { %871 = vst [vmem:[%s1476_s21 + $0x48] sm:$0xff] %v635_v16  ;;  %873 = vst [vmem:[%s1476_s21 + $0x58] sm:$0xff] %v716_v17  ;;  %v637_v18 = vpop.f32.mrb[6].mxu0  ;;  %v718_v19 = vpop.f32.mrb[6].mxu1  ;;  %v931_v50 = vld [vmem:[%s1476_s21 + $0x20] sm:$0xff] (%p1329_p6)  ;;  %v935_v52 = vld [vmem:[%s1476_s21 + $0x30] sm:$0xff] (%p1329_p6) }
 0x12b   : > { %874 = vst [vmem:[%s1476_s21 + $0x60] sm:$0xff] %v637_v18  ;;  %876 = vst [vmem:[%s1476_s21 + $0x70] sm:$0xff] %v718_v19  ;;  %v639_v20 = vpop.f32.mrb[7].mxu0  ;;  %v720_v21 = vpop.f32.mrb[7].mxu1  ;;  %v933_v51 = vld [vmem:[%s1476_s21 + $0x28] sm:$0xff] (%p1329_p6)  ;;  %v937_v53 = vld [vmem:[%s1476_s21 + $0x38] sm:$0xff] (%p1329_p6) }
 0x12c   : > { %875 = vst [vmem:[%s1476_s21 + $0x68] sm:$0xff] %v639_v20  ;;  %877 = vst [vmem:[%s1476_s21 + $0x78] sm:$0xff] %v720_v21 }
 0x12d   : > { %924 = vst [vmem:[%s1523_s24] sm:$0xff] (%p1329_p6), %v923_v46  ;;  %926 = vst [vmem:[%s1523_s24 + $0x8] sm:$0xff] (%p1329_p6), %v925_v47 }
 0x12e   : > { %928 = vst [vmem:[%s1523_s24 + $0x10] sm:$0xff] (%p1329_p6), %v927_v48  ;;  %930 = vst [vmem:[%s1523_s24 + $0x18] sm:$0xff] (%p1329_p6), %v929_v49 }
 0x12f   : > { %932 = vst [vmem:[%s1523_s24 + $0x40] sm:$0xff] (%p1329_p6), %v931_v50  ;;  %934 = vst [vmem:[%s1523_s24 + $0x48] sm:$0xff] (%p1329_p6), %v933_v51 }
 0x130   : > { %v643_v22 = vpop.f32.mrb[8].mxu0  ;;  %v724_v23 = vpop.f32.mrb[8].mxu1  ;;  %v939_v54 = vld [vmem:[%s1476_s21 + $0x40] sm:$0xff] (%p1329_p6)  ;;  %936 = vst [vmem:[%s1523_s24 + $0x50] sm:$0xff] (%p1329_p6), %v935_v52  ;;  %938 = vst [vmem:[%s1523_s24 + $0x58] sm:$0xff] (%p1329_p6), %v937_v53  ;;  %v943_v56 = vld [vmem:[%s1476_s21 + $0x50] sm:$0xff] (%p1329_p6) }
 0x131   : > { %878 = vst [vmem:[%s1476_s21 + $0x80] sm:$0xff] %v643_v22  ;;  %880 = vst [vmem:[%s1476_s21 + $0x90] sm:$0xff] %v724_v23  ;;  %v645_v24 = vpop.f32.mrb[9].mxu0  ;;  %v726_v25 = vpop.f32.mrb[9].mxu1  ;;  %v941_v55 = vld [vmem:[%s1476_s21 + $0x48] sm:$0xff] (%p1329_p6)  ;;  %v945_v57 = vld [vmem:[%s1476_s21 + $0x58] sm:$0xff] (%p1329_p6) }
 0x132   : > { %879 = vst [vmem:[%s1476_s21 + $0x88] sm:$0xff] %v645_v24  ;;  %881 = vst [vmem:[%s1476_s21 + $0x98] sm:$0xff] %v726_v25  ;;  %v647_v26 = vpop.f32.mrb[10].mxu0  ;;  %v728_v27 = vpop.f32.mrb[10].mxu1  ;;  %v947_v58 = vld [vmem:[%s1476_s21 + $0x60] sm:$0xff] (%p1329_p6)  ;;  %v951_v60 = vld [vmem:[%s1476_s21 + $0x70] sm:$0xff] (%p1329_p6) }
 0x133   : > { %882 = vst [vmem:[%s1476_s21 + $0xa0] sm:$0xff] %v647_v26  ;;  %884 = vst [vmem:[%s1476_s21 + $0xb0] sm:$0xff] %v728_v27  ;;  %v649_v28 = vpop.f32.mrb[11].mxu0  ;;  %v730_v29 = vpop.f32.mrb[11].mxu1  ;;  %v949_v59 = vld [vmem:[%s1476_s21 + $0x68] sm:$0xff] (%p1329_p6)  ;;  %v953_v61 = vld [vmem:[%s1476_s21 + $0x78] sm:$0xff] (%p1329_p6) }
 0x134   : > { %883 = vst [vmem:[%s1476_s21 + $0xa8] sm:$0xff] %v649_v28  ;;  %885 = vst [vmem:[%s1476_s21 + $0xb8] sm:$0xff] %v730_v29 }
 0x135   : > { %940 = vst [vmem:[%s1523_s24 + $0x80] sm:$0xff] (%p1329_p6), %v939_v54  ;;  %942 = vst [vmem:[%s1523_s24 + $0x88] sm:$0xff] (%p1329_p6), %v941_v55 }
 0x136   : > { %944 = vst [vmem:[%s1523_s24 + $0x90] sm:$0xff] (%p1329_p6), %v943_v56  ;;  %946 = vst [vmem:[%s1523_s24 + $0x98] sm:$0xff] (%p1329_p6), %v945_v57 }
 0x137   : > { %948 = vst [vmem:[%s1523_s24 + $0xc0] sm:$0xff] (%p1329_p6), %v947_v58  ;;  %950 = vst [vmem:[%s1523_s24 + $0xc8] sm:$0xff] (%p1329_p6), %v949_v59 }
 0x138   : > { %v653_v30 = vpop.f32.mrb[12].mxu0  ;;  %v734_v31 = vpop.f32.mrb[12].mxu1  ;;  %952 = vst [vmem:[%s1523_s24 + $0xd0] sm:$0xff] (%p1329_p6), %v951_v60  ;;  %v955_v62 = vld [vmem:[%s1476_s21 + $0x80] sm:$0xff] (%p1329_p6)  ;;  %954 = vst [vmem:[%s1523_s24 + $0xd8] sm:$0xff] (%p1329_p6), %v953_v61  ;;  %v959_v0 = vld [vmem:[%s1476_s21 + $0x90] sm:$0xff] (%p1329_p6) }
 0x139   : > { %886 = vst [vmem:[%s1476_s21 + $0xc0] sm:$0xff] %v653_v30  ;;  %888 = vst [vmem:[%s1476_s21 + $0xd0] sm:$0xff] %v734_v31  ;;  %v655_v32 = vpop.f32.mrb[13].mxu0  ;;  %v736_v33 = vpop.f32.mrb[13].mxu1  ;;  %v957_v63 = vld [vmem:[%s1476_s21 + $0x88] sm:$0xff] (%p1329_p6)  ;;  %v961_v1 = vld [vmem:[%s1476_s21 + $0x98] sm:$0xff] (%p1329_p6) }
 0x13a   : > { %887 = vst [vmem:[%s1476_s21 + $0xc8] sm:$0xff] %v655_v32  ;;  %889 = vst [vmem:[%s1476_s21 + $0xd8] sm:$0xff] %v736_v33  ;;  %v657_v34 = vpop.f32.mrb[14].mxu0  ;;  %v738_v35 = vpop.f32.mrb[14].mxu1  ;;  %v963_v2 = vld [vmem:[%s1476_s21 + $0xa0] sm:$0xff] (%p1329_p6)  ;;  %v967_v4 = vld [vmem:[%s1476_s21 + $0xb0] sm:$0xff] (%p1329_p6) }
 0x13b   : > { %890 = vst [vmem:[%s1476_s21 + $0xe0] sm:$0xff] %v657_v34  ;;  %892 = vst [vmem:[%s1476_s21 + $0xf0] sm:$0xff] %v738_v35  ;;  %v659_v36 = vpop.f32.mrb[15].mxu0  ;;  %v740_v37 = vpop.f32.mrb[15].mxu1  ;;  %v965_v3 = vld [vmem:[%s1476_s21 + $0xa8] sm:$0xff] (%p1329_p6)  ;;  %v969_v5 = vld [vmem:[%s1476_s21 + $0xb8] sm:$0xff] (%p1329_p6) }
 0x13c   : > { %891 = vst [vmem:[%s1476_s21 + $0xe8] sm:$0xff] %v659_v36  ;;  %893 = vst [vmem:[%s1476_s21 + $0xf8] sm:$0xff] %v740_v37 }
 0x13d   : > { %904 = sbr.rel (!%p1329_p6) target bundleno = 331 (0x14b), region = 63  ;;  %956 = vst [vmem:[%s1523_s24 + $0x100] sm:$0xff] (%p1329_p6), %v955_v62  ;;  %958 = vst [vmem:[%s1523_s24 + $0x108] sm:$0xff] (%p1329_p6), %v957_v63 }
 0x13e   : > { %960 = vst [vmem:[%s1523_s24 + $0x110] sm:$0xff] (%p1329_p6), %v959_v0  ;;  %962 = vst [vmem:[%s1523_s24 + $0x118] sm:$0xff] (%p1329_p6), %v961_v1 }
 0x13f   : > { %964 = vst [vmem:[%s1523_s24 + $0x140] sm:$0xff] (%p1329_p6), %v963_v2  ;;  %966 = vst [vmem:[%s1523_s24 + $0x148] sm:$0xff] (%p1329_p6), %v965_v3 }
 0x140   : > { %v663_v38 = vpop.f32.mrb[16].mxu0  ;;  %v744_v39 = vpop.f32.mrb[16].mxu1  ;;  %968 = vst [vmem:[%s1523_s24 + $0x150] sm:$0xff] (%p1329_p6), %v967_v4  ;;  %970 = vst [vmem:[%s1523_s24 + $0x158] sm:$0xff] (%p1329_p6), %v969_v5  ;;  %v971_v6 = vld [vmem:[%s1476_s21 + $0xc0] sm:$0xff] (%p1329_p6)  ;;  %v975_v8 = vld [vmem:[%s1476_s21 + $0xd0] sm:$0xff] (%p1329_p6) }
 0x141   : > { %894 = vst [vmem:[%s1476_s21 + $0x100] sm:$0xff] %v663_v38  ;;  %896 = vst [vmem:[%s1476_s21 + $0x110] sm:$0xff] %v744_v39  ;;  %v665_v40 = vpop.f32.mrb[17].mxu0  ;;  %v746_v41 = vpop.f32.mrb[17].mxu1  ;;  %v973_v7 = vld [vmem:[%s1476_s21 + $0xc8] sm:$0xff] (%p1329_p6)  ;;  %v977_v9 = vld [vmem:[%s1476_s21 + $0xd8] sm:$0xff] (%p1329_p6) }
 0x142   : > { %895 = vst [vmem:[%s1476_s21 + $0x108] sm:$0xff] %v665_v40  ;;  %897 = vst [vmem:[%s1476_s21 + $0x118] sm:$0xff] %v746_v41  ;;  %v667_v42 = vpop.f32.mrb[18].mxu0  ;;  %v748_v43 = vpop.f32.mrb[18].mxu1  ;;  %v979_v10 = vld [vmem:[%s1476_s21 + $0xe0] sm:$0xff] (%p1329_p6)  ;;  %v983_v12 = vld [vmem:[%s1476_s21 + $0xf0] sm:$0xff] (%p1329_p6) }
 0x143   : > { %v668_v44 = vpop.f32.mrb[19].mxu0  ;;  %v749_v45 = vpop.f32.mrb[19].mxu1  ;;  %972 = vst [vmem:[%s1523_s24 + $0x180] sm:$0xff] (%p1329_p6), %v971_v6  ;;  %974 = vst [vmem:[%s1523_s24 + $0x188] sm:$0xff] (%p1329_p6), %v973_v7  ;;  %v981_v11 = vld [vmem:[%s1476_s21 + $0xe8] sm:$0xff] (%p1329_p6)  ;;  %v985_v13 = vld [vmem:[%s1476_s21 + $0xf8] sm:$0xff] (%p1329_p6) }
 0x144   : > { %976 = vst [vmem:[%s1523_s24 + $0x190] sm:$0xff] %v975_v8  ;;  %978 = vst [vmem:[%s1523_s24 + $0x198] sm:$0xff] %v977_v9 }
 0x145   : > { %980 = vst [vmem:[%s1523_s24 + $0x1c0] sm:$0xff] %v979_v10  ;;  %982 = vst [vmem:[%s1523_s24 + $0x1c8] sm:$0xff] %v981_v11 }
 0x146   : > { %984 = vst [vmem:[%s1523_s24 + $0x1d0] sm:$0xff] %v983_v12  ;;  %986 = vst [vmem:[%s1523_s24 + $0x1d8] sm:$0xff] %v985_v13 }
 0x148   : > { %v987_v14 = vld [vmem:[%s1476_s21 + $0x100] sm:$0xff]  ;;  %v991_v16 = vld [vmem:[%s1476_s21 + $0x110] sm:$0xff] }
 0x149   : > { %988 = vst [vmem:[%s1523_s24 + $0x200] sm:$0xff] %v987_v14  ;;  %v989_v15 = vld [vmem:[%s1476_s21 + $0x108] sm:$0xff]  ;;  %v993_v17 = vld [vmem:[%s1476_s21 + $0x118] sm:$0xff]  ;;  %992 = vst [vmem:[%s1523_s24 + $0x210] sm:$0xff] %v991_v16 }
 0x14a   : > { %990 = vst [vmem:[%s1523_s24 + $0x208] sm:$0xff] %v989_v15  ;;  %994 = vst [vmem:[%s1523_s24 + $0x218] sm:$0xff] %v993_v17 }
 0x14b PF: > { %s12_s13 = sadd.s32 1, %s1276_s13   ;;  %s1613_s9 = smov %s1264_s10 }
 0x14c   : > { %p9_p11 = scmp.ge.s32.totalorder %s12_s13, 4   ;;  %s1614_s10 = smov %s1334_s19 }
 0x14d   : > { %s1615_s11 = smov %s1272_s12  ;;  %s1616_s12 = smov %s1618_s14 }
 0x14e   :  { %11 = sbr.rel (!%p9_p11) target bundleno = 3 (0x3), region = 120 }

// kernel: jvp__.29
= control target key start
LH: loop header
LB: loop body
LE: loop exit
PB: predicated region body
PF: predicated region fallthrough
CT: control target
= control target key end

     0   :  { %s985_s1 = inlined_call_operand.vmem [shape: bf16[512,128], index: 1, kind: input, shape index: {}]   ;;  %s986_s0 = inlined_call_operand.vmem [shape: bf16[72,512], index: 0, kind: input, shape index: {}]   ;;  %s987_s2 = inlined_call_operand.vmem [shape: f32[72,128], index: 2, kind: output, shape index: {}]  }
   0x1   :  { %v733_v0 = vld [vmem:[%s985_s1 + $0x40] sm:$0xff]   ;;  %v737_v4 = vld [vmem:[%s985_s1 + $0x48] sm:$0xff]   ;;  %v741_v8 = vld [vmem:[%s985_s1 + $0x50] sm:$0xff]  }
   0x2   :  { %v734_v1 = vld [vmem:[%s985_s1 + $0xc0] sm:$0xff]   ;;  %641 = vmatprep.subr.bf16.mxu0 %v733_v0  ;;  %v738_v5 = vld [vmem:[%s985_s1 + $0xc8] sm:$0xff]   ;;  %v742_v9 = vld [vmem:[%s985_s1 + $0xd0] sm:$0xff]  }
   0x3   :  { %v735_v2 = vld [vmem:[%s985_s1] sm:$0xff]   ;;  %687 = vmatprep.subr.bf16.mxu1 %v734_v1  ;;  %v739_v6 = vld [vmem:[%s985_s1 + $0x8] sm:$0xff]   ;;  %v743_v10 = vld [vmem:[%s985_s1 + $0x10] sm:$0xff]  }
   0x4   :  { %v736_v3 = vld [vmem:[%s985_s1 + $0x80] sm:$0xff]   ;;  %642 = vmatpush3.bf16.msra.mxu0 %v735_v2  ;;  %v740_v7 = vld [vmem:[%s985_s1 + $0x88] sm:$0xff]   ;;  %v744_v11 = vld [vmem:[%s985_s1 + $0x90] sm:$0xff]  }
   0x5   :  { %688 = vmatpush3.bf16.msra.mxu1 %v736_v3  ;;  %643 = vmatprep.subr.bf16.mxu0 %v737_v4  ;;  %v745_v12 = vld [vmem:[%s985_s1 + $0x58] sm:$0xff]   ;;  %v749_v16 = vld [vmem:[%s985_s1 + $0x60] sm:$0xff]   ;;  %v753_v20 = vld [vmem:[%s985_s1 + $0x68] sm:$0xff]  }
   0x6   :  { %689 = vmatprep.subr.bf16.mxu1 %v738_v5  ;;  %v746_v13 = vld [vmem:[%s985_s1 + $0xd8] sm:$0xff]   ;;  %v750_v17 = vld [vmem:[%s985_s1 + $0xe0] sm:$0xff]   ;;  %v754_v21 = vld [vmem:[%s985_s1 + $0xe8] sm:$0xff]  }
   0x7   :  { %v747_v14 = vld [vmem:[%s985_s1 + $0x18] sm:$0xff]   ;;  %v751_v18 = vld [vmem:[%s985_s1 + $0x20] sm:$0xff]   ;;  %v755_v22 = vld [vmem:[%s985_s1 + $0x28] sm:$0xff]  }
   0x8   :  { %644 = vmatpush3.bf16.msra.mxu0 %v739_v6  ;;  %v748_v15 = vld [vmem:[%s985_s1 + $0x98] sm:$0xff]   ;;  %v752_v19 = vld [vmem:[%s985_s1 + $0xa0] sm:$0xff]   ;;  %v756_v23 = vld [vmem:[%s985_s1 + $0xa8] sm:$0xff]  }
   0x9   :  { %690 = vmatpush3.bf16.msra.mxu1 %v740_v7  ;;  %645 = vmatprep.subr.bf16.mxu0 %v741_v8  ;;  %v757_v24 = vld [vmem:[%s985_s1 + $0x70] sm:$0xff]   ;;  %v761_v28 = vld [vmem:[%s985_s1 + $0x78] sm:$0xff]   ;;  %v50_v46 = vld [vmem:[%s986_s0 + $0x80] sm:$0xff] }
   0xa   :  { %691 = vmatprep.subr.bf16.mxu1 %v742_v9  ;;  %v758_v25 = vld [vmem:[%s985_s1 + $0xf0] sm:$0xff]   ;;  %v762_v29 = vld [vmem:[%s985_s1 + $0xf8] sm:$0xff]   ;;  %v51_v47 = vld [vmem:[%s986_s0 + $0x88] sm:$0xff]  ;;  %v606_v50 = vcombine.high %v50_v46, %v50_v46  ;;  %v605_v52 = vcombine.low %v50_v46, %v50_v46 }
   0xb   :  { %v759_v26 = vld [vmem:[%s985_s1 + $0x30] sm:$0xff]   ;;  %v763_v30 = vld [vmem:[%s985_s1 + $0x38] sm:$0xff]   ;;  %v608_v51 = vcombine.high %v51_v47, %v51_v47  ;;  %v607_v53 = vcombine.low %v51_v47, %v51_v47 }
   0xc   :  { %646 = vmatpush3.bf16.msra.mxu0 %v743_v10  ;;  %v760_v27 = vld [vmem:[%s985_s1 + $0xb0] sm:$0xff]   ;;  %v764_v31 = vld [vmem:[%s985_s1 + $0xb8] sm:$0xff]  }
   0xd   :  { %692 = vmatpush3.bf16.msra.mxu1 %v744_v11  ;;  %647 = vmatprep.subr.bf16.mxu0 %v745_v12  ;;  %v765_v32 = vld [vmem:[%s986_s0] ss:$16 sps:$4 sm:$0xff]   ;;  %v767_v33 = vld [vmem:[%s986_s0 + $0x4] ss:$16 sps:$4 sm:$0xff]   ;;  %v768_v34 = vld [vmem:[%s986_s0 + $0x8] ss:$16 sps:$4 sm:$0xff]  }
   0xe   :  { %693 = vmatprep.subr.bf16.mxu1 %v746_v13  ;;  %v770_v35 = vld [vmem:[%s986_s0 + $0xc] ss:$16 sps:$4 sm:$0xff]   ;;  %434 = vmatprep.mubr.bf16.mxu0 %v767_v33  ;;  %v771_v36 = vld [vmem:[%s986_s0 + $0x24] ss:$16 sps:$4 sm:$0xff]   ;;  %v775_v38 = vld [vmem:[%s986_s0 + $0x20] ss:$16 sps:$4 sm:$0xff]  }
   0xf   :  { %506 = vmatprep.mubr.bf16.mxu1 %v770_v35  ;;  %v773_v37 = vld [vmem:[%s986_s0 + $0x2c] ss:$16 sps:$4 sm:$0xff]   ;;  %v776_v39 = vld [vmem:[%s986_s0 + $0x28] ss:$16 sps:$4 sm:$0xff]   ;;  %v777_v40 = vld [vmem:[%s986_s0 + $0x44] ss:$16 sps:$4 sm:$0xff]  }
  0x10   :  { %648 = vmatpush3.bf16.msra.mxu0 %v747_v14  ;;  %v779_v41 = vld [vmem:[%s986_s0 + $0x4c] ss:$16 sps:$4 sm:$0xff]   ;;  %v781_v42 = vld [vmem:[%s986_s0 + $0x40] ss:$16 sps:$4 sm:$0xff]   ;;  %v782_v43 = vld [vmem:[%s986_s0 + $0x48] ss:$16 sps:$4 sm:$0xff]  }
  0x11   :  { %694 = vmatpush3.bf16.msra.mxu1 %v748_v15  ;;  %649 = vmatprep.subr.bf16.mxu0 %v749_v16  ;;  %v783_v44 = vld [vmem:[%s986_s0 + $0x64] ss:$16 sps:$4 sm:$0xff]   ;;  %v785_v45 = vld [vmem:[%s986_s0 + $0x6c] ss:$16 sps:$4 sm:$0xff]   ;;  %v787_v48 = vld [vmem:[%s986_s0 + $0x60] ss:$16 sps:$4 sm:$0xff]  }
  0x12   :  { %695 = vmatprep.subr.bf16.mxu1 %v750_v17  ;;  %v788_v49 = vld [vmem:[%s986_s0 + $0x68] ss:$16 sps:$4 sm:$0xff]  }
  0x14   :  { %650 = vmatpush3.bf16.msra.mxu0 %v751_v18 }
  0x15   :  { %696 = vmatpush3.bf16.msra.mxu1 %v752_v19  ;;  %651 = vmatprep.subr.bf16.mxu0 %v753_v20 }
  0x16   :  { %697 = vmatprep.subr.bf16.mxu1 %v754_v21 }
  0x18   :  { %652 = vmatpush3.bf16.msra.mxu0 %v755_v22 }
  0x19   :  { %698 = vmatpush3.bf16.msra.mxu1 %v756_v23  ;;  %653 = vmatprep.subr.bf16.mxu0 %v757_v24 }
  0x1a   :  { %699 = vmatprep.subr.bf16.mxu1 %v758_v25 }
  0x1c   :  { %654 = vmatpush3.bf16.msra.mxu0 %v759_v26 }
  0x1d   :  { %700 = vmatpush3.bf16.msra.mxu1 %v760_v27  ;;  %655 = vmatprep.subr.bf16.mxu0 %v761_v28 }
  0x1e   :  { %701 = vmatprep.subr.bf16.mxu1 %v762_v29 }
  0x20   :  { %656 = vmatpush3.bf16.msra.mxu0 %v763_v30 }
  0x21   :  { %702 = vmatpush3.bf16.msra.mxu1 %v764_v31 }
  0x23   :  { %435 = vmatmul.mubr.bf16.vlgmr.msra.gmra.mrb[0].mxu0 %v765_v32 }
  0x24   :  { %507 = vmatmul.mubr.bf16.vlgmr.msra.gmra.mrb[0].mxu1 %v768_v34  ;;  %442 = vmatprep.mubr.bf16.mxu0 %v771_v36 }
  0x25   :  { %514 = vmatprep.mubr.bf16.mxu1 %v773_v37 }
  0x2b   :  { %443 = vmatmul.mubr.bf16.gmra.mrb[4].mxu0 %v775_v38 }
  0x2c   :  { %515 = vmatmul.mubr.bf16.gmra.mrb[4].mxu1 %v776_v39  ;;  %450 = vmatprep.mubr.bf16.mxu0 %v777_v40 }
  0x2d   :  { %522 = vmatprep.mubr.bf16.mxu1 %v779_v41 }
  0x33   :  { %451 = vmatmul.mubr.bf16.gmra.mrb[8].mxu0 %v781_v42 }
  0x34   :  { %523 = vmatmul.mubr.bf16.gmra.mrb[8].mxu1 %v782_v43  ;;  %458 = vmatprep.mubr.bf16.mxu0 %v783_v44 }
  0x35   :  { %530 = vmatprep.mubr.bf16.mxu1 %v785_v45 }
  0x3b   :  { %459 = vmatmul.mubr.bf16.gmra.mrb[12].mxu0 %v787_v48 }
  0x3c   :  { %531 = vmatmul.mubr.bf16.gmra.mrb[12].mxu1 %v788_v49  ;;  %466 = vmatprep.mubr.bf16.mxu0 %v606_v50 }
  0x3d   :  { %538 = vmatprep.mubr.bf16.mxu1 %v608_v51 }
  0x43   :  { %467 = vmatmul.mubr.bf16.gmra.mrb[16].mxu0 %v605_v52 }
  0x44   :  { %539 = vmatmul.mubr.bf16.gmra.mrb[16].mxu1 %v607_v53 }
  0xf6   :  { %v657_v54 = vpop.f32.mrb[0].mxu0 }
  0xf7   :  { %v703_v55 = vpop.f32.mrb[0].mxu1  ;;  %v658_v56 = vpop.f32.mrb[1].mxu0 }
  0xf8   :  { %v659_v57 = vadd.f32 %v658_v56, %v657_v54  ;;  %v704_v58 = vpop.f32.mrb[1].mxu1  ;;  %v660_v59 = vpop.f32.mrb[2].mxu0 }
  0xf9   :  { %v705_v60 = vadd.f32 %v704_v58, %v703_v55  ;;  %v706_v61 = vpop.f32.mrb[2].mxu1  ;;  %v661_v62 = vpop.f32.mrb[3].mxu0 }
  0xfa   :  { %v662_v63 = vadd.f32 %v661_v62, %v660_v59  ;;  %v707_v0 = vpop.f32.mrb[3].mxu1 }
  0xfb   :  { %v509_v1 = vadd.f32 %v705_v60, %v659_v57  ;;  %v708_v2 = vadd.f32 %v707_v0, %v706_v61 }
  0xfd   :  { %576 = vst [vmem:[%s987_s2] sm:$0xff] %v509_v1  ;;  %v512_v3 = vadd.f32 %v708_v2, %v662_v63 }
  0xfe   :  { %v663_v4 = vpop.f32.mrb[4].mxu0 }
  0xff   :  { %577 = vst [vmem:[%s987_s2 + $0x8] sm:$0xff] %v512_v3  ;;  %v709_v5 = vpop.f32.mrb[4].mxu1  ;;  %v664_v6 = vpop.f32.mrb[5].mxu0 }
 0x100   :  { %v665_v7 = vadd.f32 %v664_v6, %v663_v4  ;;  %v710_v8 = vpop.f32.mrb[5].mxu1  ;;  %v666_v9 = vpop.f32.mrb[6].mxu0 }
 0x101   :  { %v711_v10 = vadd.f32 %v710_v8, %v709_v5  ;;  %v712_v11 = vpop.f32.mrb[6].mxu1  ;;  %v667_v12 = vpop.f32.mrb[7].mxu0 }
 0x102   :  { %v668_v13 = vadd.f32 %v667_v12, %v666_v9  ;;  %v713_v14 = vpop.f32.mrb[7].mxu1 }
 0x103   :  { %v517_v15 = vadd.f32 %v711_v10, %v665_v7  ;;  %v714_v16 = vadd.f32 %v713_v14, %v712_v11 }
 0x105   :  { %578 = vst [vmem:[%s987_s2 + $0x10] sm:$0xff] %v517_v15  ;;  %v520_v17 = vadd.f32 %v714_v16, %v668_v13 }
 0x106   :  { %v669_v18 = vpop.f32.mrb[8].mxu0 }
 0x107   :  { %579 = vst [vmem:[%s987_s2 + $0x18] sm:$0xff] %v520_v17  ;;  %v715_v19 = vpop.f32.mrb[8].mxu1  ;;  %v670_v20 = vpop.f32.mrb[9].mxu0 }
 0x108   :  { %v671_v21 = vadd.f32 %v670_v20, %v669_v18  ;;  %v716_v22 = vpop.f32.mrb[9].mxu1  ;;  %v672_v23 = vpop.f32.mrb[10].mxu0 }
 0x109   :  { %v717_v24 = vadd.f32 %v716_v22, %v715_v19  ;;  %v718_v25 = vpop.f32.mrb[10].mxu1  ;;  %v673_v26 = vpop.f32.mrb[11].mxu0 }
 0x10a   :  { %v674_v27 = vadd.f32 %v673_v26, %v672_v23  ;;  %v719_v28 = vpop.f32.mrb[11].mxu1 }
 0x10b   :  { %v525_v29 = vadd.f32 %v717_v24, %v671_v21  ;;  %v720_v30 = vadd.f32 %v719_v28, %v718_v25 }
 0x10d   :  { %580 = vst [vmem:[%s987_s2 + $0x20] sm:$0xff] %v525_v29  ;;  %v528_v31 = vadd.f32 %v720_v30, %v674_v27 }
 0x10e   :  { %v675_v32 = vpop.f32.mrb[12].mxu0 }
 0x10f   :  { %581 = vst [vmem:[%s987_s2 + $0x28] sm:$0xff] %v528_v31  ;;  %v721_v33 = vpop.f32.mrb[12].mxu1  ;;  %v676_v34 = vpop.f32.mrb[13].mxu0 }
 0x110   :  { %v677_v35 = vadd.f32 %v676_v34, %v675_v32  ;;  %v722_v36 = vpop.f32.mrb[13].mxu1  ;;  %v678_v37 = vpop.f32.mrb[14].mxu0 }
 0x111   :  { %v723_v38 = vadd.f32 %v722_v36, %v721_v33  ;;  %v724_v39 = vpop.f32.mrb[14].mxu1  ;;  %v679_v40 = vpop.f32.mrb[15].mxu0 }
 0x112   :  { %v680_v41 = vadd.f32 %v679_v40, %v678_v37  ;;  %v725_v42 = vpop.f32.mrb[15].mxu1 }
 0x113   :  { %v533_v43 = vadd.f32 %v723_v38, %v677_v35  ;;  %v726_v44 = vadd.f32 %v725_v42, %v724_v39 }
 0x115   :  { %582 = vst [vmem:[%s987_s2 + $0x30] sm:$0xff] %v533_v43  ;;  %v536_v45 = vadd.f32 %v726_v44, %v680_v41 }
 0x116   :  { %v681_v46 = vpop.f32.mrb[16].mxu0 }
 0x117   :  { %583 = vst [vmem:[%s987_s2 + $0x38] sm:$0xff] %v536_v45  ;;  %v727_v47 = vpop.f32.mrb[16].mxu1  ;;  %v682_v48 = vpop.f32.mrb[17].mxu0 }
 0x118   :  { %v683_v49 = vadd.f32 %v682_v48, %v681_v46  ;;  %v728_v50 = vpop.f32.mrb[17].mxu1  ;;  %v684_v51 = vpop.f32.mrb[18].mxu0 }
 0x119   :  { %v729_v52 = vadd.f32 %v728_v50, %v727_v47  ;;  %v730_v53 = vpop.f32.mrb[18].mxu1  ;;  %v685_v54 = vpop.f32.mrb[19].mxu0 }
 0x11a   :  { %v731_v55 = vpop.f32.mrb[19].mxu1 }
 0x11b   :  { %v541_v56 = vadd.f32 %v729_v52, %v683_v49 }
 0x11d   :  { %584 = vst [vmem:[%s987_s2 + $0x40] sm:$0xff] %v541_v56 }

// kernel: _lambda_.4
= control target key start
LH: loop header
LB: loop body
LE: loop exit
PB: predicated region body
PF: predicated region fallthrough
CT: control target
= control target key end

     0   :  { %s306_s1 = inlined_call_operand.vmem [shape: bf16[128,128], index: 1, kind: input, shape index: {}]   ;;  %s307_s0 = inlined_call_operand.vmem [shape: bf16[32,128], index: 0, kind: input, shape index: {}]   ;;  %s308_s2 = inlined_call_operand.vmem [shape: f32[1,128], index: 2, kind: input, shape index: {}]   ;;  %s309_s3 = inlined_call_operand.vmem [shape: f32[32,128], index: 3, kind: output, shape index: {}]  }
   0x1   :  { %v231_v0 = vld [vmem:[%s306_s1] sm:$0xff]   ;;  %v232_v1 = vld [vmem:[%s306_s1 + $0x8] sm:$0xff]   ;;  %v233_v2 = vld [vmem:[%s306_s1 + $0x10] sm:$0xff]  }
   0x2   :  { %211 = vmatprep.subr.bf16.mxu0 %v231_v0  ;;  %v234_v3 = vld [vmem:[%s306_s1 + $0x18] sm:$0xff]   ;;  %v239_v4 = vld [vmem:[%s307_s0] sm:$0xff]   ;;  %v236_v6 = vld [vmem:[%s306_s1 + $0x28] sm:$0xff]  }
   0x3   :  { %212 = vmatpush3.bf16.msra.mxu0 %v231_v0  ;;  %227 = vmatprep.mubr.bf16.mxu0 %v239_v4  ;;  %v235_v5 = vld [vmem:[%s306_s1 + $0x20] sm:$0xff]   ;;  %v237_v7 = vld [vmem:[%s306_s1 + $0x30] sm:$0xff]   ;;  %v238_v8 = vld [vmem:[%s306_s1 + $0x38] sm:$0xff]  }
   0x4   :  { %213 = vmatprep.subr.bf16.mxu0 %v232_v1  ;;  %v240_v9 = vld [vmem:[%s307_s0 + $0x8] sm:$0xff]   ;;  %v200_v10 = vld [vmem:[%s308_s2] ss:$0 sm:$0xff] }
   0x7   :  { %214 = vmatpush3.bf16.msra.mxu0 %v232_v1 }
   0x8   :  { %215 = vmatprep.subr.bf16.mxu0 %v233_v2 }
   0xb   :  { %216 = vmatpush3.bf16.msra.mxu0 %v233_v2 }
   0xc   :  { %217 = vmatprep.subr.bf16.mxu0 %v234_v3 }
   0xf   :  { %218 = vmatpush3.bf16.msra.mxu0 %v234_v3 }
  0x10   :  { %219 = vmatprep.subr.bf16.mxu0 %v235_v5 }
  0x13   :  { %220 = vmatpush3.bf16.msra.mxu0 %v235_v5 }
  0x14   :  { %221 = vmatprep.subr.bf16.mxu0 %v236_v6 }
  0x17   :  { %222 = vmatpush3.bf16.msra.mxu0 %v236_v6 }
  0x18   :  { %223 = vmatprep.subr.bf16.mxu0 %v237_v7 }
  0x1b   :  { %224 = vmatpush3.bf16.msra.mxu0 %v237_v7 }
  0x1c   :  { %225 = vmatprep.subr.bf16.mxu0 %v238_v8 }
  0x1f   :  { %226 = vmatpush3.bf16.msra.mxu0 %v238_v8 }
  0x22   :  { %228 = vmatmul.mubr.bf16.vlgmr.msra.gmra.mrb[0].mxu0 %v240_v9 }
  0xf5   :  { %v229_v11 = vpop.f32.mrb[0].mxu0 }
  0xf6   :  { %v180_v12 = vadd.f32 %v229_v11, %v200_v10  ;;  %v141_v13 = vpop.f32.mrb[1].mxu0 }
  0xf7   :  { %v178_v14 = vadd.f32 %v200_v10, %v141_v13  ;;  %v230_v15 = vpop.f32.mrb[2].mxu0 }
  0xf8   :  { %184 = vst [vmem:[%s309_s3 + $0x10] sm:$0xff] %v180_v12  ;;  %v181_v16 = vadd.f32 %v230_v15, %v200_v10  ;;  %v144_v17 = vpop.f32.mrb[3].mxu0 }
  0xf9   :  { %182 = vst [vmem:[%s309_s3] sm:$0xff] %v178_v14  ;;  %v179_v18 = vadd.f32 %v200_v10, %v144_v17 }
  0xfa   :  { %185 = vst [vmem:[%s309_s3 + $0x18] sm:$0xff] %v181_v16 }
  0xfb   :  { %183 = vst [vmem:[%s309_s3 + $0x8] sm:$0xff] %v179_v18 }

// kernel: _lambda_.5
= control target key start
LH: loop header
LB: loop body
LE: loop exit
PB: predicated region body
PF: predicated region fallthrough
CT: control target
= control target key end

     0   :  { %s102_s0 = inlined_call_operand.vmem [shape: f32[8,128], index: 0, kind: input, shape index: {}]   ;;  %s103_s1 = inlined_call_operand.vmem [shape: f32[8,128], index: 1, kind: input, shape index: {}]   ;;  %s104_s2 = inlined_call_operand.hbm [shape: f32[1,1], index: 2, kind: output, shape index: {}]  }
   0x1   :  { %v17_v0 = vld [vmem:[%s102_s0] sm:$0xff] }
   0x2   :  { %v18_v1 = vld [vmem:[%s103_s1] sm:$0xff] }
   0x3   :  { %7 = vsyncpa [#allocation4], 0  ;;  %v19_v2 = vsub.f32 %v17_v0, %v18_v1  ;;  %s56_s16 = scalar_lea.hbm %s104_s2, 16 }
   0x4   :  { %p57_p0 = scmp.ne.s32.totalorder %s104_s2, %s56_s16  ;;  %p60_p1 = scmp.lt.u32.totalorder %s56_s16, %s104_s2 }
   0x5   :  { %v21_v3 = vmul.f32 %v19_v2, %v19_v2 }
   0x6   :  { %p62_p2 = pnand %p60_p1, %p57_p0 }
   0x7   :  { %28 = vadd.xlane.f32.xlu0 %v21_v3 }
  0x94   :  { %v29_v4 = vpop.xlane.xlu0 %28 }
  0x95   :  { %v30_v5 = vrot.slane %v29_v4, 4 }
  0x97   :  { %v31_v6 = vadd.f32 %v30_v5, %v29_v4 }
  0x99   :  { %v32_v7 = vrot.slane %v31_v6, 2 }
  0x9b   :  { %v33_v8 = vadd.f32 %v32_v7, %v31_v6 }
  0x9d   :  { %v34_v9 = vrot.slane %v33_v8, 1 }
  0x9f   :  { %v35_v10 = vadd.f32 %v34_v9, %v33_v8 }
  0xa1   :  { %53 = vpush %v35_v10 }
  0xd2   :  { %s54_s13 = spop %53 }
  0xd3   :  { %s37_s14 = smul.f32 0.001953125, %s54_s13 }
  0xd5   :  { %39 = sst [smem:[#allocation3]] %s37_s14 }
  0xd6   :  { %65 = shalt.err (!%p62_p2)
}
  0xd7   :  { %s68_s20 = smov [#allocation3]  }
  0xd8   :  { %47 = dma.smem_to_hbm %s68_s20, 16, %s104_s2, [#allocation4]  }
  0xd9   :  { %66 = dma.done.wait [#allocation4], 16  }
  0xda   :  { %67 = vsyncadd [#allocation4], 4294967280 }
  0xdb   :  { %51 = sfence }
  0xdc   :  { %52 = vsyncpa [#allocation4], 1 }

</bundles_post_ra>
